<compile_context>
chip_gen: v5e
topology: v5e:2x2
jax: 0.10.0
libtpu: 0.0.40
codegen_flags: <defaults>
</compile_context>

<pallas_src>
import functools

import jax
import jax.numpy as jnp
from jax.experimental import pallas as pl
from jax.experimental.pallas import tpu as pltpu


def _round_up(x, m):
    return (x + m - 1) // m * m


# ----------------------------------------------------------------------------
# Pallas kernel: tiled matmul + bias (+ skip) + activation, f32 accumulation
# ----------------------------------------------------------------------------
def _mm_kernel(*refs, act, has_skip):
    if has_skip:
        x_ref, w_ref, b_ref, s_ref, o_ref, acc_ref = refs
    else:
        x_ref, w_ref, b_ref, o_ref, acc_ref = refs
        s_ref = None

    k = pl.program_id(2)

    @pl.when(k == 0)
    def _():
        acc_ref[...] = jnp.zeros_like(acc_ref)

    acc_ref[...] += jnp.dot(x_ref[...], w_ref[...],
                            preferred_element_type=jnp.float32)

    @pl.when(k == pl.num_programs(2) - 1)
    def _():
        out = acc_ref[...] + b_ref[...]              # epilogue math stays f32
        if has_skip:
            out = out + s_ref[...].astype(jnp.float32)   # bf16 skip, f32 add
        if act == "relu":
            out = jnp.maximum(out, 0.0)
        elif act == "tanh":
            out = jnp.tanh(out)
        o_ref[...] = out.astype(o_ref.dtype)         # cast only on the store


def matmul_bias_act(x, w, b, *, act="none", skip=None, out_dtype=jnp.bfloat16,
                    tm_max=512, tn_max=256, tk_max=1024):
    """act(x @ w + b [+ skip]); x:(M,K), w:(K,N), b:(N,), skip:(M,N)."""
    M, K = x.shape
    K2, N = w.shape
    assert K == K2

    # ---- tile selection -----------------------------------------------------
    Nr = _round_up(N, 128)
    tn = 256 if (tn_max >= 256 and Nr % 256 == 0) else 128   # 256 feeds v6e/v7x MXU
    Np = Nr                                                   # tn divides Np

    Kr = _round_up(K, 128)
    tk = min(_round_up(tk_max, 128), Kr)
    Kp = _round_up(Kr, tk)

    Mr = _round_up(M, 8)
    tm = min(tm_max, Mr)
    # v7x has 2 TensorCores: if the N axis collapsed to a single tile, split M
    # into >=2 tiles so the "parallel" grid axes actually shard across cores.
    if Np // tn == 1 and tm >= Mr and Mr >= 16:
        tm = _round_up(Mr // 2, 8)
    Mp = _round_up(Mr, tm)

    # ---- operand prep (bf16 MXU inputs; pads fuse with the producing op) ----
    xp = x.astype(jnp.bfloat16)
    if (Mp, Kp) != (M, K):
        xp = jnp.pad(xp, ((0, Mp - M), (0, Kp - K)))
    wp = w.astype(jnp.bfloat16)
    if (Kp, Np) != (K, N):
        wp = jnp.pad(wp, ((0, Kp - K), (0, Np - N)))
    bp = b.reshape(1, N).astype(jnp.float32)
    if Np != N:
        bp = jnp.pad(bp, ((0, 0), (0, Np - N)))

    in_specs = [
        pl.BlockSpec((tm, tk), lambda i, j, k: (i, k)),
        pl.BlockSpec((tk, tn), lambda i, j, k: (k, j)),
        pl.BlockSpec((1, tn), lambda i, j, k: (0, j)),
    ]
    args = [xp, wp, bp]
    has_skip = skip is not None
    if has_skip:
        sp = skip.astype(jnp.bfloat16)                        # bf16 skip DMA
        if (Mp, Np) != (M, N):
            sp = jnp.pad(sp, ((0, Mp - M), (0, Np - N)))
        in_specs.append(pl.BlockSpec((tm, tn), lambda i, j, k: (i, j)))
        args.append(sp)

    kernel = functools.partial(_mm_kernel, act=act, has_skip=has_skip)
    out = pl.pallas_call(
        kernel,
        out_shape=jax.ShapeDtypeStruct((Mp, Np), out_dtype),
        grid=(Mp // tm, Np // tn, Kp // tk),
        in_specs=in_specs,
        out_specs=pl.BlockSpec((tm, tn), lambda i, j, k: (i, j)),
        scratch_shapes=[pltpu.VMEM((tm, tn), jnp.float32)],
        compiler_params=pltpu.CompilerParams(
            dimension_semantics=("parallel", "parallel", "arbitrary"),
        ),
    )(*args)
    if (Mp, Np) != (M, N):
        out = out[:M, :N]
    return out


# ----------------------------------------------------------------------------
# Lazy BatchNorm: stats as one fused f32 read; apply folded into the next layer
# ----------------------------------------------------------------------------
def batchnorm_stats(x, gamma, beta, eps=1e-5):
    """PyTorch training-mode BN statistics -> per-channel (scale, shift) in f32."""
    xf = x.astype(jnp.float32)
    mean = jnp.mean(xf, axis=(0, 1, 2))
    var = jnp.maximum(jnp.mean(jnp.square(xf), axis=(0, 1, 2)) - jnp.square(mean), 0.0)
    s = gamma * jax.lax.rsqrt(var + eps)
    t = beta - mean * s
    return s, t


def _apply_bn(x, bn):
    """Apply a pending per-channel affine lazily (f32 math, bf16 out). Fused by
    XLA into the consuming pad/gather, so it adds no extra HBM pass."""
    if bn is None:
        return x.astype(jnp.bfloat16)
    s, t = bn
    return (x.astype(jnp.float32) * s + t).astype(jnp.bfloat16)


# ----------------------------------------------------------------------------
# Convolutions (channels-last NHWC), lowered onto the Pallas matmul
# ----------------------------------------------------------------------------
def conv1x1(x, w, b, *, act="none", in_bn=None, out_dtype=jnp.bfloat16):
    """x:(B,H,W,Cin); w:(Cout,Cin,1,1) torch layout; b:(Cout,). BN fold is exact."""
    B, H, W, C = x.shape
    Cout = w.shape[0]
    wmat = w.reshape(Cout, C).T.astype(jnp.float32)
    bias = b.astype(jnp.float32)
    if in_bn is not None:
        s, t = in_bn                       # (x*s + t) @ W + b == x@(sW) + (t@W + b)
        bias = bias + t.astype(jnp.float32) @ wmat
        wmat = wmat * s[:, None]
    y = matmul_bias_act(x.reshape(B * H * W, C), wmat, bias,
                        act=act, out_dtype=out_dtype)
    return y.reshape(B, H, W, Cout)


def conv4x4_s2_p1(x, w, b, *, act="none", in_bn=None):
    """x:(B,H,W,Cin); w:(Cout,Cin,4,4); b:(Cout,). Output (B,H/2,W/2,Cout)."""
    B, H, W, C = x.shape
    Cout = w.shape[0]
    Ho, Wo = H // 2, W // 2
    xb = _apply_bn(x, in_bn)                         # fused into the pad/gather below
    xp = jnp.pad(xb, ((0, 0), (1, 1), (1, 1), (0, 0)))
    patches = [xp[:, kh:kh + 2 * Ho:2, kw:kw + 2 * Wo:2, :]
               for kh in range(4) for kw in range(4)]
    # (B,Ho,Wo,16,C) -> (B*Ho*Wo, 16*C); K ordered (kh, kw, ci)
    p = jnp.stack(patches, axis=3).reshape(B * Ho * Wo, 16 * C)
    wmat = w.transpose(2, 3, 1, 0).reshape(16 * C, Cout).astype(jnp.float32)
    y = matmul_bias_act(p, wmat, b.astype(jnp.float32), act=act)
    return y.reshape(B, Ho, Wo, Cout)


def _convT_weight_subpixel(w):
    """ConvTranspose2d(k=4,s=2,p=1) weight (Cin,Cout,4,4) -> (9*Cin, 4*Cout)
    matrix over a 3x3 window of the UNdilated pad-1 input; columns grouped by
    output sub-pixel phase (a,b) in {0,1}^2 (a outer, b, then co)."""
    Cin, Cout = w.shape[0], w.shape[1]
    wf = w.astype(jnp.float32)
    wc = jnp.zeros((3, 3, Cin, 2, 2, Cout), jnp.float32)
    for a in range(2):
        for dhp in range(3):
            if not 0 <= dhp - a <= 1:
                continue
            kh = 3 + a - 2 * dhp
            for bb in range(2):
                for dwp in range(3):
                    if not 0 <= dwp - bb <= 1:
                        continue
                    kw = 3 + bb - 2 * dwp
                    wc = wc.at[dhp, dwp, :, a, bb, :].set(wf[:, :, kh, kw])
    return wc.reshape(9 * Cin, 4 * Cout)


def convT4x4_s2_p1(x, w, b, *, skip=None, act="none", in_bn=None, skip_bn=None):
    """ConvTranspose2d(k=4,s=2,p=1) as 4 sub-pixel phases in ONE matmul.
    x:(B,H,W,Cin); w:(Cin,Cout,4,4) torch layout. Output (B,2H,2W,Cout).
    K = 9*Cin (no zero-dilated buffer, no structural-zero FLOPs); N = 4*Cout
    (phases along N -> lane-dense output). Skip + ReLU fused in the epilogue."""
    B, H, W, C = x.shape
    Cout = w.shape[1]
    xb = _apply_bn(x, in_bn)
    xp = jnp.pad(xb, ((0, 0), (1, 1), (1, 1), (0, 0)))
    patches = [xp[:, dh:dh + H, dw:dw + W, :]
               for dh in range(3) for dw in range(3)]
    p = jnp.stack(patches, axis=3).reshape(B * H * W, 9 * C)
    wmat = _convT_weight_subpixel(w)
    bias = jnp.tile(b.astype(jnp.float32), 4)        # per-phase column groups

    skip_mat = None
    if skip is not None:
        sb = _apply_bn(skip, skip_bn)                # encoder feature's lazy BN
        skip_mat = (sb.reshape(B, H, 2, W, 2, Cout)
                      .transpose(0, 1, 3, 2, 4, 5)
                      .reshape(B * H * W, 4 * Cout))

    y = matmul_bias_act(p, wmat, bias, act=act, skip=skip_mat)
    # sub-pixel shuffle: (B*H*W, (a,b,co)) -> (B, 2H, 2W, Cout)
    y = (y.reshape(B, H, W, 2, 2, Cout)
           .transpose(0, 1, 3, 2, 4, 5)
           .reshape(B, 2 * H, 2 * W, Cout))
    return y


# ----------------------------------------------------------------------------
# UNet forward (matches the PyTorch module's forward semantics)
# ----------------------------------------------------------------------------
def unet_forward(x_nchw, params):
    x = jnp.transpose(x_nchw, (0, 2, 3, 1))          # NHWC internally

    w, b, g, bt = params["first_1x1"]
    x = conv1x1(x, w, b, act="relu")                  # Conv1x1 -> ReLU (fused)
    bn = batchnorm_stats(x, g, bt)                    # BN folded into next layer

    feats = []                                        # (pre-BN activation, its BN)
    for (w, b, g, bt) in params["down"]:
        feats.append((x, bn))                         # saved value == BN(x), lazily
        x = conv4x4_s2_p1(x, w, b, act="relu", in_bn=bn)
        bn = batchnorm_stats(x, g, bt)

    for (w, b, g, bt) in params["up"]:
        skip, skip_bn = feats.pop()
        # convT -> +skip -> ReLU fused in the Pallas epilogue, then lazy BN
        x = convT4x4_s2_p1(x, w, b, skip=skip, skip_bn=skip_bn,
                           act="relu", in_bn=bn)
        bn = batchnorm_stats(x, g, bt)

    w, b = params["last_1x1"]
    x = conv1x1(x, w, b, act="tanh", in_bn=bn, out_dtype=jnp.float32)
    return jnp.transpose(x, (0, 3, 1, 2))             # back to NCHW


# ----------------------------------------------------------------------------
# Parameter init (PyTorch-like uniform fan-in init; BN gamma=1, beta=0)
# ----------------------------------------------------------------------------
def init_params(key, dim, output_channel=1, ngf_factor=1, depth=4):
    def uinit(k, shape, fan_in):
        bound = 1.0 / (fan_in ** 0.5)
        return jax.random.uniform(k, shape, jnp.float32, -bound, bound)

    params = {}
    c0 = dim * ngf_factor
    key, k1, k2 = jax.random.split(key, 3)
    params["first_1x1"] = (
        uinit(k1, (c0, dim, 1, 1), dim),
        uinit(k2, (c0,), dim),
        jnp.ones((c0,), jnp.float32),
        jnp.zeros((c0,), jnp.float32),
    )

    down = []
    for i in range(depth):
        cin = (2 ** i) * ngf_factor * dim
        cout = (2 ** (i + 1)) * ngf_factor * dim
        key, k1, k2 = jax.random.split(key, 3)
        fi = cin * 16
        down.append((uinit(k1, (cout, cin, 4, 4), fi),
                     uinit(k2, (cout,), fi),
                     jnp.ones((cout,), jnp.float32),
                     jnp.zeros((cout,), jnp.float32)))
    params["down"] = down

    up = []
    for i in range(depth):
        cin = (2 ** (depth - i)) * ngf_factor * dim
        cout = (2 ** (depth - 1 - i)) * ngf_factor * dim
        key, k1, k2 = jax.random.split(key, 3)
        fi = cin * 16
        up.append((uinit(k1, (cin, cout, 4, 4), fi),   # ConvTranspose (Cin,Cout,4,4)
                   uinit(k2, (cout,), fi),
                   jnp.ones((cout,), jnp.float32),
                   jnp.zeros((cout,), jnp.float32)))
    params["up"] = up

    cin = ngf_factor * dim
    key, k1, k2 = jax.random.split(key, 3)
    params["last_1x1"] = (uinit(k1, (output_channel, cin, 1, 1), cin),
                          uinit(k2, (output_channel,), cin))
    return params


if __name__ == "__main__":
    dim = 4              # input channels (first-layer channel count)
    output_channel = 1
    ngf_factor = 1
    depth = 4
    B, H, W = 2, 16, 16  # H, W must be divisible by 2**depth

    key = jax.random.PRNGKey(0)
    key, kx = jax.random.split(key)
    x = jax.random.normal(kx, (B, dim, H, W), dtype=jnp.float32)
    params = init_params(key, dim, output_channel, ngf_factor, depth)

    fwd = jax.jit(unet_forward)
    out = jax.block_until_ready(fwd(x, params))
    assert out.shape == (B, output_channel, H, W), out.shape
    assert bool(jnp.all(jnp.isfinite(out)))
    print("KERNEL_OK")
</pallas_src>

<mosaic_0001>
module attributes {stable_mosaic.version = 11 : i64} {
  func.func @_mm_kernel(%arg0: i32, %arg1: i32, %arg2: i32, %arg3: memref<256x128xbf16, #tpu.memory_space<vmem>>, %arg4: memref<128x128xbf16, #tpu.memory_space<vmem>>, %arg5: memref<1x128xf32, #tpu.memory_space<vmem>>, %arg6: memref<256x128xbf16, #tpu.memory_space<vmem>>, %arg7: memref<256x128xf32, #tpu.memory_space<vmem>>) attributes {dimension_semantics = [#tpu.dimension_semantics<parallel>, #tpu.dimension_semantics<parallel>, #tpu.dimension_semantics<arbitrary>], iteration_bounds = array<i64: 2, 1, 1>, scalar_prefetch = 0 : i64, scratch_operands = 1 : i64, tpu.core_type = #tpu.core_type<tc>, window_params = [{transform_indices = @transform_0, window_bounds = array<i64: 256, 128>}, {transform_indices = @transform_1, window_bounds = array<i64: 128, 128>}, {transform_indices = @transform_2, window_bounds = array<i64: 1, 128>}, {transform_indices = @transform_3, window_bounds = array<i64: 256, 128>}]} {
    %c0_i32 = arith.constant 0 : i32
    %0 = arith.cmpi eq, %arg2, %c0_i32 : i32
    %1 = arith.extui %0 : i1 to i32
    %c0_i32_0 = arith.constant 0 : i32
    %2 = arith.cmpi ne, %1, %c0_i32_0 : i32
    scf.if %2 {
      %cst_10 = arith.constant 0.000000e+00 : f32
      %12 = vector.broadcast %cst_10 : f32 to vector<256x128xf32>
      %c0_11 = arith.constant 0 : index
      %c0_12 = arith.constant 0 : index
      %13 = vector.load %arg7[%c0_11, %c0_12] : memref<256x128xf32, #tpu.memory_space<vmem>>, vector<256x128xf32>
      tpu.vector_store %arg7[%c0_11, %c0_12], %12 {strides = array<i32>} : memref<256x128xf32, #tpu.memory_space<vmem>>, vector<256x128xf32>,
    } else {
    }
    %c0 = arith.constant 0 : index
    %c0_1 = arith.constant 0 : index
    %3 = vector.load %arg7[%c0, %c0_1] : memref<256x128xf32, #tpu.memory_space<vmem>>, vector<256x128xf32>
    %c0_2 = arith.constant 0 : index
    %c0_3 = arith.constant 0 : index
    %4 = vector.load %arg3[%c0_2, %c0_3] : memref<256x128xbf16, #tpu.memory_space<vmem>>, vector<256x128xbf16>
    %c0_4 = arith.constant 0 : index
    %c0_5 = arith.constant 0 : index
    %5 = vector.load %arg4[%c0_4, %c0_5] : memref<128x128xbf16, #tpu.memory_space<vmem>>, vector<128x128xbf16>
    %cst = arith.constant dense<0.000000e+00> : vector<256x128xf32>
    %6 = tpu.matmul %4, %5, %cst {dimension_numbers = #tpu.dot_dimension_numbers<[1], [0], [0], [1], [0, 0, 1, 1], [], []>} : vector<256x128xbf16>, vector<128x128xbf16>, vector<256x128xf32> -> vector<256x128xf32>
    %7 = arith.addf %3, %6 : vector<256x128xf32>
    %c0_6 = arith.constant 0 : index
    %c0_7 = arith.constant 0 : index
    %8 = vector.load %arg7[%c0_6, %c0_7] : memref<256x128xf32, #tpu.memory_space<vmem>>, vector<256x128xf32>
    tpu.vector_store %arg7[%c0_6, %c0_7], %7 {strides = array<i32>} : memref<256x128xf32, #tpu.memory_space<vmem>>, vector<256x128xf32>,
    %c0_i32_8 = arith.constant 0 : i32
    %9 = arith.cmpi eq, %arg2, %c0_i32_8 : i32
    %10 = arith.extui %9 : i1 to i32
    %c0_i32_9 = arith.constant 0 : i32
    %11 = arith.cmpi ne, %10, %c0_i32_9 : i32
    scf.if %11 {
      %c0_10 = arith.constant 0 : index
      %c0_11 = arith.constant 0 : index
      %12 = vector.load %arg7[%c0_10, %c0_11] : memref<256x128xf32, #tpu.memory_space<vmem>>, vector<256x128xf32>
      %c0_12 = arith.constant 0 : index
      %c0_13 = arith.constant 0 : index
      %13 = vector.load %arg5[%c0_12, %c0_13] : memref<1x128xf32, #tpu.memory_space<vmem>>, vector<1x128xf32>
      %14 = vector.broadcast %13 : vector<1x128xf32> to vector<256x128xf32>
      %15 = arith.addf %12, %14 : vector<256x128xf32>
      %cst_14 = arith.constant 0.000000e+00 : f32
      %16 = vector.broadcast %cst_14 : f32 to vector<256x128xf32>
      %17 = arith.maximumf %15, %16 : vector<256x128xf32>
      %18 = arith.truncf %17 : vector<256x128xf32> to vector<256x128xbf16>
      %c0_15 = arith.constant 0 : index
      %c0_16 = arith.constant 0 : index
      %19 = vector.load %arg6[%c0_15, %c0_16] : memref<256x128xbf16, #tpu.memory_space<vmem>>, vector<256x128xbf16>
      tpu.vector_store %arg6[%c0_15, %c0_16], %18 {strides = array<i32>} : memref<256x128xbf16, #tpu.memory_space<vmem>>, vector<256x128xbf16>,
    } else {
    }
    return
  }
  func.func @transform_0(%arg0: i32, %arg1: i32, %arg2: i32) -> (i32, i32) {
    %c0_i32 = arith.constant 0 : i32
    return %arg0, %arg2 : i32, i32
  }
  func.func @transform_1(%arg0: i32, %arg1: i32, %arg2: i32) -> (i32, i32) {
    %c0_i32 = arith.constant 0 : i32
    return %arg2, %arg1 : i32, i32
  }
  func.func @transform_2(%arg0: i32, %arg1: i32, %arg2: i32) -> (i32, i32) {
    %c0_i32 = arith.constant 0 : i32
    %c0_i32_0 = arith.constant 0 : i32
    return %c0_i32, %arg1 : i32, i32
  }
  func.func @transform_3(%arg0: i32, %arg1: i32, %arg2: i32) -> (i32, i32) {
    %c0_i32 = arith.constant 0 : i32
    return %arg0, %arg1 : i32, i32
  }
}

module attributes {stable_mosaic.version = 11 : i64} {
  func.func @_mm_kernel(%arg0: i32, %arg1: i32, %arg2: i32, %arg3: memref<64x128xbf16, #tpu.memory_space<vmem>>, %arg4: memref<128x128xbf16, #tpu.memory_space<vmem>>, %arg5: memref<1x128xf32, #tpu.memory_space<vmem>>, %arg6: memref<64x128xbf16, #tpu.memory_space<vmem>>, %arg7: memref<64x128xf32, #tpu.memory_space<vmem>>) attributes {dimension_semantics = [#tpu.dimension_semantics<parallel>, #tpu.dimension_semantics<parallel>, #tpu.dimension_semantics<arbitrary>], iteration_bounds = array<i64: 2, 1, 1>, scalar_prefetch = 0 : i64, scratch_operands = 1 : i64, tpu.core_type = #tpu.core_type<tc>, window_params = [{transform_indices = @transform_0, window_bounds = array<i64: 64, 128>}, {transform_indices = @transform_1, window_bounds = array<i64: 128, 128>}, {transform_indices = @transform_2, window_bounds = array<i64: 1, 128>}, {transform_indices = @transform_3, window_bounds = array<i64: 64, 128>}]} {
    %c0_i32 = arith.constant 0 : i32
    %0 = arith.cmpi eq, %arg2, %c0_i32 : i32
    %1 = arith.extui %0 : i1 to i32
    %c0_i32_0 = arith.constant 0 : i32
    %2 = arith.cmpi ne, %1, %c0_i32_0 : i32
    scf.if %2 {
      %cst_10 = arith.constant 0.000000e+00 : f32
      %12 = vector.broadcast %cst_10 : f32 to vector<64x128xf32>
      %c0_11 = arith.constant 0 : index
      %c0_12 = arith.constant 0 : index
      %13 = vector.load %arg7[%c0_11, %c0_12] : memref<64x128xf32, #tpu.memory_space<vmem>>, vector<64x128xf32>
      tpu.vector_store %arg7[%c0_11, %c0_12], %12 {strides = array<i32>} : memref<64x128xf32, #tpu.memory_space<vmem>>, vector<64x128xf32>,
    } else {
    }
    %c0 = arith.constant 0 : index
    %c0_1 = arith.constant 0 : index
    %3 = vector.load %arg7[%c0, %c0_1] : memref<64x128xf32, #tpu.memory_space<vmem>>, vector<64x128xf32>
    %c0_2 = arith.constant 0 : index
    %c0_3 = arith.constant 0 : index
    %4 = vector.load %arg3[%c0_2, %c0_3] : memref<64x128xbf16, #tpu.memory_space<vmem>>, vector<64x128xbf16>
    %c0_4 = arith.constant 0 : index
    %c0_5 = arith.constant 0 : index
    %5 = vector.load %arg4[%c0_4, %c0_5] : memref<128x128xbf16, #tpu.memory_space<vmem>>, vector<128x128xbf16>
    %cst = arith.constant dense<0.000000e+00> : vector<64x128xf32>
    %6 = tpu.matmul %4, %5, %cst {dimension_numbers = #tpu.dot_dimension_numbers<[1], [0], [0], [1], [0, 0, 1, 1], [], []>} : vector<64x128xbf16>, vector<128x128xbf16>, vector<64x128xf32> -> vector<64x128xf32>
    %7 = arith.addf %3, %6 : vector<64x128xf32>
    %c0_6 = arith.constant 0 : index
    %c0_7 = arith.constant 0 : index
    %8 = vector.load %arg7[%c0_6, %c0_7] : memref<64x128xf32, #tpu.memory_space<vmem>>, vector<64x128xf32>
    tpu.vector_store %arg7[%c0_6, %c0_7], %7 {strides = array<i32>} : memref<64x128xf32, #tpu.memory_space<vmem>>, vector<64x128xf32>,
    %c0_i32_8 = arith.constant 0 : i32
    %9 = arith.cmpi eq, %arg2, %c0_i32_8 : i32
    %10 = arith.extui %9 : i1 to i32
    %c0_i32_9 = arith.constant 0 : i32
    %11 = arith.cmpi ne, %10, %c0_i32_9 : i32
    scf.if %11 {
      %c0_10 = arith.constant 0 : index
      %c0_11 = arith.constant 0 : index
      %12 = vector.load %arg7[%c0_10, %c0_11] : memref<64x128xf32, #tpu.memory_space<vmem>>, vector<64x128xf32>
      %c0_12 = arith.constant 0 : index
      %c0_13 = arith.constant 0 : index
      %13 = vector.load %arg5[%c0_12, %c0_13] : memref<1x128xf32, #tpu.memory_space<vmem>>, vector<1x128xf32>
      %14 = vector.broadcast %13 : vector<1x128xf32> to vector<64x128xf32>
      %15 = arith.addf %12, %14 : vector<64x128xf32>
      %cst_14 = arith.constant 0.000000e+00 : f32
      %16 = vector.broadcast %cst_14 : f32 to vector<64x128xf32>
      %17 = arith.maximumf %15, %16 : vector<64x128xf32>
      %18 = arith.truncf %17 : vector<64x128xf32> to vector<64x128xbf16>
      %c0_15 = arith.constant 0 : index
      %c0_16 = arith.constant 0 : index
      %19 = vector.load %arg6[%c0_15, %c0_16] : memref<64x128xbf16, #tpu.memory_space<vmem>>, vector<64x128xbf16>
      tpu.vector_store %arg6[%c0_15, %c0_16], %18 {strides = array<i32>} : memref<64x128xbf16, #tpu.memory_space<vmem>>, vector<64x128xbf16>,
    } else {
    }
    return
  }
  func.func @transform_0(%arg0: i32, %arg1: i32, %arg2: i32) -> (i32, i32) {
    %c0_i32 = arith.constant 0 : i32
    return %arg0, %arg2 : i32, i32
  }
  func.func @transform_1(%arg0: i32, %arg1: i32, %arg2: i32) -> (i32, i32) {
    %c0_i32 = arith.constant 0 : i32
    return %arg2, %arg1 : i32, i32
  }
  func.func @transform_2(%arg0: i32, %arg1: i32, %arg2: i32) -> (i32, i32) {
    %c0_i32 = arith.constant 0 : i32
    %c0_i32_0 = arith.constant 0 : i32
    return %c0_i32, %arg1 : i32, i32
  }
  func.func @transform_3(%arg0: i32, %arg1: i32, %arg2: i32) -> (i32, i32) {
    %c0_i32 = arith.constant 0 : i32
    return %arg0, %arg1 : i32, i32
  }
}

module attributes {stable_mosaic.version = 11 : i64} {
  func.func @_mm_kernel(%arg0: i32, %arg1: i32, %arg2: i32, %arg3: memref<16x128xbf16, #tpu.memory_space<vmem>>, %arg4: memref<128x128xbf16, #tpu.memory_space<vmem>>, %arg5: memref<1x128xf32, #tpu.memory_space<vmem>>, %arg6: memref<16x128xbf16, #tpu.memory_space<vmem>>, %arg7: memref<16x128xf32, #tpu.memory_space<vmem>>) attributes {dimension_semantics = [#tpu.dimension_semantics<parallel>, #tpu.dimension_semantics<parallel>, #tpu.dimension_semantics<arbitrary>], iteration_bounds = array<i64: 2, 1, 1>, scalar_prefetch = 0 : i64, scratch_operands = 1 : i64, tpu.core_type = #tpu.core_type<tc>, window_params = [{transform_indices = @transform_0, window_bounds = array<i64: 16, 128>}, {transform_indices = @transform_1, window_bounds = array<i64: 128, 128>}, {transform_indices = @transform_2, window_bounds = array<i64: 1, 128>}, {transform_indices = @transform_3, window_bounds = array<i64: 16, 128>}]} {
    %c0_i32 = arith.constant 0 : i32
    %0 = arith.cmpi eq, %arg2, %c0_i32 : i32
    %1 = arith.extui %0 : i1 to i32
    %c0_i32_0 = arith.constant 0 : i32
    %2 = arith.cmpi ne, %1, %c0_i32_0 : i32
    scf.if %2 {
      %cst_10 = arith.constant 0.000000e+00 : f32
      %12 = vector.broadcast %cst_10 : f32 to vector<16x128xf32>
      %c0_11 = arith.constant 0 : index
      %c0_12 = arith.constant 0 : index
      %13 = vector.load %arg7[%c0_11, %c0_12] : memref<16x128xf32, #tpu.memory_space<vmem>>, vector<16x128xf32>
      tpu.vector_store %arg7[%c0_11, %c0_12], %12 {strides = array<i32>} : memref<16x128xf32, #tpu.memory_space<vmem>>, vector<16x128xf32>,
    } else {
    }
    %c0 = arith.constant 0 : index
    %c0_1 = arith.constant 0 : index
    %3 = vector.load %arg7[%c0, %c0_1] : memref<16x128xf32, #tpu.memory_space<vmem>>, vector<16x128xf32>
    %c0_2 = arith.constant 0 : index
    %c0_3 = arith.constant 0 : index
    %4 = vector.load %arg3[%c0_2, %c0_3] : memref<16x128xbf16, #tpu.memory_space<vmem>>, vector<16x128xbf16>
    %c0_4 = arith.constant 0 : index
    %c0_5 = arith.constant 0 : index
    %5 = vector.load %arg4[%c0_4, %c0_5] : memref<128x128xbf16, #tpu.memory_space<vmem>>, vector<128x128xbf16>
    %cst = arith.constant dense<0.000000e+00> : vector<16x128xf32>
    %6 = tpu.matmul %4, %5, %cst {dimension_numbers = #tpu.dot_dimension_numbers<[1], [0], [0], [1], [0, 0, 1, 1], [], []>} : vector<16x128xbf16>, vector<128x128xbf16>, vector<16x128xf32> -> vector<16x128xf32>
    %7 = arith.addf %3, %6 : vector<16x128xf32>
    %c0_6 = arith.constant 0 : index
    %c0_7 = arith.constant 0 : index
    %8 = vector.load %arg7[%c0_6, %c0_7] : memref<16x128xf32, #tpu.memory_space<vmem>>, vector<16x128xf32>
    tpu.vector_store %arg7[%c0_6, %c0_7], %7 {strides = array<i32>} : memref<16x128xf32, #tpu.memory_space<vmem>>, vector<16x128xf32>,
    %c0_i32_8 = arith.constant 0 : i32
    %9 = arith.cmpi eq, %arg2, %c0_i32_8 : i32
    %10 = arith.extui %9 : i1 to i32
    %c0_i32_9 = arith.constant 0 : i32
    %11 = arith.cmpi ne, %10, %c0_i32_9 : i32
    scf.if %11 {
      %c0_10 = arith.constant 0 : index
      %c0_11 = arith.constant 0 : index
      %12 = vector.load %arg7[%c0_10, %c0_11] : memref<16x128xf32, #tpu.memory_space<vmem>>, vector<16x128xf32>
      %c0_12 = arith.constant 0 : index
      %c0_13 = arith.constant 0 : index
      %13 = vector.load %arg5[%c0_12, %c0_13] : memref<1x128xf32, #tpu.memory_space<vmem>>, vector<1x128xf32>
      %14 = vector.broadcast %13 : vector<1x128xf32> to vector<16x128xf32>
      %15 = arith.addf %12, %14 : vector<16x128xf32>
      %cst_14 = arith.constant 0.000000e+00 : f32
      %16 = vector.broadcast %cst_14 : f32 to vector<16x128xf32>
      %17 = arith.maximumf %15, %16 : vector<16x128xf32>
      %18 = arith.truncf %17 : vector<16x128xf32> to vector<16x128xbf16>
      %c0_15 = arith.constant 0 : index
      %c0_16 = arith.constant 0 : index
      %19 = vector.load %arg6[%c0_15, %c0_16] : memref<16x128xbf16, #tpu.memory_space<vmem>>, vector<16x128xbf16>
      tpu.vector_store %arg6[%c0_15, %c0_16], %18 {strides = array<i32>} : memref<16x128xbf16, #tpu.memory_space<vmem>>, vector<16x128xbf16>,
    } else {
    }
    return
  }
  func.func @transform_0(%arg0: i32, %arg1: i32, %arg2: i32) -> (i32, i32) {
    %c0_i32 = arith.constant 0 : i32
    return %arg0, %arg2 : i32, i32
  }
  func.func @transform_1(%arg0: i32, %arg1: i32, %arg2: i32) -> (i32, i32) {
    %c0_i32 = arith.constant 0 : i32
    return %arg2, %arg1 : i32, i32
  }
  func.func @transform_2(%arg0: i32, %arg1: i32, %arg2: i32) -> (i32, i32) {
    %c0_i32 = arith.constant 0 : i32
    %c0_i32_0 = arith.constant 0 : i32
    return %c0_i32, %arg1 : i32, i32
  }
  func.func @transform_3(%arg0: i32, %arg1: i32, %arg2: i32) -> (i32, i32) {
    %c0_i32 = arith.constant 0 : i32
    return %arg0, %arg1 : i32, i32
  }
}

module attributes {stable_mosaic.version = 11 : i64} {
  func.func @_mm_kernel(%arg0: i32, %arg1: i32, %arg2: i32, %arg3: memref<8x256xbf16, #tpu.memory_space<vmem>>, %arg4: memref<256x128xbf16, #tpu.memory_space<vmem>>, %arg5: memref<1x128xf32, #tpu.memory_space<vmem>>, %arg6: memref<8x128xbf16, #tpu.memory_space<vmem>>, %arg7: memref<8x128xf32, #tpu.memory_space<vmem>>) attributes {dimension_semantics = [#tpu.dimension_semantics<parallel>, #tpu.dimension_semantics<parallel>, #tpu.dimension_semantics<arbitrary>], iteration_bounds = array<i64: 1, 1, 1>, scalar_prefetch = 0 : i64, scratch_operands = 1 : i64, tpu.core_type = #tpu.core_type<tc>, window_params = [{transform_indices = @transform_0, window_bounds = array<i64: 8, 256>}, {transform_indices = @transform_1, window_bounds = array<i64: 256, 128>}, {transform_indices = @transform_2, window_bounds = array<i64: 1, 128>}, {transform_indices = @transform_3, window_bounds = array<i64: 8, 128>}]} {
    %c0_i32 = arith.constant 0 : i32
    %0 = arith.cmpi eq, %arg2, %c0_i32 : i32
    %1 = arith.extui %0 : i1 to i32
    %c0_i32_0 = arith.constant 0 : i32
    %2 = arith.cmpi ne, %1, %c0_i32_0 : i32
    scf.if %2 {
      %cst_10 = arith.constant 0.000000e+00 : f32
      %12 = vector.broadcast %cst_10 : f32 to vector<8x128xf32>
      %c0_11 = arith.constant 0 : index
      %c0_12 = arith.constant 0 : index
      %13 = vector.load %arg7[%c0_11, %c0_12] : memref<8x128xf32, #tpu.memory_space<vmem>>, vector<8x128xf32>
      tpu.vector_store %arg7[%c0_11, %c0_12], %12 {strides = array<i32>} : memref<8x128xf32, #tpu.memory_space<vmem>>, vector<8x128xf32>,
    } else {
    }
    %c0 = arith.constant 0 : index
    %c0_1 = arith.constant 0 : index
    %3 = vector.load %arg7[%c0, %c0_1] : memref<8x128xf32, #tpu.memory_space<vmem>>, vector<8x128xf32>
    %c0_2 = arith.constant 0 : index
    %c0_3 = arith.constant 0 : index
    %4 = vector.load %arg3[%c0_2, %c0_3] : memref<8x256xbf16, #tpu.memory_space<vmem>>, vector<8x256xbf16>
    %c0_4 = arith.constant 0 : index
    %c0_5 = arith.constant 0 : index
    %5 = vector.load %arg4[%c0_4, %c0_5] : memref<256x128xbf16, #tpu.memory_space<vmem>>, vector<256x128xbf16>
    %cst = arith.constant dense<0.000000e+00> : vector<8x128xf32>
    %6 = tpu.matmul %4, %5, %cst {dimension_numbers = #tpu.dot_dimension_numbers<[1], [0], [0], [1], [0, 0, 1, 1], [], []>} : vector<8x256xbf16>, vector<256x128xbf16>, vector<8x128xf32> -> vector<8x128xf32>
    %7 = arith.addf %3, %6 : vector<8x128xf32>
    %c0_6 = arith.constant 0 : index
    %c0_7 = arith.constant 0 : index
    %8 = vector.load %arg7[%c0_6, %c0_7] : memref<8x128xf32, #tpu.memory_space<vmem>>, vector<8x128xf32>
    tpu.vector_store %arg7[%c0_6, %c0_7], %7 {strides = array<i32>} : memref<8x128xf32, #tpu.memory_space<vmem>>, vector<8x128xf32>,
    %c0_i32_8 = arith.constant 0 : i32
    %9 = arith.cmpi eq, %arg2, %c0_i32_8 : i32
    %10 = arith.extui %9 : i1 to i32
    %c0_i32_9 = arith.constant 0 : i32
    %11 = arith.cmpi ne, %10, %c0_i32_9 : i32
    scf.if %11 {
      %c0_10 = arith.constant 0 : index
      %c0_11 = arith.constant 0 : index
      %12 = vector.load %arg7[%c0_10, %c0_11] : memref<8x128xf32, #tpu.memory_space<vmem>>, vector<8x128xf32>
      %c0_12 = arith.constant 0 : index
      %c0_13 = arith.constant 0 : index
      %13 = vector.load %arg5[%c0_12, %c0_13] : memref<1x128xf32, #tpu.memory_space<vmem>>, vector<1x128xf32>
      %14 = vector.broadcast %13 : vector<1x128xf32> to vector<8x128xf32>
      %15 = arith.addf %12, %14 : vector<8x128xf32>
      %cst_14 = arith.constant 0.000000e+00 : f32
      %16 = vector.broadcast %cst_14 : f32 to vector<8x128xf32>
      %17 = arith.maximumf %15, %16 : vector<8x128xf32>
      %18 = arith.truncf %17 : vector<8x128xf32> to vector<8x128xbf16>
      %c0_15 = arith.constant 0 : index
      %c0_16 = arith.constant 0 : index
      %19 = vector.load %arg6[%c0_15, %c0_16] : memref<8x128xbf16, #tpu.memory_space<vmem>>, vector<8x128xbf16>
      tpu.vector_store %arg6[%c0_15, %c0_16], %18 {strides = array<i32>} : memref<8x128xbf16, #tpu.memory_space<vmem>>, vector<8x128xbf16>,
    } else {
    }
    return
  }
  func.func @transform_0(%arg0: i32, %arg1: i32, %arg2: i32) -> (i32, i32) {
    %c0_i32 = arith.constant 0 : i32
    return %arg0, %arg2 : i32, i32
  }
  func.func @transform_1(%arg0: i32, %arg1: i32, %arg2: i32) -> (i32, i32) {
    %c0_i32 = arith.constant 0 : i32
    return %arg2, %arg1 : i32, i32
  }
  func.func @transform_2(%arg0: i32, %arg1: i32, %arg2: i32) -> (i32, i32) {
    %c0_i32 = arith.constant 0 : i32
    %c0_i32_0 = arith.constant 0 : i32
    return %c0_i32, %arg1 : i32, i32
  }
  func.func @transform_3(%arg0: i32, %arg1: i32, %arg2: i32) -> (i32, i32) {
    %c0_i32 = arith.constant 0 : i32
    return %arg0, %arg1 : i32, i32
  }
}

module attributes {stable_mosaic.version = 11 : i64} {
  func.func @_mm_kernel(%arg0: i32, %arg1: i32, %arg2: i32, %arg3: memref<8x512xbf16, #tpu.memory_space<vmem>>, %arg4: memref<512x128xbf16, #tpu.memory_space<vmem>>, %arg5: memref<1x128xf32, #tpu.memory_space<vmem>>, %arg6: memref<8x128xbf16, #tpu.memory_space<vmem>>, %arg7: memref<8x128xf32, #tpu.memory_space<vmem>>) attributes {dimension_semantics = [#tpu.dimension_semantics<parallel>, #tpu.dimension_semantics<parallel>, #tpu.dimension_semantics<arbitrary>], iteration_bounds = array<i64: 1, 1, 1>, scalar_prefetch = 0 : i64, scratch_operands = 1 : i64, tpu.core_type = #tpu.core_type<tc>, window_params = [{transform_indices = @transform_0, window_bounds = array<i64: 8, 512>}, {transform_indices = @transform_1, window_bounds = array<i64: 512, 128>}, {transform_indices = @transform_2, window_bounds = array<i64: 1, 128>}, {transform_indices = @transform_3, window_bounds = array<i64: 8, 128>}]} {
    %c0_i32 = arith.constant 0 : i32
    %0 = arith.cmpi eq, %arg2, %c0_i32 : i32
    %1 = arith.extui %0 : i1 to i32
    %c0_i32_0 = arith.constant 0 : i32
    %2 = arith.cmpi ne, %1, %c0_i32_0 : i32
    scf.if %2 {
      %cst_10 = arith.constant 0.000000e+00 : f32
      %12 = vector.broadcast %cst_10 : f32 to vector<8x128xf32>
      %c0_11 = arith.constant 0 : index
      %c0_12 = arith.constant 0 : index
      %13 = vector.load %arg7[%c0_11, %c0_12] : memref<8x128xf32, #tpu.memory_space<vmem>>, vector<8x128xf32>
      tpu.vector_store %arg7[%c0_11, %c0_12], %12 {strides = array<i32>} : memref<8x128xf32, #tpu.memory_space<vmem>>, vector<8x128xf32>,
    } else {
    }
    %c0 = arith.constant 0 : index
    %c0_1 = arith.constant 0 : index
    %3 = vector.load %arg7[%c0, %c0_1] : memref<8x128xf32, #tpu.memory_space<vmem>>, vector<8x128xf32>
    %c0_2 = arith.constant 0 : index
    %c0_3 = arith.constant 0 : index
    %4 = vector.load %arg3[%c0_2, %c0_3] : memref<8x512xbf16, #tpu.memory_space<vmem>>, vector<8x512xbf16>
    %c0_4 = arith.constant 0 : index
    %c0_5 = arith.constant 0 : index
    %5 = vector.load %arg4[%c0_4, %c0_5] : memref<512x128xbf16, #tpu.memory_space<vmem>>, vector<512x128xbf16>
    %cst = arith.constant dense<0.000000e+00> : vector<8x128xf32>
    %6 = tpu.matmul %4, %5, %cst {dimension_numbers = #tpu.dot_dimension_numbers<[1], [0], [0], [1], [0, 0, 1, 1], [], []>} : vector<8x512xbf16>, vector<512x128xbf16>, vector<8x128xf32> -> vector<8x128xf32>
    %7 = arith.addf %3, %6 : vector<8x128xf32>
    %c0_6 = arith.constant 0 : index
    %c0_7 = arith.constant 0 : index
    %8 = vector.load %arg7[%c0_6, %c0_7] : memref<8x128xf32, #tpu.memory_space<vmem>>, vector<8x128xf32>
    tpu.vector_store %arg7[%c0_6, %c0_7], %7 {strides = array<i32>} : memref<8x128xf32, #tpu.memory_space<vmem>>, vector<8x128xf32>,
    %c0_i32_8 = arith.constant 0 : i32
    %9 = arith.cmpi eq, %arg2, %c0_i32_8 : i32
    %10 = arith.extui %9 : i1 to i32
    %c0_i32_9 = arith.constant 0 : i32
    %11 = arith.cmpi ne, %10, %c0_i32_9 : i32
    scf.if %11 {
      %c0_10 = arith.constant 0 : index
      %c0_11 = arith.constant 0 : index
      %12 = vector.load %arg7[%c0_10, %c0_11] : memref<8x128xf32, #tpu.memory_space<vmem>>, vector<8x128xf32>
      %c0_12 = arith.constant 0 : index
      %c0_13 = arith.constant 0 : index
      %13 = vector.load %arg5[%c0_12, %c0_13] : memref<1x128xf32, #tpu.memory_space<vmem>>, vector<1x128xf32>
      %14 = vector.broadcast %13 : vector<1x128xf32> to vector<8x128xf32>
      %15 = arith.addf %12, %14 : vector<8x128xf32>
      %cst_14 = arith.constant 0.000000e+00 : f32
      %16 = vector.broadcast %cst_14 : f32 to vector<8x128xf32>
      %17 = arith.maximumf %15, %16 : vector<8x128xf32>
      %18 = arith.truncf %17 : vector<8x128xf32> to vector<8x128xbf16>
      %c0_15 = arith.constant 0 : index
      %c0_16 = arith.constant 0 : index
      %19 = vector.load %arg6[%c0_15, %c0_16] : memref<8x128xbf16, #tpu.memory_space<vmem>>, vector<8x128xbf16>
      tpu.vector_store %arg6[%c0_15, %c0_16], %18 {strides = array<i32>} : memref<8x128xbf16, #tpu.memory_space<vmem>>, vector<8x128xbf16>,
    } else {
    }
    return
  }
  func.func @transform_0(%arg0: i32, %arg1: i32, %arg2: i32) -> (i32, i32) {
    %c0_i32 = arith.constant 0 : i32
    return %arg0, %arg2 : i32, i32
  }
  func.func @transform_1(%arg0: i32, %arg1: i32, %arg2: i32) -> (i32, i32) {
    %c0_i32 = arith.constant 0 : i32
    return %arg2, %arg1 : i32, i32
  }
  func.func @transform_2(%arg0: i32, %arg1: i32, %arg2: i32) -> (i32, i32) {
    %c0_i32 = arith.constant 0 : i32
    %c0_i32_0 = arith.constant 0 : i32
    return %c0_i32, %arg1 : i32, i32
  }
  func.func @transform_3(%arg0: i32, %arg1: i32, %arg2: i32) -> (i32, i32) {
    %c0_i32 = arith.constant 0 : i32
    return %arg0, %arg1 : i32, i32
  }
}

module attributes {stable_mosaic.version = 11 : i64} {
  func.func @_mm_kernel(%arg0: i32, %arg1: i32, %arg2: i32, %arg3: memref<8x640xbf16, #tpu.memory_space<vmem>>, %arg4: memref<640x128xbf16, #tpu.memory_space<vmem>>, %arg5: memref<1x128xf32, #tpu.memory_space<vmem>>, %arg6: memref<8x128xbf16, #tpu.memory_space<vmem>>, %arg7: memref<8x128xbf16, #tpu.memory_space<vmem>>, %arg8: memref<8x128xf32, #tpu.memory_space<vmem>>) attributes {dimension_semantics = [#tpu.dimension_semantics<parallel>, #tpu.dimension_semantics<parallel>, #tpu.dimension_semantics<arbitrary>], iteration_bounds = array<i64: 1, 1, 1>, scalar_prefetch = 0 : i64, scratch_operands = 1 : i64, tpu.core_type = #tpu.core_type<tc>, window_params = [{transform_indices = @transform_0, window_bounds = array<i64: 8, 640>}, {transform_indices = @transform_1, window_bounds = array<i64: 640, 128>}, {transform_indices = @transform_2, window_bounds = array<i64: 1, 128>}, {transform_indices = @transform_3, window_bounds = array<i64: 8, 128>}, {transform_indices = @transform_4, window_bounds = array<i64: 8, 128>}]} {
    %c0_i32 = arith.constant 0 : i32
    %0 = arith.cmpi eq, %arg2, %c0_i32 : i32
    %1 = arith.extui %0 : i1 to i32
    %c0_i32_0 = arith.constant 0 : i32
    %2 = arith.cmpi ne, %1, %c0_i32_0 : i32
    scf.if %2 {
      %cst_10 = arith.constant 0.000000e+00 : f32
      %12 = vector.broadcast %cst_10 : f32 to vector<8x128xf32>
      %c0_11 = arith.constant 0 : index
      %c0_12 = arith.constant 0 : index
      %13 = vector.load %arg8[%c0_11, %c0_12] : memref<8x128xf32, #tpu.memory_space<vmem>>, vector<8x128xf32>
      tpu.vector_store %arg8[%c0_11, %c0_12], %12 {strides = array<i32>} : memref<8x128xf32, #tpu.memory_space<vmem>>, vector<8x128xf32>,
    } else {
    }
    %c0 = arith.constant 0 : index
    %c0_1 = arith.constant 0 : index
    %3 = vector.load %arg8[%c0, %c0_1] : memref<8x128xf32, #tpu.memory_space<vmem>>, vector<8x128xf32>
    %c0_2 = arith.constant 0 : index
    %c0_3 = arith.constant 0 : index
    %4 = vector.load %arg3[%c0_2, %c0_3] : memref<8x640xbf16, #tpu.memory_space<vmem>>, vector<8x640xbf16>
    %c0_4 = arith.constant 0 : index
    %c0_5 = arith.constant 0 : index
    %5 = vector.load %arg4[%c0_4, %c0_5] : memref<640x128xbf16, #tpu.memory_space<vmem>>, vector<640x128xbf16>
    %cst = arith.constant dense<0.000000e+00> : vector<8x128xf32>
    %6 = tpu.matmul %4, %5, %cst {dimension_numbers = #tpu.dot_dimension_numbers<[1], [0], [0], [1], [0, 0, 1, 1], [], []>} : vector<8x640xbf16>, vector<640x128xbf16>, vector<8x128xf32> -> vector<8x128xf32>
    %7 = arith.addf %3, %6 : vector<8x128xf32>
    %c0_6 = arith.constant 0 : index
    %c0_7 = arith.constant 0 : index
    %8 = vector.load %arg8[%c0_6, %c0_7] : memref<8x128xf32, #tpu.memory_space<vmem>>, vector<8x128xf32>
    tpu.vector_store %arg8[%c0_6, %c0_7], %7 {strides = array<i32>} : memref<8x128xf32, #tpu.memory_space<vmem>>, vector<8x128xf32>,
    %c0_i32_8 = arith.constant 0 : i32
    %9 = arith.cmpi eq, %arg2, %c0_i32_8 : i32
    %10 = arith.extui %9 : i1 to i32
    %c0_i32_9 = arith.constant 0 : i32
    %11 = arith.cmpi ne, %10, %c0_i32_9 : i32
    scf.if %11 {
      %c0_10 = arith.constant 0 : index
      %c0_11 = arith.constant 0 : index
      %12 = vector.load %arg8[%c0_10, %c0_11] : memref<8x128xf32, #tpu.memory_space<vmem>>, vector<8x128xf32>
      %c0_12 = arith.constant 0 : index
      %c0_13 = arith.constant 0 : index
      %13 = vector.load %arg5[%c0_12, %c0_13] : memref<1x128xf32, #tpu.memory_space<vmem>>, vector<1x128xf32>
      %14 = vector.broadcast %13 : vector<1x128xf32> to vector<8x128xf32>
      %15 = arith.addf %12, %14 : vector<8x128xf32>
      %c0_14 = arith.constant 0 : index
      %c0_15 = arith.constant 0 : index
      %16 = vector.load %arg6[%c0_14, %c0_15] : memref<8x128xbf16, #tpu.memory_space<vmem>>, vector<8x128xbf16>
      %17 = arith.extf %16 : vector<8x128xbf16> to vector<8x128xf32>
      %18 = arith.addf %15, %17 : vector<8x128xf32>
      %cst_16 = arith.constant 0.000000e+00 : f32
      %19 = vector.broadcast %cst_16 : f32 to vector<8x128xf32>
      %20 = arith.maximumf %18, %19 : vector<8x128xf32>
      %21 = arith.truncf %20 : vector<8x128xf32> to vector<8x128xbf16>
      %c0_17 = arith.constant 0 : index
      %c0_18 = arith.constant 0 : index
      %22 = vector.load %arg7[%c0_17, %c0_18] : memref<8x128xbf16, #tpu.memory_space<vmem>>, vector<8x128xbf16>
      tpu.vector_store %arg7[%c0_17, %c0_18], %21 {strides = array<i32>} : memref<8x128xbf16, #tpu.memory_space<vmem>>, vector<8x128xbf16>,
    } else {
    }
    return
  }
  func.func @transform_0(%arg0: i32, %arg1: i32, %arg2: i32) -> (i32, i32) {
    %c0_i32 = arith.constant 0 : i32
    return %arg0, %arg2 : i32, i32
  }
  func.func @transform_1(%arg0: i32, %arg1: i32, %arg2: i32) -> (i32, i32) {
    %c0_i32 = arith.constant 0 : i32
    return %arg2, %arg1 : i32, i32
  }
  func.func @transform_2(%arg0: i32, %arg1: i32, %arg2: i32) -> (i32, i32) {
    %c0_i32 = arith.constant 0 : i32
    %c0_i32_0 = arith.constant 0 : i32
    return %c0_i32, %arg1 : i32, i32
  }
  func.func @transform_3(%arg0: i32, %arg1: i32, %arg2: i32) -> (i32, i32) {
    %c0_i32 = arith.constant 0 : i32
    return %arg0, %arg1 : i32, i32
  }
  func.func @transform_4(%arg0: i32, %arg1: i32, %arg2: i32) -> (i32, i32) {
    %c0_i32 = arith.constant 0 : i32
    return %arg0, %arg1 : i32, i32
  }
}

module attributes {stable_mosaic.version = 11 : i64} {
  func.func @_mm_kernel(%arg0: i32, %arg1: i32, %arg2: i32, %arg3: memref<8x384xbf16, #tpu.memory_space<vmem>>, %arg4: memref<384x128xbf16, #tpu.memory_space<vmem>>, %arg5: memref<1x128xf32, #tpu.memory_space<vmem>>, %arg6: memref<8x128xbf16, #tpu.memory_space<vmem>>, %arg7: memref<8x128xbf16, #tpu.memory_space<vmem>>, %arg8: memref<8x128xf32, #tpu.memory_space<vmem>>) attributes {dimension_semantics = [#tpu.dimension_semantics<parallel>, #tpu.dimension_semantics<parallel>, #tpu.dimension_semantics<arbitrary>], iteration_bounds = array<i64: 1, 1, 1>, scalar_prefetch = 0 : i64, scratch_operands = 1 : i64, tpu.core_type = #tpu.core_type<tc>, window_params = [{transform_indices = @transform_0, window_bounds = array<i64: 8, 384>}, {transform_indices = @transform_1, window_bounds = array<i64: 384, 128>}, {transform_indices = @transform_2, window_bounds = array<i64: 1, 128>}, {transform_indices = @transform_3, window_bounds = array<i64: 8, 128>}, {transform_indices = @transform_4, window_bounds = array<i64: 8, 128>}]} {
    %c0_i32 = arith.constant 0 : i32
    %0 = arith.cmpi eq, %arg2, %c0_i32 : i32
    %1 = arith.extui %0 : i1 to i32
    %c0_i32_0 = arith.constant 0 : i32
    %2 = arith.cmpi ne, %1, %c0_i32_0 : i32
    scf.if %2 {
      %cst_10 = arith.constant 0.000000e+00 : f32
      %12 = vector.broadcast %cst_10 : f32 to vector<8x128xf32>
      %c0_11 = arith.constant 0 : index
      %c0_12 = arith.constant 0 : index
      %13 = vector.load %arg8[%c0_11, %c0_12] : memref<8x128xf32, #tpu.memory_space<vmem>>, vector<8x128xf32>
      tpu.vector_store %arg8[%c0_11, %c0_12], %12 {strides = array<i32>} : memref<8x128xf32, #tpu.memory_space<vmem>>, vector<8x128xf32>,
    } else {
    }
    %c0 = arith.constant 0 : index
    %c0_1 = arith.constant 0 : index
    %3 = vector.load %arg8[%c0, %c0_1] : memref<8x128xf32, #tpu.memory_space<vmem>>, vector<8x128xf32>
    %c0_2 = arith.constant 0 : index
    %c0_3 = arith.constant 0 : index
    %4 = vector.load %arg3[%c0_2, %c0_3] : memref<8x384xbf16, #tpu.memory_space<vmem>>, vector<8x384xbf16>
    %c0_4 = arith.constant 0 : index
    %c0_5 = arith.constant 0 : index
    %5 = vector.load %arg4[%c0_4, %c0_5] : memref<384x128xbf16, #tpu.memory_space<vmem>>, vector<384x128xbf16>
    %cst = arith.constant dense<0.000000e+00> : vector<8x128xf32>
    %6 = tpu.matmul %4, %5, %cst {dimension_numbers = #tpu.dot_dimension_numbers<[1], [0], [0], [1], [0, 0, 1, 1], [], []>} : vector<8x384xbf16>, vector<384x128xbf16>, vector<8x128xf32> -> vector<8x128xf32>
    %7 = arith.addf %3, %6 : vector<8x128xf32>
    %c0_6 = arith.constant 0 : index
    %c0_7 = arith.constant 0 : index
    %8 = vector.load %arg8[%c0_6, %c0_7] : memref<8x128xf32, #tpu.memory_space<vmem>>, vector<8x128xf32>
    tpu.vector_store %arg8[%c0_6, %c0_7], %7 {strides = array<i32>} : memref<8x128xf32, #tpu.memory_space<vmem>>, vector<8x128xf32>,
    %c0_i32_8 = arith.constant 0 : i32
    %9 = arith.cmpi eq, %arg2, %c0_i32_8 : i32
    %10 = arith.extui %9 : i1 to i32
    %c0_i32_9 = arith.constant 0 : i32
    %11 = arith.cmpi ne, %10, %c0_i32_9 : i32
    scf.if %11 {
      %c0_10 = arith.constant 0 : index
      %c0_11 = arith.constant 0 : index
      %12 = vector.load %arg8[%c0_10, %c0_11] : memref<8x128xf32, #tpu.memory_space<vmem>>, vector<8x128xf32>
      %c0_12 = arith.constant 0 : index
      %c0_13 = arith.constant 0 : index
      %13 = vector.load %arg5[%c0_12, %c0_13] : memref<1x128xf32, #tpu.memory_space<vmem>>, vector<1x128xf32>
      %14 = vector.broadcast %13 : vector<1x128xf32> to vector<8x128xf32>
      %15 = arith.addf %12, %14 : vector<8x128xf32>
      %c0_14 = arith.constant 0 : index
      %c0_15 = arith.constant 0 : index
      %16 = vector.load %arg6[%c0_14, %c0_15] : memref<8x128xbf16, #tpu.memory_space<vmem>>, vector<8x128xbf16>
      %17 = arith.extf %16 : vector<8x128xbf16> to vector<8x128xf32>
      %18 = arith.addf %15, %17 : vector<8x128xf32>
      %cst_16 = arith.constant 0.000000e+00 : f32
      %19 = vector.broadcast %cst_16 : f32 to vector<8x128xf32>
      %20 = arith.maximumf %18, %19 : vector<8x128xf32>
      %21 = arith.truncf %20 : vector<8x128xf32> to vector<8x128xbf16>
      %c0_17 = arith.constant 0 : index
      %c0_18 = arith.constant 0 : index
      %22 = vector.load %arg7[%c0_17, %c0_18] : memref<8x128xbf16, #tpu.memory_space<vmem>>, vector<8x128xbf16>
      tpu.vector_store %arg7[%c0_17, %c0_18], %21 {strides = array<i32>} : memref<8x128xbf16, #tpu.memory_space<vmem>>, vector<8x128xbf16>,
    } else {
    }
    return
  }
  func.func @transform_0(%arg0: i32, %arg1: i32, %arg2: i32) -> (i32, i32) {
    %c0_i32 = arith.constant 0 : i32
    return %arg0, %arg2 : i32, i32
  }
  func.func @transform_1(%arg0: i32, %arg1: i32, %arg2: i32) -> (i32, i32) {
    %c0_i32 = arith.constant 0 : i32
    return %arg2, %arg1 : i32, i32
  }
  func.func @transform_2(%arg0: i32, %arg1: i32, %arg2: i32) -> (i32, i32) {
    %c0_i32 = arith.constant 0 : i32
    %c0_i32_0 = arith.constant 0 : i32
    return %c0_i32, %arg1 : i32, i32
  }
  func.func @transform_3(%arg0: i32, %arg1: i32, %arg2: i32) -> (i32, i32) {
    %c0_i32 = arith.constant 0 : i32
    return %arg0, %arg1 : i32, i32
  }
  func.func @transform_4(%arg0: i32, %arg1: i32, %arg2: i32) -> (i32, i32) {
    %c0_i32 = arith.constant 0 : i32
    return %arg0, %arg1 : i32, i32
  }
}

module attributes {stable_mosaic.version = 11 : i64} {
  func.func @_mm_kernel(%arg0: i32, %arg1: i32, %arg2: i32, %arg3: memref<16x256xbf16, #tpu.memory_space<vmem>>, %arg4: memref<256x128xbf16, #tpu.memory_space<vmem>>, %arg5: memref<1x128xf32, #tpu.memory_space<vmem>>, %arg6: memref<16x128xbf16, #tpu.memory_space<vmem>>, %arg7: memref<16x128xbf16, #tpu.memory_space<vmem>>, %arg8: memref<16x128xf32, #tpu.memory_space<vmem>>) attributes {dimension_semantics = [#tpu.dimension_semantics<parallel>, #tpu.dimension_semantics<parallel>, #tpu.dimension_semantics<arbitrary>], iteration_bounds = array<i64: 2, 1, 1>, scalar_prefetch = 0 : i64, scratch_operands = 1 : i64, tpu.core_type = #tpu.core_type<tc>, window_params = [{transform_indices = @transform_0, window_bounds = array<i64: 16, 256>}, {transform_indices = @transform_1, window_bounds = array<i64: 256, 128>}, {transform_indices = @transform_2, window_bounds = array<i64: 1, 128>}, {transform_indices = @transform_3, window_bounds = array<i64: 16, 128>}, {transform_indices = @transform_4, window_bounds = array<i64: 16, 128>}]} {
    %c0_i32 = arith.constant 0 : i32
    %0 = arith.cmpi eq, %arg2, %c0_i32 : i32
    %1 = arith.extui %0 : i1 to i32
    %c0_i32_0 = arith.constant 0 : i32
    %2 = arith.cmpi ne, %1, %c0_i32_0 : i32
    scf.if %2 {
      %cst_10 = arith.constant 0.000000e+00 : f32
      %12 = vector.broadcast %cst_10 : f32 to vector<16x128xf32>
      %c0_11 = arith.constant 0 : index
      %c0_12 = arith.constant 0 : index
      %13 = vector.load %arg8[%c0_11, %c0_12] : memref<16x128xf32, #tpu.memory_space<vmem>>, vector<16x128xf32>
      tpu.vector_store %arg8[%c0_11, %c0_12], %12 {strides = array<i32>} : memref<16x128xf32, #tpu.memory_space<vmem>>, vector<16x128xf32>,
    } else {
    }
    %c0 = arith.constant 0 : index
    %c0_1 = arith.constant 0 : index
    %3 = vector.load %arg8[%c0, %c0_1] : memref<16x128xf32, #tpu.memory_space<vmem>>, vector<16x128xf32>
    %c0_2 = arith.constant 0 : index
    %c0_3 = arith.constant 0 : index
    %4 = vector.load %arg3[%c0_2, %c0_3] : memref<16x256xbf16, #tpu.memory_space<vmem>>, vector<16x256xbf16>
    %c0_4 = arith.constant 0 : index
    %c0_5 = arith.constant 0 : index
    %5 = vector.load %arg4[%c0_4, %c0_5] : memref<256x128xbf16, #tpu.memory_space<vmem>>, vector<256x128xbf16>
    %cst = arith.constant dense<0.000000e+00> : vector<16x128xf32>
    %6 = tpu.matmul %4, %5, %cst {dimension_numbers = #tpu.dot_dimension_numbers<[1], [0], [0], [1], [0, 0, 1, 1], [], []>} : vector<16x256xbf16>, vector<256x128xbf16>, vector<16x128xf32> -> vector<16x128xf32>
    %7 = arith.addf %3, %6 : vector<16x128xf32>
    %c0_6 = arith.constant 0 : index
    %c0_7 = arith.constant 0 : index
    %8 = vector.load %arg8[%c0_6, %c0_7] : memref<16x128xf32, #tpu.memory_space<vmem>>, vector<16x128xf32>
    tpu.vector_store %arg8[%c0_6, %c0_7], %7 {strides = array<i32>} : memref<16x128xf32, #tpu.memory_space<vmem>>, vector<16x128xf32>,
    %c0_i32_8 = arith.constant 0 : i32
    %9 = arith.cmpi eq, %arg2, %c0_i32_8 : i32
    %10 = arith.extui %9 : i1 to i32
    %c0_i32_9 = arith.constant 0 : i32
    %11 = arith.cmpi ne, %10, %c0_i32_9 : i32
    scf.if %11 {
      %c0_10 = arith.constant 0 : index
      %c0_11 = arith.constant 0 : index
      %12 = vector.load %arg8[%c0_10, %c0_11] : memref<16x128xf32, #tpu.memory_space<vmem>>, vector<16x128xf32>
      %c0_12 = arith.constant 0 : index
      %c0_13 = arith.constant 0 : index
      %13 = vector.load %arg5[%c0_12, %c0_13] : memref<1x128xf32, #tpu.memory_space<vmem>>, vector<1x128xf32>
      %14 = vector.broadcast %13 : vector<1x128xf32> to vector<16x128xf32>
      %15 = arith.addf %12, %14 : vector<16x128xf32>
      %c0_14 = arith.constant 0 : index
      %c0_15 = arith.constant 0 : index
      %16 = vector.load %arg6[%c0_14, %c0_15] : memref<16x128xbf16, #tpu.memory_space<vmem>>, vector<16x128xbf16>
      %17 = arith.extf %16 : vector<16x128xbf16> to vector<16x128xf32>
      %18 = arith.addf %15, %17 : vector<16x128xf32>
      %cst_16 = arith.constant 0.000000e+00 : f32
      %19 = vector.broadcast %cst_16 : f32 to vector<16x128xf32>
      %20 = arith.maximumf %18, %19 : vector<16x128xf32>
      %21 = arith.truncf %20 : vector<16x128xf32> to vector<16x128xbf16>
      %c0_17 = arith.constant 0 : index
      %c0_18 = arith.constant 0 : index
      %22 = vector.load %arg7[%c0_17, %c0_18] : memref<16x128xbf16, #tpu.memory_space<vmem>>, vector<16x128xbf16>
      tpu.vector_store %arg7[%c0_17, %c0_18], %21 {strides = array<i32>} : memref<16x128xbf16, #tpu.memory_space<vmem>>, vector<16x128xbf16>,
    } else {
    }
    return
  }
  func.func @transform_0(%arg0: i32, %arg1: i32, %arg2: i32) -> (i32, i32) {
    %c0_i32 = arith.constant 0 : i32
    return %arg0, %arg2 : i32, i32
  }
  func.func @transform_1(%arg0: i32, %arg1: i32, %arg2: i32) -> (i32, i32) {
    %c0_i32 = arith.constant 0 : i32
    return %arg2, %arg1 : i32, i32
  }
  func.func @transform_2(%arg0: i32, %arg1: i32, %arg2: i32) -> (i32, i32) {
    %c0_i32 = arith.constant 0 : i32
    %c0_i32_0 = arith.constant 0 : i32
    return %c0_i32, %arg1 : i32, i32
  }
  func.func @transform_3(%arg0: i32, %arg1: i32, %arg2: i32) -> (i32, i32) {
    %c0_i32 = arith.constant 0 : i32
    return %arg0, %arg1 : i32, i32
  }
  func.func @transform_4(%arg0: i32, %arg1: i32, %arg2: i32) -> (i32, i32) {
    %c0_i32 = arith.constant 0 : i32
    return %arg0, %arg1 : i32, i32
  }
}

module attributes {stable_mosaic.version = 11 : i64} {
  func.func @_mm_kernel(%arg0: i32, %arg1: i32, %arg2: i32, %arg3: memref<64x128xbf16, #tpu.memory_space<vmem>>, %arg4: memref<128x128xbf16, #tpu.memory_space<vmem>>, %arg5: memref<1x128xf32, #tpu.memory_space<vmem>>, %arg6: memref<64x128xbf16, #tpu.memory_space<vmem>>, %arg7: memref<64x128xbf16, #tpu.memory_space<vmem>>, %arg8: memref<64x128xf32, #tpu.memory_space<vmem>>) attributes {dimension_semantics = [#tpu.dimension_semantics<parallel>, #tpu.dimension_semantics<parallel>, #tpu.dimension_semantics<arbitrary>], iteration_bounds = array<i64: 2, 1, 1>, scalar_prefetch = 0 : i64, scratch_operands = 1 : i64, tpu.core_type = #tpu.core_type<tc>, window_params = [{transform_indices = @transform_0, window_bounds = array<i64: 64, 128>}, {transform_indices = @transform_1, window_bounds = array<i64: 128, 128>}, {transform_indices = @transform_2, window_bounds = array<i64: 1, 128>}, {transform_indices = @transform_3, window_bounds = array<i64: 64, 128>}, {transform_indices = @transform_4, window_bounds = array<i64: 64, 128>}]} {
    %c0_i32 = arith.constant 0 : i32
    %0 = arith.cmpi eq, %arg2, %c0_i32 : i32
    %1 = arith.extui %0 : i1 to i32
    %c0_i32_0 = arith.constant 0 : i32
    %2 = arith.cmpi ne, %1, %c0_i32_0 : i32
    scf.if %2 {
      %cst_10 = arith.constant 0.000000e+00 : f32
      %12 = vector.broadcast %cst_10 : f32 to vector<64x128xf32>
      %c0_11 = arith.constant 0 : index
      %c0_12 = arith.constant 0 : index
      %13 = vector.load %arg8[%c0_11, %c0_12] : memref<64x128xf32, #tpu.memory_space<vmem>>, vector<64x128xf32>
      tpu.vector_store %arg8[%c0_11, %c0_12], %12 {strides = array<i32>} : memref<64x128xf32, #tpu.memory_space<vmem>>, vector<64x128xf32>,
    } else {
    }
    %c0 = arith.constant 0 : index
    %c0_1 = arith.constant 0 : index
    %3 = vector.load %arg8[%c0, %c0_1] : memref<64x128xf32, #tpu.memory_space<vmem>>, vector<64x128xf32>
    %c0_2 = arith.constant 0 : index
    %c0_3 = arith.constant 0 : index
    %4 = vector.load %arg3[%c0_2, %c0_3] : memref<64x128xbf16, #tpu.memory_space<vmem>>, vector<64x128xbf16>
    %c0_4 = arith.constant 0 : index
    %c0_5 = arith.constant 0 : index
    %5 = vector.load %arg4[%c0_4, %c0_5] : memref<128x128xbf16, #tpu.memory_space<vmem>>, vector<128x128xbf16>
    %cst = arith.constant dense<0.000000e+00> : vector<64x128xf32>
    %6 = tpu.matmul %4, %5, %cst {dimension_numbers = #tpu.dot_dimension_numbers<[1], [0], [0], [1], [0, 0, 1, 1], [], []>} : vector<64x128xbf16>, vector<128x128xbf16>, vector<64x128xf32> -> vector<64x128xf32>
    %7 = arith.addf %3, %6 : vector<64x128xf32>
    %c0_6 = arith.constant 0 : index
    %c0_7 = arith.constant 0 : index
    %8 = vector.load %arg8[%c0_6, %c0_7] : memref<64x128xf32, #tpu.memory_space<vmem>>, vector<64x128xf32>
    tpu.vector_store %arg8[%c0_6, %c0_7], %7 {strides = array<i32>} : memref<64x128xf32, #tpu.memory_space<vmem>>, vector<64x128xf32>,
    %c0_i32_8 = arith.constant 0 : i32
    %9 = arith.cmpi eq, %arg2, %c0_i32_8 : i32
    %10 = arith.extui %9 : i1 to i32
    %c0_i32_9 = arith.constant 0 : i32
    %11 = arith.cmpi ne, %10, %c0_i32_9 : i32
    scf.if %11 {
      %c0_10 = arith.constant 0 : index
      %c0_11 = arith.constant 0 : index
      %12 = vector.load %arg8[%c0_10, %c0_11] : memref<64x128xf32, #tpu.memory_space<vmem>>, vector<64x128xf32>
      %c0_12 = arith.constant 0 : index
      %c0_13 = arith.constant 0 : index
      %13 = vector.load %arg5[%c0_12, %c0_13] : memref<1x128xf32, #tpu.memory_space<vmem>>, vector<1x128xf32>
      %14 = vector.broadcast %13 : vector<1x128xf32> to vector<64x128xf32>
      %15 = arith.addf %12, %14 : vector<64x128xf32>
      %c0_14 = arith.constant 0 : index
      %c0_15 = arith.constant 0 : index
      %16 = vector.load %arg6[%c0_14, %c0_15] : memref<64x128xbf16, #tpu.memory_space<vmem>>, vector<64x128xbf16>
      %17 = arith.extf %16 : vector<64x128xbf16> to vector<64x128xf32>
      %18 = arith.addf %15, %17 : vector<64x128xf32>
      %cst_16 = arith.constant 0.000000e+00 : f32
      %19 = vector.broadcast %cst_16 : f32 to vector<64x128xf32>
      %20 = arith.maximumf %18, %19 : vector<64x128xf32>
      %21 = arith.truncf %20 : vector<64x128xf32> to vector<64x128xbf16>
      %c0_17 = arith.constant 0 : index
      %c0_18 = arith.constant 0 : index
      %22 = vector.load %arg7[%c0_17, %c0_18] : memref<64x128xbf16, #tpu.memory_space<vmem>>, vector<64x128xbf16>
      tpu.vector_store %arg7[%c0_17, %c0_18], %21 {strides = array<i32>} : memref<64x128xbf16, #tpu.memory_space<vmem>>, vector<64x128xbf16>,
    } else {
    }
    return
  }
  func.func @transform_0(%arg0: i32, %arg1: i32, %arg2: i32) -> (i32, i32) {
    %c0_i32 = arith.constant 0 : i32
    return %arg0, %arg2 : i32, i32
  }
  func.func @transform_1(%arg0: i32, %arg1: i32, %arg2: i32) -> (i32, i32) {
    %c0_i32 = arith.constant 0 : i32
    return %arg2, %arg1 : i32, i32
  }
  func.func @transform_2(%arg0: i32, %arg1: i32, %arg2: i32) -> (i32, i32) {
    %c0_i32 = arith.constant 0 : i32
    %c0_i32_0 = arith.constant 0 : i32
    return %c0_i32, %arg1 : i32, i32
  }
  func.func @transform_3(%arg0: i32, %arg1: i32, %arg2: i32) -> (i32, i32) {
    %c0_i32 = arith.constant 0 : i32
    return %arg0, %arg1 : i32, i32
  }
  func.func @transform_4(%arg0: i32, %arg1: i32, %arg2: i32) -> (i32, i32) {
    %c0_i32 = arith.constant 0 : i32
    return %arg0, %arg1 : i32, i32
  }
}

module attributes {stable_mosaic.version = 11 : i64} {
  func.func @_mm_kernel(%arg0: i32, %arg1: i32, %arg2: i32, %arg3: memref<256x128xbf16, #tpu.memory_space<vmem>>, %arg4: memref<128x128xbf16, #tpu.memory_space<vmem>>, %arg5: memref<1x128xf32, #tpu.memory_space<vmem>>, %arg6: memref<256x128xf32, #tpu.memory_space<vmem>>, %arg7: memref<256x128xf32, #tpu.memory_space<vmem>>) attributes {dimension_semantics = [#tpu.dimension_semantics<parallel>, #tpu.dimension_semantics<parallel>, #tpu.dimension_semantics<arbitrary>], iteration_bounds = array<i64: 2, 1, 1>, scalar_prefetch = 0 : i64, scratch_operands = 1 : i64, tpu.core_type = #tpu.core_type<tc>, window_params = [{transform_indices = @transform_0, window_bounds = array<i64: 256, 128>}, {transform_indices = @transform_1, window_bounds = array<i64: 128, 128>}, {transform_indices = @transform_2, window_bounds = array<i64: 1, 128>}, {transform_indices = @transform_3, window_bounds = array<i64: 256, 128>}]} {
    %c0_i32 = arith.constant 0 : i32
    %0 = arith.cmpi eq, %arg2, %c0_i32 : i32
    %1 = arith.extui %0 : i1 to i32
    %c0_i32_0 = arith.constant 0 : i32
    %2 = arith.cmpi ne, %1, %c0_i32_0 : i32
    scf.if %2 {
      %cst_10 = arith.constant 0.000000e+00 : f32
      %12 = vector.broadcast %cst_10 : f32 to vector<256x128xf32>
      %c0_11 = arith.constant 0 : index
      %c0_12 = arith.constant 0 : index
      %13 = vector.load %arg7[%c0_11, %c0_12] : memref<256x128xf32, #tpu.memory_space<vmem>>, vector<256x128xf32>
      tpu.vector_store %arg7[%c0_11, %c0_12], %12 {strides = array<i32>} : memref<256x128xf32, #tpu.memory_space<vmem>>, vector<256x128xf32>,
    } else {
    }
    %c0 = arith.constant 0 : index
    %c0_1 = arith.constant 0 : index
    %3 = vector.load %arg7[%c0, %c0_1] : memref<256x128xf32, #tpu.memory_space<vmem>>, vector<256x128xf32>
    %c0_2 = arith.constant 0 : index
    %c0_3 = arith.constant 0 : index
    %4 = vector.load %arg3[%c0_2, %c0_3] : memref<256x128xbf16, #tpu.memory_space<vmem>>, vector<256x128xbf16>
    %c0_4 = arith.constant 0 : index
    %c0_5 = arith.constant 0 : index
    %5 = vector.load %arg4[%c0_4, %c0_5] : memref<128x128xbf16, #tpu.memory_space<vmem>>, vector<128x128xbf16>
    %cst = arith.constant dense<0.000000e+00> : vector<256x128xf32>
    %6 = tpu.matmul %4, %5, %cst {dimension_numbers = #tpu.dot_dimension_numbers<[1], [0], [0], [1], [0, 0, 1, 1], [], []>} : vector<256x128xbf16>, vector<128x128xbf16>, vector<256x128xf32> -> vector<256x128xf32>
    %7 = arith.addf %3, %6 : vector<256x128xf32>
    %c0_6 = arith.constant 0 : index
    %c0_7 = arith.constant 0 : index
    %8 = vector.load %arg7[%c0_6, %c0_7] : memref<256x128xf32, #tpu.memory_space<vmem>>, vector<256x128xf32>
    tpu.vector_store %arg7[%c0_6, %c0_7], %7 {strides = array<i32>} : memref<256x128xf32, #tpu.memory_space<vmem>>, vector<256x128xf32>,
    %c0_i32_8 = arith.constant 0 : i32
    %9 = arith.cmpi eq, %arg2, %c0_i32_8 : i32
    %10 = arith.extui %9 : i1 to i32
    %c0_i32_9 = arith.constant 0 : i32
    %11 = arith.cmpi ne, %10, %c0_i32_9 : i32
    scf.if %11 {
      %c0_10 = arith.constant 0 : index
      %c0_11 = arith.constant 0 : index
      %12 = vector.load %arg7[%c0_10, %c0_11] : memref<256x128xf32, #tpu.memory_space<vmem>>, vector<256x128xf32>
      %c0_12 = arith.constant 0 : index
      %c0_13 = arith.constant 0 : index
      %13 = vector.load %arg5[%c0_12, %c0_13] : memref<1x128xf32, #tpu.memory_space<vmem>>, vector<1x128xf32>
      %14 = vector.broadcast %13 : vector<1x128xf32> to vector<256x128xf32>
      %15 = arith.addf %12, %14 : vector<256x128xf32>
      %16 = math.tanh %15 : vector<256x128xf32>
      %c0_14 = arith.constant 0 : index
      %c0_15 = arith.constant 0 : index
      %17 = vector.load %arg6[%c0_14, %c0_15] : memref<256x128xf32, #tpu.memory_space<vmem>>, vector<256x128xf32>
      tpu.vector_store %arg6[%c0_14, %c0_15], %16 {strides = array<i32>} : memref<256x128xf32, #tpu.memory_space<vmem>>, vector<256x128xf32>,
    } else {
    }
    return
  }
  func.func @transform_0(%arg0: i32, %arg1: i32, %arg2: i32) -> (i32, i32) {
    %c0_i32 = arith.constant 0 : i32
    return %arg0, %arg2 : i32, i32
  }
  func.func @transform_1(%arg0: i32, %arg1: i32, %arg2: i32) -> (i32, i32) {
    %c0_i32 = arith.constant 0 : i32
    return %arg2, %arg1 : i32, i32
  }
  func.func @transform_2(%arg0: i32, %arg1: i32, %arg2: i32) -> (i32, i32) {
    %c0_i32 = arith.constant 0 : i32
    %c0_i32_0 = arith.constant 0 : i32
    return %c0_i32, %arg1 : i32, i32
  }
  func.func @transform_3(%arg0: i32, %arg1: i32, %arg2: i32) -> (i32, i32) {
    %c0_i32 = arith.constant 0 : i32
    return %arg0, %arg1 : i32, i32
  }
}

</mosaic_0001>

<bundles_post_ra>
// kernel: unet_forward.10
= control target key start
LH: loop header
LB: loop body
LE: loop exit
PB: predicated region body
PF: predicated region fallthrough
CT: control target
= control target key end

     0   :  { %s1271_s12 = smov 0   ;;  %s1273_s13 = smov 0   ;;  %s1411_s0 = inlined_call_operand.vmem [shape: bf16[512,128], index: 0, kind: input, shape index: {}]   ;;  %s1412_s1 = inlined_call_operand.vmem [shape: bf16[128,128], index: 1, kind: input, shape index: {}]   ;;  %s1413_s2 = inlined_call_operand.vmem [shape: f32[1,128], index: 2, kind: input, shape index: {}]   ;;  %s1414_s3 = inlined_call_operand.vmem [shape: bf16[512,128], index: 3, kind: output, shape index: {}]  }
   0x1   :  { %s1275_s14 = smov 0  }
   0x2 LB: > { %s32_s15 = sadd.s32 1, %s1245_s13  ;;  %p956_p0 = scmp.ge.s32.totalorder %s1249_s14, 1  ;;  %s1249_s14 = sphi %s1275_s14, %s13_s14   ;;  %s1245_s13 = sphi %s1273_s13, %s1416_s13   ;;  %s1241_s12 = sphi %s1271_s12, %s1415_s12  }
   0x3   : > { %p34_p1 = scmp.ge.s32.totalorder %s32_s15, 2  ;;  %p188_p2 = scmp.lt.s32.totalorder %s1249_s14, 3 }
   0x5   : > { %s1418_s15 = smov (%p34_p1, %s32_s15), 0  ;;  %p189_p3 = pnand %p956_p0, %p188_p2 }
   0x6   : > { %s957_s24 = sshll.u32 (!%p189_p3), %s1241_s12, 5 }
   0x7   : > { %192 = sbr.rel (%p189_p3) target bundleno = 241 (0xf1), region = 32  ;;  %p230_p4 = scmp.lt.s32.totalorder (!%p189_p3), %s957_s24, 63 }
   0xc   : > { %v1082_v0 = vld [vmem:[%s1412_s1 + $0x38] sm:$0xff]  ;;  %v1081_v1 = vld [vmem:[%s1412_s1 + $0x30] sm:$0xff]  ;;  %v1080_v2 = vld [vmem:[%s1412_s1 + $0x28] sm:$0xff]  ;;  %s1420_s24 = smov (!%p230_p4, %s957_s24), 63 }
   0xd   : > { %519 = vmatpush.bf16.msra.mxu0 %v1082_v0  ;;  %1178 = vmatpush.bf16.msra.mxu1 %v1082_v0  ;;  %v1079_v3 = vld [vmem:[%s1412_s1 + $0x20] sm:$0xff]  ;;  %v1078_v4 = vld [vmem:[%s1412_s1 + $0x18] sm:$0xff]  ;;  %v1077_v5 = vld [vmem:[%s1412_s1 + $0x10] sm:$0xff]  ;;  %s958_s4 = sshll.u32 %s1420_s24, 2 }
   0xe   : > { %1179 = vmatpush.bf16.msra.mxu2 %v1082_v0  ;;  %1180 = vmatpush.bf16.msra.mxu3 %v1082_v0  ;;  %v1076_v6 = vld [vmem:[%s1412_s1 + $0x8] sm:$0xff]  ;;  %v1075_v7 = vld [vmem:[%s1412_s1] sm:$0xff]  ;;  %s1324_s9 = scalar_lea.vmem %s1411_s0, %s958_s4  ;;  %s1356_s17 = scalar_lea.vmem %s1414_s3, %s958_s4 }
   0xf   : > { %v1059_v8 = vld [vmem:[%s1324_s9] sm:$0xff]  ;;  %v1060_v12 = vld [vmem:[%s1324_s9 + $0x8] sm:$0xff]  ;;  %v1061_v16 = vld [vmem:[%s1324_s9 + $0x10] sm:$0xff] }
  0x10   : > { %v1063_v9 = vld [vmem:[%s1324_s9 + $0x20] sm:$0xff]  ;;  %v1064_v13 = vld [vmem:[%s1324_s9 + $0x28] sm:$0xff]  ;;  %v1065_v17 = vld [vmem:[%s1324_s9 + $0x30] sm:$0xff] }
  0x11   : > { %520 = vmatpush.bf16.msra.mxu0 %v1081_v1  ;;  %1181 = vmatpush.bf16.msra.mxu1 %v1081_v1  ;;  %v1067_v10 = vld [vmem:[%s1324_s9 + $0x40] sm:$0xff]  ;;  %v1068_v14 = vld [vmem:[%s1324_s9 + $0x48] sm:$0xff]  ;;  %v1069_v18 = vld [vmem:[%s1324_s9 + $0x50] sm:$0xff] }
  0x12   : > { %1182 = vmatpush.bf16.msra.mxu2 %v1081_v1  ;;  %1183 = vmatpush.bf16.msra.mxu3 %v1081_v1  ;;  %v1071_v11 = vld [vmem:[%s1324_s9 + $0x60] sm:$0xff]  ;;  %v1072_v15 = vld [vmem:[%s1324_s9 + $0x68] sm:$0xff]  ;;  %v1073_v19 = vld [vmem:[%s1324_s9 + $0x70] sm:$0xff] }
  0x13   : > { %v1062_v20 = vld [vmem:[%s1324_s9 + $0x18] sm:$0xff]  ;;  %v1345_v26 = vld [vmem:[%s1413_s2] ss:$0 sm:$0xff] }
  0x14   : > { %v1066_v21 = vld [vmem:[%s1324_s9 + $0x38] sm:$0xff] }
  0x15   : > { %521 = vmatpush.bf16.msra.mxu0 %v1080_v2  ;;  %1184 = vmatpush.bf16.msra.mxu1 %v1080_v2  ;;  %v1070_v22 = vld [vmem:[%s1324_s9 + $0x58] sm:$0xff] }
  0x16   : > { %1185 = vmatpush.bf16.msra.mxu2 %v1080_v2  ;;  %1186 = vmatpush.bf16.msra.mxu3 %v1080_v2  ;;  %v1074_v23 = vld [vmem:[%s1324_s9 + $0x78] sm:$0xff] }
  0x19   : > { %522 = vmatpush.bf16.msra.mxu0 %v1079_v3  ;;  %1187 = vmatpush.bf16.msra.mxu1 %v1079_v3 }
  0x1a   : > { %1188 = vmatpush.bf16.msra.mxu2 %v1079_v3  ;;  %1189 = vmatpush.bf16.msra.mxu3 %v1079_v3 }
  0x1d   : > { %523 = vmatpush.bf16.msra.mxu0 %v1078_v4  ;;  %1190 = vmatpush.bf16.msra.mxu1 %v1078_v4 }
  0x1e   : > { %1191 = vmatpush.bf16.msra.mxu2 %v1078_v4  ;;  %1192 = vmatpush.bf16.msra.mxu3 %v1078_v4 }
  0x21   : > { %524 = vmatpush.bf16.msra.mxu0 %v1077_v5  ;;  %1193 = vmatpush.bf16.msra.mxu1 %v1077_v5 }
  0x22   : > { %1194 = vmatpush.bf16.msra.mxu2 %v1077_v5  ;;  %1195 = vmatpush.bf16.msra.mxu3 %v1077_v5 }
  0x25   : > { %525 = vmatpush.bf16.msra.mxu0 %v1076_v6  ;;  %1196 = vmatpush.bf16.msra.mxu1 %v1076_v6 }
  0x26   : > { %1197 = vmatpush.bf16.msra.mxu2 %v1076_v6  ;;  %1198 = vmatpush.bf16.msra.mxu3 %v1076_v6 }
  0x29   : > { %526 = vmatpush.bf16.msra.mxu0 %v1075_v7  ;;  %1199 = vmatpush.bf16.msra.mxu1 %v1075_v7 }
  0x2a   : > { %1200 = vmatpush.bf16.msra.mxu2 %v1075_v7  ;;  %1201 = vmatpush.bf16.msra.mxu3 %v1075_v7 }
  0x2c   : > { %527 = vmatmul.bf16.vlgmr.msra.gmra.mxu0 %v1059_v8  ;;  %547 = vmatmul.bf16.vlgmr.msra.gmra.mxu1 %v1063_v9 }
  0x2d   : > { %567 = vmatmul.bf16.vlgmr.msra.gmra.mxu2 %v1067_v10  ;;  %587 = vmatmul.bf16.vlgmr.msra.gmra.mxu3 %v1071_v11 }
  0x3c   : > { %532 = vmatmul.bf16.gmra.mxu0 %v1060_v12  ;;  %552 = vmatmul.bf16.gmra.mxu1 %v1064_v13 }
  0x3d   : > { %572 = vmatmul.bf16.gmra.mxu2 %v1068_v14  ;;  %592 = vmatmul.bf16.gmra.mxu3 %v1072_v15 }
  0x4c   : > { %537 = vmatmul.bf16.gmra.mxu0 %v1061_v16  ;;  %557 = vmatmul.bf16.gmra.mxu1 %v1065_v17 }
  0x4d   : > { %577 = vmatmul.bf16.gmra.mxu2 %v1069_v18  ;;  %597 = vmatmul.bf16.gmra.mxu3 %v1073_v19 }
  0x5c   : > { %542 = vmatmul.bf16.gmra.mxu0 %v1062_v20  ;;  %562 = vmatmul.bf16.gmra.mxu1 %v1066_v21 }
  0x5d   : > { %582 = vmatmul.bf16.gmra.mxu2 %v1070_v22  ;;  %602 = vmatmul.bf16.gmra.mxu3 %v1074_v23 }
  0xa9   : > { %v528_v24 = vpop.f32.mrf.mxu0  ;;  %v548_v25 = vpop.f32.mrf.mxu1 }
  0xaa   : > { %v711_v27 = vadd.f32 %v1345_v26, %v528_v24  ;;  %v719_v28 = vadd.f32 %v1345_v26, %v548_v25 }
  0xac   : > { %v743_v35 = vmax.f32 %v711_v27, 0.0  ;;  %v751_v36 = vmax.f32 %v719_v28, 0.0 }
  0xb0   : > { %v568_v29 = vpop.f32.mrf.mxu2  ;;  %v588_v30 = vpop.f32.mrf.mxu3 }
  0xb1   : > { %v530_v31 = vpop.f32.mrf.mxu0  ;;  %v550_v32 = vpop.f32.mrf.mxu1  ;;  %v727_v41 = vadd.f32 %v1345_v26, %v568_v29  ;;  %v735_v42 = vadd.f32 %v1345_v26, %v588_v30 }
  0xb2   : > { %v712_v33 = vadd.f32 %v1345_v26, %v530_v31  ;;  %v720_v34 = vadd.f32 %v1345_v26, %v550_v32 }
  0xb3   : > { %v759_v49 = vmax.f32 %v727_v41, 0.0  ;;  %v767_v50 = vmax.f32 %v735_v42, 0.0 }
  0xb4   : > { %v744_v37 = vmax.f32 %v712_v33, 0.0  ;;  %v752_v38 = vmax.f32 %v720_v34, 0.0 }
  0xb6   : > { %v1086_v39 = vpack.c.bf16 %v744_v37, %v743_v35  ;;  %v1106_v40 = vpack.c.bf16 %v752_v38, %v751_v36 }
  0xb8   : > { %1087 = vst [vmem:[%s1356_s17] sm:$0xff] %v1086_v39   ;;  %v570_v43 = vpop.f32.mrf.mxu2  ;;  %v590_v44 = vpop.f32.mrf.mxu3 }
  0xb9   : > { %1166 = vst [vmem:[%s1356_s17 + $0x20] sm:$0xff] %v1106_v40   ;;  %v728_v45 = vadd.f32 %v1345_v26, %v570_v43  ;;  %v736_v46 = vadd.f32 %v1345_v26, %v590_v44  ;;  %v533_v47 = vpop.f32.mrf.mxu0  ;;  %v553_v48 = vpop.f32.mrf.mxu1 }
  0xba   : > { %v713_v55 = vadd.f32 %v1345_v26, %v533_v47  ;;  %v721_v56 = vadd.f32 %v1345_v26, %v553_v48 }
  0xbb   : > { %v760_v51 = vmax.f32 %v728_v45, 0.0  ;;  %v768_v52 = vmax.f32 %v736_v46, 0.0 }
  0xbc   : > { %v745_v63 = vmax.f32 %v713_v55, 0.0  ;;  %v753_v0 = vmax.f32 %v721_v56, 0.0 }
  0xbd   : > { %v1126_v53 = vpack.c.bf16 %v760_v51, %v759_v49  ;;  %v1146_v54 = vpack.c.bf16 %v768_v52, %v767_v50 }
  0xbf   : > { %1170 = vst [vmem:[%s1356_s17 + $0x40] sm:$0xff] %v1126_v53  }
  0xc0   : > { %1174 = vst [vmem:[%s1356_s17 + $0x60] sm:$0xff] %v1146_v54   ;;  %v573_v57 = vpop.f32.mrf.mxu2  ;;  %v593_v58 = vpop.f32.mrf.mxu3 }
  0xc1   : > { %v535_v59 = vpop.f32.mrf.mxu0  ;;  %v555_v60 = vpop.f32.mrf.mxu1  ;;  %v729_v5 = vadd.f32 %v1345_v26, %v573_v57  ;;  %v737_v6 = vadd.f32 %v1345_v26, %v593_v58 }
  0xc2   : > { %v714_v61 = vadd.f32 %v1345_v26, %v535_v59  ;;  %v722_v62 = vadd.f32 %v1345_v26, %v555_v60 }
  0xc3   : > { %v761_v13 = vmax.f32 %v729_v5, 0.0  ;;  %v769_v14 = vmax.f32 %v737_v6, 0.0 }
  0xc4   : > { %v746_v1 = vmax.f32 %v714_v61, 0.0  ;;  %v754_v2 = vmax.f32 %v722_v62, 0.0 }
  0xc6   : > { %v1091_v3 = vpack.c.bf16 %v746_v1, %v745_v63  ;;  %v1111_v4 = vpack.c.bf16 %v754_v2, %v753_v0 }
  0xc8   : > { %1163 = vst [vmem:[%s1356_s17 + $0x8] sm:$0xff] %v1091_v3   ;;  %v575_v7 = vpop.f32.mrf.mxu2  ;;  %v595_v8 = vpop.f32.mrf.mxu3 }
  0xc9   : > { %1167 = vst [vmem:[%s1356_s17 + $0x28] sm:$0xff] %v1111_v4   ;;  %v730_v9 = vadd.f32 %v1345_v26, %v575_v7  ;;  %v738_v10 = vadd.f32 %v1345_v26, %v595_v8  ;;  %v538_v11 = vpop.f32.mrf.mxu0  ;;  %v558_v12 = vpop.f32.mrf.mxu1 }
  0xca   : > { %v715_v19 = vadd.f32 %v1345_v26, %v538_v11  ;;  %v723_v20 = vadd.f32 %v1345_v26, %v558_v12 }
  0xcb   : > { %v762_v15 = vmax.f32 %v730_v9, 0.0  ;;  %v770_v16 = vmax.f32 %v738_v10, 0.0 }
  0xcc   : > { %v747_v28 = vmax.f32 %v715_v19, 0.0  ;;  %v755_v29 = vmax.f32 %v723_v20, 0.0 }
  0xcd   : > { %v1131_v17 = vpack.c.bf16 %v762_v15, %v761_v13  ;;  %v1151_v18 = vpack.c.bf16 %v770_v16, %v769_v14 }
  0xcf   : > { %1171 = vst [vmem:[%s1356_s17 + $0x48] sm:$0xff] %v1131_v17  }
  0xd0   : > { %1175 = vst [vmem:[%s1356_s17 + $0x68] sm:$0xff] %v1151_v18   ;;  %v578_v21 = vpop.f32.mrf.mxu2  ;;  %v598_v22 = vpop.f32.mrf.mxu3 }
  0xd1   : > { %v540_v23 = vpop.f32.mrf.mxu0  ;;  %v560_v24 = vpop.f32.mrf.mxu1  ;;  %v731_v34 = vadd.f32 %v1345_v26, %v578_v21  ;;  %v739_v35 = vadd.f32 %v1345_v26, %v598_v22 }
  0xd2   : > { %v716_v25 = vadd.f32 %v1345_v26, %v540_v23  ;;  %v724_v27 = vadd.f32 %v1345_v26, %v560_v24 }
  0xd3   : > { %v763_v42 = vmax.f32 %v731_v34, 0.0  ;;  %v771_v43 = vmax.f32 %v739_v35, 0.0 }
  0xd4   : > { %v748_v30 = vmax.f32 %v716_v25, 0.0  ;;  %v756_v31 = vmax.f32 %v724_v27, 0.0 }
  0xd6   : > { %v1096_v32 = vpack.c.bf16 %v748_v30, %v747_v28  ;;  %v1116_v33 = vpack.c.bf16 %v756_v31, %v755_v29 }
  0xd8   : > { %1164 = vst [vmem:[%s1356_s17 + $0x10] sm:$0xff] %v1096_v32   ;;  %v580_v36 = vpop.f32.mrf.mxu2  ;;  %v600_v37 = vpop.f32.mrf.mxu3 }
  0xd9   : > { %1168 = vst [vmem:[%s1356_s17 + $0x30] sm:$0xff] %v1116_v33   ;;  %v732_v38 = vadd.f32 %v1345_v26, %v580_v36  ;;  %v740_v39 = vadd.f32 %v1345_v26, %v600_v37  ;;  %v543_v40 = vpop.f32.mrf.mxu0  ;;  %v563_v41 = vpop.f32.mrf.mxu1 }
  0xda   : > { %v717_v48 = vadd.f32 %v1345_v26, %v543_v40  ;;  %v725_v49 = vadd.f32 %v1345_v26, %v563_v41 }
  0xdb   : > { %v764_v44 = vmax.f32 %v732_v38, 0.0  ;;  %v772_v45 = vmax.f32 %v740_v39, 0.0 }
  0xdc   : > { %v749_v56 = vmax.f32 %v717_v48, 0.0  ;;  %v757_v57 = vmax.f32 %v725_v49, 0.0 }
  0xdd   : > { %v1136_v46 = vpack.c.bf16 %v764_v44, %v763_v42  ;;  %v1156_v47 = vpack.c.bf16 %v772_v45, %v771_v43 }
  0xdf   : > { %1172 = vst [vmem:[%s1356_s17 + $0x50] sm:$0xff] %v1136_v46  }
  0xe0   : > { %1176 = vst [vmem:[%s1356_s17 + $0x70] sm:$0xff] %v1156_v47   ;;  %v583_v50 = vpop.f32.mrf.mxu2  ;;  %v603_v51 = vpop.f32.mrf.mxu3 }
  0xe1   : > { %v545_v52 = vpop.f32.mrf.mxu0  ;;  %v565_v53 = vpop.f32.mrf.mxu1  ;;  %v733_v62 = vadd.f32 %v1345_v26, %v583_v50  ;;  %v741_v63 = vadd.f32 %v1345_v26, %v603_v51 }
  0xe2   : > { %v718_v54 = vadd.f32 %v1345_v26, %v545_v52  ;;  %v726_v55 = vadd.f32 %v1345_v26, %v565_v53 }
  0xe3   : > { %v765_v4 = vmax.f32 %v733_v62, 0.0  ;;  %v773_v5 = vmax.f32 %v741_v63, 0.0 }
  0xe4   : > { %v750_v58 = vmax.f32 %v718_v54, 0.0  ;;  %v758_v59 = vmax.f32 %v726_v55, 0.0 }
  0xe6   : > { %v1101_v60 = vpack.c.bf16 %v750_v58, %v749_v56  ;;  %v1121_v61 = vpack.c.bf16 %v758_v59, %v757_v57 }
  0xe8   : > { %1165 = vst [vmem:[%s1356_s17 + $0x18] sm:$0xff] %v1101_v60   ;;  %v585_v0 = vpop.f32.mrf.mxu2  ;;  %v605_v1 = vpop.f32.mrf.mxu3 }
  0xe9   : > { %1169 = vst [vmem:[%s1356_s17 + $0x38] sm:$0xff] %v1121_v61   ;;  %v734_v2 = vadd.f32 %v1345_v26, %v585_v0  ;;  %v742_v3 = vadd.f32 %v1345_v26, %v605_v1 }
  0xeb   : > { %v766_v6 = vmax.f32 %v734_v2, 0.0  ;;  %v774_v7 = vmax.f32 %v742_v3, 0.0 }
  0xed   : > { %v1141_v8 = vpack.c.bf16 %v766_v6, %v765_v4  ;;  %v1161_v9 = vpack.c.bf16 %v774_v7, %v773_v5 }
  0xef   : > { %1173 = vst [vmem:[%s1356_s17 + $0x58] sm:$0xff] %v1141_v8  }
  0xf0   : > { %1177 = vst [vmem:[%s1356_s17 + $0x78] sm:$0xff] %v1161_v9  }
  0xf1 PF: > { %s13_s14 = sadd.s32 1, %s1249_s14   ;;  %s1415_s12 = smov %s1245_s13 }
  0xf2   : > { %p10_p5 = scmp.ge.s32.totalorder %s13_s14, 4   ;;  %s1416_s13 = smov %s1418_s15 }
  0xf4   :  { %12 = sbr.rel (!%p10_p5) target bundleno = 2 (0x2), region = 76 }

// kernel: unet_forward.11
= control target key start
LH: loop header
LB: loop body
LE: loop exit
PB: predicated region body
PF: predicated region fallthrough
CT: control target
= control target key end

     0   :  { %s767_s12 = smov 0   ;;  %s769_s13 = smov 0   ;;  %s837_s0 = inlined_call_operand.vmem [shape: bf16[128,128], index: 0, kind: input, shape index: {}]   ;;  %s838_s1 = inlined_call_operand.vmem [shape: bf16[128,128], index: 1, kind: input, shape index: {}]   ;;  %s839_s2 = inlined_call_operand.vmem [shape: f32[1,128], index: 2, kind: input, shape index: {}]   ;;  %s840_s3 = inlined_call_operand.vmem [shape: bf16[128,128], index: 3, kind: output, shape index: {}]  }
   0x1   :  { %s771_s14 = smov 0  }
   0x2 LB: > { %s32_s15 = sadd.s32 1, %s741_s13  ;;  %p584_p0 = scmp.ge.s32.totalorder %s745_s14, 1  ;;  %s745_s14 = sphi %s771_s14, %s13_s14   ;;  %s741_s13 = sphi %s769_s13, %s842_s13   ;;  %s737_s12 = sphi %s767_s12, %s841_s12  }
   0x3   : > { %p34_p1 = scmp.ge.s32.totalorder %s32_s15, 2  ;;  %p188_p2 = scmp.lt.s32.totalorder %s745_s14, 3 }
   0x5   : > { %s844_s15 = smov (%p34_p1, %s32_s15), 0  ;;  %p189_p3 = pnand %p584_p0, %p188_p2 }
   0x6   : > { %s585_s24 = sshll.u32 (!%p189_p3), %s737_s12, 3 }
   0x7   : > { %192 = sbr.rel (%p189_p3) target bundleno = 193 (0xc1), region = 32  ;;  %p230_p4 = scmp.lt.s32.totalorder (!%p189_p3), %s585_s24, 15 }
   0xc   : > { %v650_v0 = vld [vmem:[%s838_s1 + $0x38] sm:$0xff]  ;;  %v649_v1 = vld [vmem:[%s838_s1 + $0x30] sm:$0xff]  ;;  %v648_v2 = vld [vmem:[%s838_s1 + $0x28] sm:$0xff]  ;;  %s846_s24 = smov (!%p230_p4, %s585_s24), 15 }
   0xd   : > { %375 = vmatpush.bf16.msra.mxu0 %v650_v0  ;;  %674 = vmatpush.bf16.msra.mxu1 %v650_v0  ;;  %v647_v3 = vld [vmem:[%s838_s1 + $0x20] sm:$0xff]  ;;  %v646_v4 = vld [vmem:[%s838_s1 + $0x18] sm:$0xff]  ;;  %v645_v5 = vld [vmem:[%s838_s1 + $0x10] sm:$0xff]  ;;  %s586_s4 = sshll.u32 %s846_s24, 2 }
   0xe   : > { %675 = vmatpush.bf16.msra.mxu2 %v650_v0  ;;  %676 = vmatpush.bf16.msra.mxu3 %v650_v0  ;;  %v644_v6 = vld [vmem:[%s838_s1 + $0x8] sm:$0xff]  ;;  %v643_v7 = vld [vmem:[%s838_s1] sm:$0xff]  ;;  %s236_s9 = scalar_lea.vmem %s837_s0, %s586_s4  ;;  %s257_s17 = scalar_lea.vmem %s840_s3, %s586_s4 }
   0xf   : > { %v639_v8 = vld [vmem:[%s236_s9] sm:$0xff]  ;;  %v640_v9 = vld [vmem:[%s236_s9 + $0x8] sm:$0xff]  ;;  %v641_v10 = vld [vmem:[%s236_s9 + $0x10] sm:$0xff] }
  0x10   : > { %v642_v11 = vld [vmem:[%s236_s9 + $0x18] sm:$0xff]  ;;  %v722_v14 = vld [vmem:[%s839_s2] ss:$0 sm:$0xff] }
  0x11   : > { %376 = vmatpush.bf16.msra.mxu0 %v649_v1  ;;  %677 = vmatpush.bf16.msra.mxu1 %v649_v1 }
  0x12   : > { %678 = vmatpush.bf16.msra.mxu2 %v649_v1  ;;  %679 = vmatpush.bf16.msra.mxu3 %v649_v1 }
  0x15   : > { %377 = vmatpush.bf16.msra.mxu0 %v648_v2  ;;  %680 = vmatpush.bf16.msra.mxu1 %v648_v2 }
  0x16   : > { %681 = vmatpush.bf16.msra.mxu2 %v648_v2  ;;  %682 = vmatpush.bf16.msra.mxu3 %v648_v2 }
  0x19   : > { %378 = vmatpush.bf16.msra.mxu0 %v647_v3  ;;  %683 = vmatpush.bf16.msra.mxu1 %v647_v3 }
  0x1a   : > { %684 = vmatpush.bf16.msra.mxu2 %v647_v3  ;;  %685 = vmatpush.bf16.msra.mxu3 %v647_v3 }
  0x1d   : > { %379 = vmatpush.bf16.msra.mxu0 %v646_v4  ;;  %686 = vmatpush.bf16.msra.mxu1 %v646_v4 }
  0x1e   : > { %687 = vmatpush.bf16.msra.mxu2 %v646_v4  ;;  %688 = vmatpush.bf16.msra.mxu3 %v646_v4 }
  0x21   : > { %380 = vmatpush.bf16.msra.mxu0 %v645_v5  ;;  %689 = vmatpush.bf16.msra.mxu1 %v645_v5 }
  0x22   : > { %690 = vmatpush.bf16.msra.mxu2 %v645_v5  ;;  %691 = vmatpush.bf16.msra.mxu3 %v645_v5 }
  0x25   : > { %381 = vmatpush.bf16.msra.mxu0 %v644_v6  ;;  %692 = vmatpush.bf16.msra.mxu1 %v644_v6 }
  0x26   : > { %693 = vmatpush.bf16.msra.mxu2 %v644_v6  ;;  %694 = vmatpush.bf16.msra.mxu3 %v644_v6 }
  0x29   : > { %382 = vmatpush.bf16.msra.mxu0 %v643_v7  ;;  %695 = vmatpush.bf16.msra.mxu1 %v643_v7 }
  0x2a   : > { %696 = vmatpush.bf16.msra.mxu2 %v643_v7  ;;  %697 = vmatpush.bf16.msra.mxu3 %v643_v7 }
  0x2c   : > { %383 = vmatmul.bf16.vlgmr.msra.gmra.mxu0 %v639_v8  ;;  %388 = vmatmul.bf16.vlgmr.msra.gmra.mxu1 %v640_v9 }
  0x2d   : > { %393 = vmatmul.bf16.vlgmr.msra.gmra.mxu2 %v641_v10  ;;  %398 = vmatmul.bf16.vlgmr.msra.gmra.mxu3 %v642_v11 }
  0xa9   : > { %v384_v12 = vpop.f32.mrf.mxu0  ;;  %v389_v13 = vpop.f32.mrf.mxu1 }
  0xaa   : > { %v435_v15 = vadd.f32 %v722_v14, %v384_v12  ;;  %v437_v16 = vadd.f32 %v722_v14, %v389_v13 }
  0xac   : > { %v443_v23 = vmax.f32 %v435_v15, 0.0  ;;  %v445_v24 = vmax.f32 %v437_v16, 0.0 }
  0xb0   : > { %v394_v17 = vpop.f32.mrf.mxu2  ;;  %v399_v18 = vpop.f32.mrf.mxu3 }
  0xb1   : > { %v386_v19 = vpop.f32.mrf.mxu0  ;;  %v391_v20 = vpop.f32.mrf.mxu1  ;;  %v439_v29 = vadd.f32 %v722_v14, %v394_v17  ;;  %v441_v30 = vadd.f32 %v722_v14, %v399_v18 }
  0xb2   : > { %v436_v21 = vadd.f32 %v722_v14, %v386_v19  ;;  %v438_v22 = vadd.f32 %v722_v14, %v391_v20 }
  0xb3   : > { %v447_v35 = vmax.f32 %v439_v29, 0.0  ;;  %v449_v36 = vmax.f32 %v441_v30, 0.0 }
  0xb4   : > { %v444_v25 = vmax.f32 %v436_v21, 0.0  ;;  %v446_v26 = vmax.f32 %v438_v22, 0.0 }
  0xb6   : > { %v654_v27 = vpack.c.bf16 %v444_v25, %v443_v23  ;;  %v659_v28 = vpack.c.bf16 %v446_v26, %v445_v24 }
  0xb8   : > { %655 = vst [vmem:[%s257_s17] sm:$0xff] %v654_v27   ;;  %v396_v31 = vpop.f32.mrf.mxu2  ;;  %v401_v32 = vpop.f32.mrf.mxu3 }
  0xb9   : > { %671 = vst [vmem:[%s257_s17 + $0x8] sm:$0xff] %v659_v28   ;;  %v440_v33 = vadd.f32 %v722_v14, %v396_v31  ;;  %v442_v34 = vadd.f32 %v722_v14, %v401_v32 }
  0xbb   : > { %v448_v37 = vmax.f32 %v440_v33, 0.0  ;;  %v450_v38 = vmax.f32 %v442_v34, 0.0 }
  0xbd   : > { %v664_v39 = vpack.c.bf16 %v448_v37, %v447_v35  ;;  %v669_v40 = vpack.c.bf16 %v450_v38, %v449_v36 }
  0xbf   : > { %672 = vst [vmem:[%s257_s17 + $0x10] sm:$0xff] %v664_v39  }
  0xc0   : > { %673 = vst [vmem:[%s257_s17 + $0x18] sm:$0xff] %v669_v40  }
  0xc1 PF: > { %s13_s14 = sadd.s32 1, %s745_s14   ;;  %s841_s12 = smov %s741_s13 }
  0xc2   : > { %p10_p5 = scmp.ge.s32.totalorder %s13_s14, 4   ;;  %s842_s13 = smov %s844_s15 }
  0xc4   :  { %12 = sbr.rel (!%p10_p5) target bundleno = 2 (0x2), region = 76 }

// kernel: unet_forward.12
= control target key start
LH: loop header
LB: loop body
LE: loop exit
PB: predicated region body
PF: predicated region fallthrough
CT: control target
= control target key end

     0   :  { %s617_s12 = smov 0   ;;  %s619_s13 = smov 0   ;;  %s677_s0 = inlined_call_operand.vmem [shape: bf16[32,128], index: 0, kind: input, shape index: {}]   ;;  %s678_s1 = inlined_call_operand.vmem [shape: bf16[128,128], index: 1, kind: input, shape index: {}]   ;;  %s679_s2 = inlined_call_operand.vmem [shape: f32[1,128], index: 2, kind: input, shape index: {}]   ;;  %s680_s3 = inlined_call_operand.vmem [shape: bf16[32,128], index: 3, kind: output, shape index: {}]  }
   0x1   :  { %s621_s14 = smov 0  }
   0x2 LB: > { %s32_s15 = sadd.s32 1, %s591_s13  ;;  %p491_p0 = scmp.ge.s32.totalorder %s595_s14, 1  ;;  %s595_s14 = sphi %s621_s14, %s13_s14   ;;  %s591_s13 = sphi %s619_s13, %s682_s13   ;;  %s587_s12 = sphi %s617_s12, %s681_s12  }
   0x3   : > { %p34_p1 = scmp.ge.s32.totalorder %s32_s15, 2  ;;  %p188_p2 = scmp.lt.s32.totalorder %s595_s14, 3 }
   0x5   : > { %s684_s15 = smov (%p34_p1, %s32_s15), 0  ;;  %p189_p3 = pnand %p491_p0, %p188_p2 }
   0x6   : > { %s492_s24 = sshll.u32 (!%p189_p3), %s587_s12, 1 }
   0x7   : > { %192 = sbr.rel (%p189_p3) target bundleno = 185 (0xb9), region = 32  ;;  %p230_p4 = scmp.lt.s32.totalorder (!%p189_p3), %s492_s24, 3 }
   0xc   : > { %v542_v0 = vld [vmem:[%s678_s1 + $0x38] sm:$0xff]  ;;  %v541_v1 = vld [vmem:[%s678_s1 + $0x30] sm:$0xff]  ;;  %v540_v2 = vld [vmem:[%s678_s1 + $0x28] sm:$0xff]  ;;  %s686_s24 = smov (!%p230_p4, %s492_s24), 3 }
   0xd   : > { %339 = vmatpush.bf16.msra.mxu0 %v542_v0  ;;  %v539_v3 = vld [vmem:[%s678_s1 + $0x20] sm:$0xff]  ;;  %v538_v4 = vld [vmem:[%s678_s1 + $0x18] sm:$0xff]  ;;  %v537_v5 = vld [vmem:[%s678_s1 + $0x10] sm:$0xff]  ;;  %s493_s4 = sshll.u32 %s686_s24, 2 }
   0xe   : > { %v536_v6 = vld [vmem:[%s678_s1 + $0x8] sm:$0xff]  ;;  %v535_v7 = vld [vmem:[%s678_s1] sm:$0xff]  ;;  %s236_s9 = scalar_lea.vmem %s677_s0, %s493_s4  ;;  %s257_s17 = scalar_lea.vmem %s680_s3, %s493_s4 }
   0xf   : > { %v534_v8 = vld [vmem:[%s236_s9] sm:$0xff] }
  0x10   : > { %v572_v10 = vld [vmem:[%s679_s2] ss:$0 sm:$0xff] }
  0x11   : > { %340 = vmatpush.bf16.msra.mxu0 %v541_v1 }
  0x15   : > { %341 = vmatpush.bf16.msra.mxu0 %v540_v2 }
  0x19   : > { %342 = vmatpush.bf16.msra.mxu0 %v539_v3 }
  0x1d   : > { %343 = vmatpush.bf16.msra.mxu0 %v538_v4 }
  0x21   : > { %344 = vmatpush.bf16.msra.mxu0 %v537_v5 }
  0x25   : > { %345 = vmatpush.bf16.msra.mxu0 %v536_v6 }
  0x29   : > { %346 = vmatpush.bf16.msra.mxu0 %v535_v7 }
  0x2c   : > { %347 = vmatmul.bf16.vlgmr.msra.gmra.mxu0 %v534_v8 }
  0xa9   : > { %v348_v9 = vpop.f32.mrf.mxu0 }
  0xaa   : > { %v366_v11 = vadd.f32 %v572_v10, %v348_v9 }
  0xac   : > { %v368_v14 = vmax.f32 %v366_v11, 0.0 }
  0xb1   : > { %v350_v12 = vpop.f32.mrf.mxu0 }
  0xb2   : > { %v367_v13 = vadd.f32 %v572_v10, %v350_v12 }
  0xb4   : > { %v369_v15 = vmax.f32 %v367_v13, 0.0 }
  0xb6   : > { %v546_v16 = vpack.c.bf16 %v369_v15, %v368_v14 }
  0xb8   : > { %547 = vst [vmem:[%s257_s17] sm:$0xff] %v546_v16  }
  0xb9 PF: > { %s13_s14 = sadd.s32 1, %s595_s14   ;;  %s681_s12 = smov %s591_s13 }
  0xba   : > { %p10_p5 = scmp.ge.s32.totalorder %s13_s14, 4   ;;  %s682_s13 = smov %s684_s15 }
  0xbc   :  { %12 = sbr.rel (!%p10_p5) target bundleno = 2 (0x2), region = 76 }

// kernel: unet_forward.13
= control target key start
LH: loop header
LB: loop body
LE: loop exit
PB: predicated region body
PF: predicated region fallthrough
CT: control target
= control target key end

     0   :  { %s358_s1 = inlined_call_operand.vmem [shape: bf16[256,128], index: 1, kind: input, shape index: {}]   ;;  %s359_s0 = inlined_call_operand.vmem [shape: bf16[8,256], index: 0, kind: input, shape index: {}]   ;;  %s360_s2 = inlined_call_operand.vmem [shape: f32[1,128], index: 2, kind: input, shape index: {}]   ;;  %s361_s3 = inlined_call_operand.vmem [shape: bf16[8,128], index: 3, kind: output, shape index: {}]  }
   0x1   :  { %v271_v0 = vld [vmem:[%s358_s1 + $0x38] sm:$0xff]  ;;  %v270_v2 = vld [vmem:[%s358_s1 + $0x30] sm:$0xff]  ;;  %v269_v4 = vld [vmem:[%s358_s1 + $0x28] sm:$0xff] }
   0x2   :  { %v279_v1 = vld [vmem:[%s358_s1 + $0x78] sm:$0xff]  ;;  %156 = vmatpush.bf16.msra.mxu0 %v271_v0  ;;  %v278_v3 = vld [vmem:[%s358_s1 + $0x70] sm:$0xff]  ;;  %v277_v5 = vld [vmem:[%s358_s1 + $0x68] sm:$0xff] }
   0x3   :  { %169 = vmatpush.bf16.msra.mxu1 %v279_v1  ;;  %v268_v6 = vld [vmem:[%s358_s1 + $0x20] sm:$0xff]  ;;  %v267_v8 = vld [vmem:[%s358_s1 + $0x18] sm:$0xff]  ;;  %v266_v10 = vld [vmem:[%s358_s1 + $0x10] sm:$0xff] }
   0x4   :  { %v276_v7 = vld [vmem:[%s358_s1 + $0x60] sm:$0xff]  ;;  %v275_v9 = vld [vmem:[%s358_s1 + $0x58] sm:$0xff]  ;;  %v274_v11 = vld [vmem:[%s358_s1 + $0x50] sm:$0xff] }
   0x5   :  { %v265_v12 = vld [vmem:[%s358_s1 + $0x8] sm:$0xff]  ;;  %v20_v14 = vld [vmem:[%s359_s0] sm:$0xff] }
   0x6   :  { %157 = vmatpush.bf16.msra.mxu0 %v270_v2  ;;  %v273_v13 = vld [vmem:[%s358_s1 + $0x48] sm:$0xff]  ;;  %v54_v15 = vunpack.c.l.b16 %v20_v14  ;;  %v55_v16 = vunpack.c.h.b16 %v20_v14  ;;  %v264_v17 = vld [vmem:[%s358_s1] sm:$0xff] }
   0x7   :  { %170 = vmatpush.bf16.msra.mxu1 %v278_v3  ;;  %v272_v18 = vld [vmem:[%s358_s1 + $0x40] sm:$0xff] }
   0x8   :  { %v56_v19 = vpack.c.b16 %v54_v15, %v54_v15  ;;  %v57_v20 = vpack.c.b16 %v55_v16, %v55_v16  ;;  %v280_v21 = vld [vmem:[%s360_s2] ss:$0 sm:$0xff] }
   0xa   :  { %158 = vmatpush.bf16.msra.mxu0 %v269_v4 }
   0xb   :  { %171 = vmatpush.bf16.msra.mxu1 %v277_v5 }
   0xe   :  { %159 = vmatpush.bf16.msra.mxu0 %v268_v6 }
   0xf   :  { %172 = vmatpush.bf16.msra.mxu1 %v276_v7 }
  0x12   :  { %160 = vmatpush.bf16.msra.mxu0 %v267_v8 }
  0x13   :  { %173 = vmatpush.bf16.msra.mxu1 %v275_v9 }
  0x16   :  { %161 = vmatpush.bf16.msra.mxu0 %v266_v10 }
  0x17   :  { %174 = vmatpush.bf16.msra.mxu1 %v274_v11 }
  0x1a   :  { %162 = vmatpush.bf16.msra.mxu0 %v265_v12 }
  0x1b   :  { %175 = vmatpush.bf16.msra.mxu1 %v273_v13 }
  0x1e   :  { %163 = vmatpush.bf16.msra.mxu0 %v264_v17 }
  0x1f   :  { %176 = vmatpush.bf16.msra.mxu1 %v272_v18 }
  0x21   :  { %164 = vmatmul.bf16.vlgmr.msra.gmra.mxu0 %v56_v19 }
  0x22   :  { %177 = vmatmul.bf16.vlgmr.msra.gmra.mxu1 %v57_v20 }
  0x9e   :  { %v165_v22 = vpop.f32.mrf.mxu0 }
  0x9f   :  { %v178_v23 = vpop.f32.mrf.mxu1 }
  0xa0   :  { %v179_v24 = vadd.f32 %v178_v23, %v165_v22 }
  0xa2   :  { %v192_v25 = vadd.f32 %v280_v21, %v179_v24 }
  0xa4   :  { %v193_v26 = vmax.f32 %v192_v25, 0.0 }
  0xa6   :  { %v194_v27 = vpack.c.bf16 %v193_v26, %v193_v26  ;;  %v167_v28 = vpop.f32.mrf.mxu0 }
  0xa7   :  { %v180_v29 = vpop.f32.mrf.mxu1 }
  0xa8   :  { %195 = vst [vmem:[%s361_s3] sm:$0xf] %v194_v27 }

// kernel: unet_forward.14
= control target key start
LH: loop header
LB: loop body
LE: loop exit
PB: predicated region body
PF: predicated region fallthrough
CT: control target
= control target key end

     0   :  { %s651_s1 = inlined_call_operand.vmem [shape: bf16[512,128], index: 1, kind: input, shape index: {}]   ;;  %s652_s0 = inlined_call_operand.vmem [shape: bf16[8,512], index: 0, kind: input, shape index: {}]   ;;  %s653_s2 = inlined_call_operand.vmem [shape: f32[1,128], index: 2, kind: input, shape index: {}]   ;;  %s654_s3 = inlined_call_operand.vmem [shape: bf16[8,128], index: 3, kind: output, shape index: {}]  }
   0x1   :  { %v497_v0 = vld [vmem:[%s651_s1 + $0x38] sm:$0xff]  ;;  %v496_v4 = vld [vmem:[%s651_s1 + $0x30] sm:$0xff]  ;;  %v495_v8 = vld [vmem:[%s651_s1 + $0x28] sm:$0xff] }
   0x2   :  { %v505_v1 = vld [vmem:[%s651_s1 + $0x78] sm:$0xff]  ;;  %292 = vmatpush.bf16.msra.mxu0 %v497_v0  ;;  %v504_v5 = vld [vmem:[%s651_s1 + $0x70] sm:$0xff]  ;;  %v503_v9 = vld [vmem:[%s651_s1 + $0x68] sm:$0xff] }
   0x3   :  { %v513_v2 = vld [vmem:[%s651_s1 + $0xb8] sm:$0xff]  ;;  %305 = vmatpush.bf16.msra.mxu1 %v505_v1  ;;  %v512_v6 = vld [vmem:[%s651_s1 + $0xb0] sm:$0xff]  ;;  %v511_v10 = vld [vmem:[%s651_s1 + $0xa8] sm:$0xff] }
   0x4   :  { %v521_v3 = vld [vmem:[%s651_s1 + $0xf8] sm:$0xff]  ;;  %318 = vmatpush.bf16.msra.mxu2 %v513_v2  ;;  %v520_v7 = vld [vmem:[%s651_s1 + $0xf0] sm:$0xff]  ;;  %v519_v11 = vld [vmem:[%s651_s1 + $0xe8] sm:$0xff] }
   0x5   :  { %331 = vmatpush.bf16.msra.mxu3 %v521_v3  ;;  %v494_v12 = vld [vmem:[%s651_s1 + $0x20] sm:$0xff]  ;;  %v493_v16 = vld [vmem:[%s651_s1 + $0x18] sm:$0xff]  ;;  %v492_v20 = vld [vmem:[%s651_s1 + $0x10] sm:$0xff] }
   0x6   :  { %293 = vmatpush.bf16.msra.mxu0 %v496_v4  ;;  %v502_v13 = vld [vmem:[%s651_s1 + $0x60] sm:$0xff]  ;;  %v501_v17 = vld [vmem:[%s651_s1 + $0x58] sm:$0xff]  ;;  %v500_v21 = vld [vmem:[%s651_s1 + $0x50] sm:$0xff] }
   0x7   :  { %306 = vmatpush.bf16.msra.mxu1 %v504_v5  ;;  %v510_v14 = vld [vmem:[%s651_s1 + $0xa0] sm:$0xff]  ;;  %v509_v18 = vld [vmem:[%s651_s1 + $0x98] sm:$0xff]  ;;  %v508_v22 = vld [vmem:[%s651_s1 + $0x90] sm:$0xff] }
   0x8   :  { %319 = vmatpush.bf16.msra.mxu2 %v512_v6  ;;  %v518_v15 = vld [vmem:[%s651_s1 + $0xe0] sm:$0xff]  ;;  %v517_v19 = vld [vmem:[%s651_s1 + $0xd8] sm:$0xff]  ;;  %v516_v23 = vld [vmem:[%s651_s1 + $0xd0] sm:$0xff] }
   0x9   :  { %332 = vmatpush.bf16.msra.mxu3 %v520_v7  ;;  %v491_v24 = vld [vmem:[%s651_s1 + $0x8] sm:$0xff]  ;;  %v20_v26 = vld [vmem:[%s652_s0] sm:$0xff] }
   0xa   :  { %294 = vmatpush.bf16.msra.mxu0 %v495_v8  ;;  %v499_v25 = vld [vmem:[%s651_s1 + $0x48] sm:$0xff]  ;;  %v88_v30 = vunpack.c.l.b16 %v20_v26  ;;  %v89_v31 = vunpack.c.h.b16 %v20_v26  ;;  %v490_v32 = vld [vmem:[%s651_s1] sm:$0xff] }
   0xb   :  { %307 = vmatpush.bf16.msra.mxu1 %v503_v9  ;;  %v507_v27 = vld [vmem:[%s651_s1 + $0x88] sm:$0xff]  ;;  %v498_v33 = vld [vmem:[%s651_s1 + $0x40] sm:$0xff] }
   0xc   :  { %320 = vmatpush.bf16.msra.mxu2 %v511_v10  ;;  %v515_v28 = vld [vmem:[%s651_s1 + $0xc8] sm:$0xff]  ;;  %v506_v36 = vld [vmem:[%s651_s1 + $0x80] sm:$0xff]  ;;  %v92_v38 = vpack.c.b16 %v88_v30, %v88_v30  ;;  %v93_v39 = vpack.c.b16 %v89_v31, %v89_v31 }
   0xd   :  { %333 = vmatpush.bf16.msra.mxu3 %v519_v11  ;;  %v21_v29 = vld [vmem:[%s652_s0 + $0x8] sm:$0xff]  ;;  %v514_v37 = vld [vmem:[%s651_s1 + $0xc0] sm:$0xff] }
   0xe   :  { %295 = vmatpush.bf16.msra.mxu0 %v494_v12  ;;  %v90_v34 = vunpack.c.l.b16 %v21_v29  ;;  %v91_v35 = vunpack.c.h.b16 %v21_v29  ;;  %v522_v48 = vld [vmem:[%s653_s2] ss:$0 sm:$0xff] }
   0xf   :  { %308 = vmatpush.bf16.msra.mxu1 %v502_v13 }
  0x10   :  { %321 = vmatpush.bf16.msra.mxu2 %v510_v14  ;;  %v94_v40 = vpack.c.b16 %v90_v34, %v90_v34  ;;  %v95_v41 = vpack.c.b16 %v91_v35, %v91_v35 }
  0x11   :  { %334 = vmatpush.bf16.msra.mxu3 %v518_v15 }
  0x12   :  { %296 = vmatpush.bf16.msra.mxu0 %v493_v16 }
  0x13   :  { %309 = vmatpush.bf16.msra.mxu1 %v501_v17 }
  0x14   :  { %322 = vmatpush.bf16.msra.mxu2 %v509_v18 }
  0x15   :  { %335 = vmatpush.bf16.msra.mxu3 %v517_v19 }
  0x16   :  { %297 = vmatpush.bf16.msra.mxu0 %v492_v20 }
  0x17   :  { %310 = vmatpush.bf16.msra.mxu1 %v500_v21 }
  0x18   :  { %323 = vmatpush.bf16.msra.mxu2 %v508_v22 }
  0x19   :  { %336 = vmatpush.bf16.msra.mxu3 %v516_v23 }
  0x1a   :  { %298 = vmatpush.bf16.msra.mxu0 %v491_v24 }
  0x1b   :  { %311 = vmatpush.bf16.msra.mxu1 %v499_v25 }
  0x1c   :  { %324 = vmatpush.bf16.msra.mxu2 %v507_v27 }
  0x1d   :  { %337 = vmatpush.bf16.msra.mxu3 %v515_v28 }
  0x1e   :  { %299 = vmatpush.bf16.msra.mxu0 %v490_v32 }
  0x1f   :  { %312 = vmatpush.bf16.msra.mxu1 %v498_v33 }
  0x20   :  { %325 = vmatpush.bf16.msra.mxu2 %v506_v36 }
  0x21   :  { %338 = vmatpush.bf16.msra.mxu3 %v514_v37  ;;  %300 = vmatmul.bf16.vlgmr.msra.gmra.mxu0 %v92_v38 }
  0x22   :  { %313 = vmatmul.bf16.vlgmr.msra.gmra.mxu1 %v93_v39 }
  0x23   :  { %326 = vmatmul.bf16.vlgmr.msra.gmra.mxu2 %v94_v40 }
  0x24   :  { %339 = vmatmul.bf16.vlgmr.msra.gmra.mxu3 %v95_v41 }
  0x9e   :  { %v301_v42 = vpop.f32.mrf.mxu0 }
  0x9f   :  { %v314_v43 = vpop.f32.mrf.mxu1 }
  0xa0   :  { %v315_v44 = vadd.f32 %v314_v43, %v301_v42 }
  0xa6   :  { %v327_v45 = vpop.f32.mrf.mxu2  ;;  %v303_v49 = vpop.f32.mrf.mxu0 }
  0xa7   :  { %v340_v46 = vpop.f32.mrf.mxu3  ;;  %v328_v47 = vadd.f32 %v327_v45, %v315_v44  ;;  %v316_v50 = vpop.f32.mrf.mxu1 }
  0xa9   :  { %v341_v51 = vadd.f32 %v340_v46, %v328_v47 }
  0xab   :  { %v354_v52 = vadd.f32 %v522_v48, %v341_v51 }
  0xad   :  { %v355_v53 = vmax.f32 %v354_v52, 0.0 }
  0xae   :  { %v329_v54 = vpop.f32.mrf.mxu2 }
  0xaf   :  { %v342_v55 = vpop.f32.mrf.mxu3  ;;  %v356_v56 = vpack.c.bf16 %v355_v53, %v355_v53 }
  0xb1   :  { %357 = vst [vmem:[%s654_s3] sm:$0xf] %v356_v56 }

// kernel: tile.23
= control target key start
LH: loop header
LB: loop body
LE: loop exit
PB: predicated region body
PF: predicated region fallthrough
CT: control target
= control target key end

     0   :  { %s22_s0 = inlined_call_operand.vmem [shape: f32[32], index: 0, kind: input, shape index: {}]   ;;  %s23_s1 = inlined_call_operand.vmem [shape: f32[4,32], index: 1, kind: output, shape index: {}]  }
   0x1   :  { %v4_v0 = vld [vmem:[%s22_s0] ss:$0 sm:$0xff] }
   0x2   :  { %5 = vst [vmem:[%s23_s1] sm:$0xf] %v4_v0 }

// kernel: tile.24
= control target key start
LH: loop header
LB: loop body
LE: loop exit
PB: predicated region body
PF: predicated region fallthrough
CT: control target
= control target key end

     0   :  { %s37_s8 = smov 32   ;;  %s38_s9 = smov 64   ;;  %vm7_vm0 = vcmask 261120   ;;  %vm13_vm1 = vcmask 1048320   ;;  %vm19_vm2 = vcmask 785920   ;;  %vm25_vm3 = vcmask 523520   ;;  %s55_s0 = inlined_call_operand.vmem [shape: f32[4,32], index: 0, kind: input, shape index: {}]   ;;  %s56_s1 = inlined_call_operand.vmem [shape: f32[1,128], index: 1, kind: output, shape index: {}]  }
   0x1   :  { %v4_v0 = vld [vmem:[%s55_s0] sm:$0xf]  ;;  %s36_s0 = smov 96  }
   0x2   :  { %5 = vst [vmem:[#allocation1] sm:$0xf] %v4_v0 }
   0x9   :  { %v10_v1 = vld [vmem:[#allocation1 + $0x3] sm:$0x1]   ;;  %v22_v2 = vld [vmem:[#allocation1 + $0x1] sm:$0x1]   ;;  %v16_v3 = vld [vmem:[#allocation1 + $0x2] sm:$0x1]  }
   0xa   :  { %11 = vrot.lane.b32.xlu0 %v10_v1, %s36_s0  ;;  %23 = vrot.lane.b32.xlu1 %v22_v2, %s37_s8  ;;  %v6_v4 = vld [vmem:[#allocation1] sm:$0x1]  }
   0xb   :  { %8 = vst.msk [vmem:[#allocation0] sm:$0x1] %vm7_vm0, %v6_v4  }
  0x12   :  { %17 = vrot.lane.b32.xlu0 %v16_v3, %s38_s9 }
  0x7c   :  { %v12_v5 = vpop.permute.xlu0 %11   ;;  %v24_v6 = vpop.permute.xlu1 %23  }
  0x7d   :  { %14 = vst.msk [vmem:[#allocation0] sm:$0x1] %vm13_vm1, %v12_v5  }
  0x84   :  { %v18_v7 = vpop.permute.xlu0 %17  }
  0x85   :  { %20 = vst.msk [vmem:[#allocation0] sm:$0x1] %vm19_vm2, %v18_v7  }
  0x86   :  { %26 = vst.msk [vmem:[#allocation0] sm:$0x1] %vm25_vm3, %v24_v6  }
  0x8d   :  { %v29_v8 = vld [vmem:[#allocation0] sm:$0x1] }
  0x8e   :  { %32 = vst [vmem:[%s56_s1] sm:$0x1] %v29_v8 }

// kernel: unet_forward.15
= control target key start
LH: loop header
LB: loop body
LE: loop exit
PB: predicated region body
PF: predicated region fallthrough
CT: control target
= control target key end

     0   :  { %s814_s1 = inlined_call_operand.vmem [shape: bf16[640,128], index: 1, kind: input, shape index: {}]   ;;  %s815_s0 = inlined_call_operand.vmem [shape: bf16[8,640], index: 0, kind: input, shape index: {}]   ;;  %s816_s2 = inlined_call_operand.vmem [shape: f32[1,128], index: 2, kind: input, shape index: {}]   ;;  %s817_s3 = inlined_call_operand.vmem [shape: bf16[8,128], index: 3, kind: input, shape index: {}]   ;;  %s818_s4 = inlined_call_operand.vmem [shape: bf16[8,128], index: 4, kind: output, shape index: {}]  }
   0x1   :  { %v617_v0 = vld [vmem:[%s814_s1 + $0x38] sm:$0xff]  ;;  %v616_v3 = vld [vmem:[%s814_s1 + $0x30] sm:$0xff]  ;;  %v615_v8 = vld [vmem:[%s814_s1 + $0x28] sm:$0xff] }
   0x2   :  { %v633_v1 = vld [vmem:[%s814_s1 + $0xb8] sm:$0xff]  ;;  %364 = vmatpush.bf16.msra.mxu0 %v617_v0  ;;  %v632_v5 = vld [vmem:[%s814_s1 + $0xb0] sm:$0xff]  ;;  %v631_v9 = vld [vmem:[%s814_s1 + $0xa8] sm:$0xff] }
   0x3   :  { %v641_v2 = vld [vmem:[%s814_s1 + $0xf8] sm:$0xff]  ;;  %390 = vmatpush.bf16.msra.mxu2 %v633_v1  ;;  %v640_v6 = vld [vmem:[%s814_s1 + $0xf0] sm:$0xff]  ;;  %v639_v10 = vld [vmem:[%s814_s1 + $0xe8] sm:$0xff] }
   0x4   :  { %v625_v4 = vld [vmem:[%s814_s1 + $0x78] sm:$0xff]  ;;  %403 = vmatpush.bf16.msra.mxu3 %v641_v2  ;;  %v624_v7 = vld [vmem:[%s814_s1 + $0x70] sm:$0xff]  ;;  %v623_v11 = vld [vmem:[%s814_s1 + $0x68] sm:$0xff] }
   0x5   :  { %377 = vmatpush.bf16.msra.mxu1 %v625_v4  ;;  %v614_v12 = vld [vmem:[%s814_s1 + $0x20] sm:$0xff]  ;;  %v613_v16 = vld [vmem:[%s814_s1 + $0x18] sm:$0xff]  ;;  %v612_v20 = vld [vmem:[%s814_s1 + $0x10] sm:$0xff] }
   0x6   :  { %365 = vmatpush.bf16.msra.mxu0 %v616_v3  ;;  %v630_v13 = vld [vmem:[%s814_s1 + $0xa0] sm:$0xff]  ;;  %v629_v17 = vld [vmem:[%s814_s1 + $0x98] sm:$0xff]  ;;  %v628_v21 = vld [vmem:[%s814_s1 + $0x90] sm:$0xff] }
   0x7   :  { %391 = vmatpush.bf16.msra.mxu2 %v632_v5  ;;  %v638_v14 = vld [vmem:[%s814_s1 + $0xe0] sm:$0xff]  ;;  %v637_v18 = vld [vmem:[%s814_s1 + $0xd8] sm:$0xff]  ;;  %v636_v22 = vld [vmem:[%s814_s1 + $0xd0] sm:$0xff] }
   0x8   :  { %404 = vmatpush.bf16.msra.mxu3 %v640_v6  ;;  %v622_v15 = vld [vmem:[%s814_s1 + $0x60] sm:$0xff]  ;;  %v621_v19 = vld [vmem:[%s814_s1 + $0x58] sm:$0xff]  ;;  %v620_v23 = vld [vmem:[%s814_s1 + $0x50] sm:$0xff] }
   0x9   :  { %378 = vmatpush.bf16.msra.mxu1 %v624_v7  ;;  %v611_v24 = vld [vmem:[%s814_s1 + $0x8] sm:$0xff]  ;;  %v23_v25 = vld [vmem:[%s815_s0] sm:$0xff]  ;;  %v649_v33 = vld [vmem:[%s814_s1 + $0x138] sm:$0xff] }
   0xa   :  { %366 = vmatpush.bf16.msra.mxu0 %v615_v8  ;;  %v627_v26 = vld [vmem:[%s814_s1 + $0x88] sm:$0xff]  ;;  %v109_v30 = vunpack.c.l.b16 %v23_v25  ;;  %v610_v31 = vld [vmem:[%s814_s1] sm:$0xff]  ;;  %v110_v38 = vunpack.c.h.b16 %v23_v25  ;;  %v648_v41 = vld [vmem:[%s814_s1 + $0x130] sm:$0xff] }
   0xb   :  { %392 = vmatpush.bf16.msra.mxu2 %v631_v9  ;;  %v635_v27 = vld [vmem:[%s814_s1 + $0xc8] sm:$0xff]  ;;  %v626_v34 = vld [vmem:[%s814_s1 + $0x80] sm:$0xff]  ;;  %v645_v46 = vld [vmem:[%s814_s1 + $0x118] sm:$0xff] }
   0xc   :  { %405 = vmatpush.bf16.msra.mxu3 %v639_v10  ;;  %v24_v28 = vld [vmem:[%s815_s0 + $0x8] sm:$0xff]  ;;  %v634_v36 = vld [vmem:[%s814_s1 + $0xc0] sm:$0xff]  ;;  %v114_v39 = vpack.c.b16 %v109_v30, %v109_v30  ;;  %v115_v43 = vpack.c.b16 %v110_v38, %v110_v38  ;;  %v644_v47 = vld [vmem:[%s814_s1 + $0x110] sm:$0xff] }
   0xd   :  { %379 = vmatpush.bf16.msra.mxu1 %v623_v11  ;;  %v619_v29 = vld [vmem:[%s814_s1 + $0x48] sm:$0xff]  ;;  %v111_v32 = vunpack.c.l.b16 %v24_v28  ;;  %v112_v35 = vunpack.c.h.b16 %v24_v28  ;;  %v618_v37 = vld [vmem:[%s814_s1 + $0x40] sm:$0xff]  ;;  %v25_v49 = vld [vmem:[%s815_s0 + $0x10] sm:$0xf] }
   0xe   :  { %367 = vmatpush.bf16.msra.mxu0 %v614_v12  ;;  %v647_v44 = vld [vmem:[%s814_s1 + $0x128] sm:$0xff]  ;;  %v646_v45 = vld [vmem:[%s814_s1 + $0x120] sm:$0xff]  ;;  %v113_v50 = vunpack.c.l.b16 %v25_v49 }
   0xf   :  { %393 = vmatpush.bf16.msra.mxu2 %v630_v13  ;;  %v116_v40 = vpack.c.b16 %v111_v32, %v111_v32  ;;  %v117_v42 = vpack.c.b16 %v112_v35, %v112_v35  ;;  %v643_v48 = vld [vmem:[%s814_s1 + $0x108] sm:$0xff]  ;;  %v642_v51 = vld [vmem:[%s814_s1 + $0x100] sm:$0xff] }
  0x10   :  { %406 = vmatpush.bf16.msra.mxu3 %v638_v14  ;;  %v118_v52 = vpack.c.b16 %v113_v50, %v113_v50  ;;  %v440_v63 = vld [vmem:[%s817_s3] sm:$0xf] }
  0x11   :  { %380 = vmatpush.bf16.msra.mxu1 %v622_v15  ;;  %v650_v1 = vld [vmem:[%s816_s2] ss:$0 sm:$0xff]  ;;  %v441_v4 = vunpack.c.l.bf16 %v440_v63 }
  0x12   :  { %368 = vmatpush.bf16.msra.mxu0 %v613_v16 }
  0x13   :  { %394 = vmatpush.bf16.msra.mxu2 %v629_v17 }
  0x14   :  { %407 = vmatpush.bf16.msra.mxu3 %v637_v18 }
  0x15   :  { %381 = vmatpush.bf16.msra.mxu1 %v621_v19 }
  0x16   :  { %369 = vmatpush.bf16.msra.mxu0 %v612_v20 }
  0x17   :  { %395 = vmatpush.bf16.msra.mxu2 %v628_v21 }
  0x18   :  { %408 = vmatpush.bf16.msra.mxu3 %v636_v22 }
  0x19   :  { %382 = vmatpush.bf16.msra.mxu1 %v620_v23 }
  0x1a   :  { %370 = vmatpush.bf16.msra.mxu0 %v611_v24 }
  0x1b   :  { %396 = vmatpush.bf16.msra.mxu2 %v627_v26 }
  0x1c   :  { %409 = vmatpush.bf16.msra.mxu3 %v635_v27 }
  0x1d   :  { %383 = vmatpush.bf16.msra.mxu1 %v619_v29 }
  0x1e   :  { %371 = vmatpush.bf16.msra.mxu0 %v610_v31 }
  0x1f   :  { %397 = vmatpush.bf16.msra.mxu2 %v626_v34 }
  0x20   :  { %410 = vmatpush.bf16.msra.mxu3 %v634_v36 }
  0x21   :  { %384 = vmatpush.bf16.msra.mxu1 %v618_v37  ;;  %372 = vmatmul.bf16.vlgmr.msra.gmra.mxu0 %v114_v39 }
  0x22   :  { %416 = vmatpush.bf16.msrb.mxu0 %v649_v33  ;;  %398 = vmatmul.bf16.vlgmr.msra.gmra.mxu2 %v116_v40 }
  0x23   :  { %411 = vmatmul.bf16.vlgmr.msra.gmra.mxu3 %v117_v42 }
  0x24   :  { %385 = vmatmul.bf16.vlgmr.msra.gmra.mxu1 %v115_v43 }
  0x26   :  { %417 = vmatpush.bf16.msrb.mxu0 %v648_v41 }
  0x2a   :  { %418 = vmatpush.bf16.msrb.mxu0 %v647_v44 }
  0x2e   :  { %419 = vmatpush.bf16.msrb.mxu0 %v646_v45 }
  0x32   :  { %420 = vmatpush.bf16.msrb.mxu0 %v645_v46 }
  0x36   :  { %421 = vmatpush.bf16.msrb.mxu0 %v644_v47 }
  0x3a   :  { %422 = vmatpush.bf16.msrb.mxu0 %v643_v48 }
  0x3e   :  { %423 = vmatpush.bf16.msrb.mxu0 %v642_v51 }
  0x41   :  { %424 = vmatmul.bf16.vlgmr.msrb.gmra.mxu0 %v118_v52 }
  0x9e   :  { %v373_v53 = vpop.f32.mrf.mxu0 }
  0xa1   :  { %v386_v54 = vpop.f32.mrf.mxu1 }
  0xa2   :  { %v387_v61 = vadd.f32 %v386_v54, %v373_v53 }
  0xa5   :  { %v399_v55 = vpop.f32.mrf.mxu2 }
  0xa6   :  { %v375_v56 = vpop.f32.mrf.mxu0  ;;  %v412_v57 = vpop.f32.mrf.mxu3  ;;  %v400_v62 = vadd.f32 %v399_v55, %v387_v61 }
  0xa8   :  { %v413_v0 = vadd.f32 %v412_v57, %v400_v62 }
  0xa9   :  { %v388_v58 = vpop.f32.mrf.mxu1 }
  0xad   :  { %v401_v59 = vpop.f32.mrf.mxu2 }
  0xae   :  { %v414_v60 = vpop.f32.mrf.mxu3 }
  0xbe   :  { %v425_v2 = vpop.f32.mrf.mxu0 }
  0xbf   :  { %v426_v3 = vadd.f32 %v425_v2, %v413_v0 }
  0xc1   :  { %v439_v5 = vadd.f32 %v650_v1, %v426_v3 }
  0xc3   :  { %v442_v6 = vadd.f32 %v441_v4, %v439_v5 }
  0xc5   :  { %v443_v7 = vmax.f32 %v442_v6, 0.0 }
  0xc6   :  { %v427_v8 = vpop.f32.mrf.mxu0 }
  0xc7   :  { %v444_v9 = vpack.c.bf16 %v443_v7, %v443_v7 }
  0xc9   :  { %445 = vst [vmem:[%s818_s4] sm:$0xf] %v444_v9 }

// kernel: tile.28
= control target key start
LH: loop header
LB: loop body
LE: loop exit
PB: predicated region body
PF: predicated region fallthrough
CT: control target
= control target key end

     0   :  { %s22_s0 = inlined_call_operand.vmem [shape: f32[16], index: 0, kind: input, shape index: {}]   ;;  %s23_s1 = inlined_call_operand.vmem [shape: f32[4,16], index: 1, kind: output, shape index: {}]  }
   0x1   :  { %v4_v0 = vld [vmem:[%s22_s0] ss:$0 sm:$0xff] }
   0x2   :  { %5 = vst [vmem:[%s23_s1] sm:$0xf] %v4_v0 }

// kernel: tile.29
= control target key start
LH: loop header
LB: loop body
LE: loop exit
PB: predicated region body
PF: predicated region fallthrough
CT: control target
= control target key end

     0   :  { %s37_s8 = smov 16   ;;  %s38_s9 = smov 32   ;;  %vm7_vm0 = vcmask 130048   ;;  %vm13_vm1 = vcmask 523648   ;;  %vm19_vm2 = vcmask 392448   ;;  %vm25_vm3 = vcmask 261248   ;;  %s55_s0 = inlined_call_operand.vmem [shape: f32[4,16], index: 0, kind: input, shape index: {}]   ;;  %s56_s1 = inlined_call_operand.vmem [shape: f32[1,64], index: 1, kind: output, shape index: {}]  }
   0x1   :  { %v4_v0 = vld [vmem:[%s55_s0] sm:$0xf]  ;;  %s36_s0 = smov 48  }
   0x2   :  { %5 = vst [vmem:[#allocation1] sm:$0xf] %v4_v0 }
   0x9   :  { %v10_v1 = vld [vmem:[#allocation1 + $0x3] sm:$0x1]   ;;  %v22_v2 = vld [vmem:[#allocation1 + $0x1] sm:$0x1]   ;;  %v16_v3 = vld [vmem:[#allocation1 + $0x2] sm:$0x1]  }
   0xa   :  { %11 = vrot.lane.b32.xlu0 %v10_v1, %s36_s0  ;;  %23 = vrot.lane.b32.xlu1 %v22_v2, %s37_s8  ;;  %v6_v4 = vld [vmem:[#allocation1] sm:$0x1]  }
   0xb   :  { %8 = vst.msk [vmem:[#allocation0] sm:$0x1] %vm7_vm0, %v6_v4  }
  0x12   :  { %17 = vrot.lane.b32.xlu0 %v16_v3, %s38_s9 }
  0x7c   :  { %v12_v5 = vpop.permute.xlu0 %11   ;;  %v24_v6 = vpop.permute.xlu1 %23  }
  0x7d   :  { %14 = vst.msk [vmem:[#allocation0] sm:$0x1] %vm13_vm1, %v12_v5  }
  0x84   :  { %v18_v7 = vpop.permute.xlu0 %17  }
  0x85   :  { %20 = vst.msk [vmem:[#allocation0] sm:$0x1] %vm19_vm2, %v18_v7  }
  0x86   :  { %26 = vst.msk [vmem:[#allocation0] sm:$0x1] %vm25_vm3, %v24_v6  }
  0x8d   :  { %v29_v8 = vld [vmem:[#allocation0] sm:$0x1] }
  0x8e   :  { %32 = vst [vmem:[%s56_s1] sm:$0x1] %v29_v8 }

// kernel: unet_forward.16
= control target key start
LH: loop header
LB: loop body
LE: loop exit
PB: predicated region body
PF: predicated region fallthrough
CT: control target
= control target key end

     0   :  { %s521_s1 = inlined_call_operand.vmem [shape: bf16[384,128], index: 1, kind: input, shape index: {}]   ;;  %s522_s0 = inlined_call_operand.vmem [shape: bf16[8,384], index: 0, kind: input, shape index: {}]   ;;  %s523_s2 = inlined_call_operand.vmem [shape: f32[1,128], index: 2, kind: input, shape index: {}]   ;;  %s524_s3 = inlined_call_operand.vmem [shape: bf16[8,128], index: 3, kind: input, shape index: {}]   ;;  %s525_s4 = inlined_call_operand.vmem [shape: bf16[8,128], index: 4, kind: output, shape index: {}]  }
   0x1   :  { %v391_v0 = vld [vmem:[%s521_s1 + $0x38] sm:$0xff]  ;;  %v390_v3 = vld [vmem:[%s521_s1 + $0x30] sm:$0xff]  ;;  %v389_v6 = vld [vmem:[%s521_s1 + $0x28] sm:$0xff] }
   0x2   :  { %v399_v1 = vld [vmem:[%s521_s1 + $0x78] sm:$0xff]  ;;  %228 = vmatpush.bf16.msra.mxu0 %v391_v0  ;;  %v398_v4 = vld [vmem:[%s521_s1 + $0x70] sm:$0xff]  ;;  %v397_v7 = vld [vmem:[%s521_s1 + $0x68] sm:$0xff] }
   0x3   :  { %v407_v2 = vld [vmem:[%s521_s1 + $0xb8] sm:$0xff]  ;;  %241 = vmatpush.bf16.msra.mxu1 %v399_v1  ;;  %v406_v5 = vld [vmem:[%s521_s1 + $0xb0] sm:$0xff]  ;;  %v405_v8 = vld [vmem:[%s521_s1 + $0xa8] sm:$0xff] }
   0x4   :  { %254 = vmatpush.bf16.msra.mxu2 %v407_v2  ;;  %v388_v9 = vld [vmem:[%s521_s1 + $0x20] sm:$0xff]  ;;  %v387_v12 = vld [vmem:[%s521_s1 + $0x18] sm:$0xff]  ;;  %v386_v15 = vld [vmem:[%s521_s1 + $0x10] sm:$0xff] }
   0x5   :  { %v396_v10 = vld [vmem:[%s521_s1 + $0x60] sm:$0xff]  ;;  %v395_v13 = vld [vmem:[%s521_s1 + $0x58] sm:$0xff]  ;;  %v394_v16 = vld [vmem:[%s521_s1 + $0x50] sm:$0xff] }
   0x6   :  { %229 = vmatpush.bf16.msra.mxu0 %v390_v3  ;;  %v404_v11 = vld [vmem:[%s521_s1 + $0xa0] sm:$0xff]  ;;  %v403_v14 = vld [vmem:[%s521_s1 + $0x98] sm:$0xff]  ;;  %v402_v17 = vld [vmem:[%s521_s1 + $0x90] sm:$0xff] }
   0x7   :  { %242 = vmatpush.bf16.msra.mxu1 %v398_v4  ;;  %v385_v18 = vld [vmem:[%s521_s1 + $0x8] sm:$0xff]  ;;  %v23_v20 = vld [vmem:[%s522_s0] sm:$0xff] }
   0x8   :  { %255 = vmatpush.bf16.msra.mxu2 %v406_v5  ;;  %v393_v19 = vld [vmem:[%s521_s1 + $0x48] sm:$0xff]  ;;  %v75_v23 = vunpack.c.l.b16 %v23_v20  ;;  %v76_v24 = vunpack.c.h.b16 %v23_v20  ;;  %v384_v25 = vld [vmem:[%s521_s1] sm:$0xff] }
   0x9   :  { %v401_v21 = vld [vmem:[%s521_s1 + $0x88] sm:$0xff]  ;;  %v392_v26 = vld [vmem:[%s521_s1 + $0x40] sm:$0xff] }
   0xa   :  { %230 = vmatpush.bf16.msra.mxu0 %v389_v6  ;;  %v24_v22 = vld [vmem:[%s522_s0 + $0x8] sm:$0xf]  ;;  %v400_v28 = vld [vmem:[%s521_s1 + $0x80] sm:$0xff]  ;;  %v78_v29 = vpack.c.b16 %v75_v23, %v75_v23  ;;  %v79_v30 = vpack.c.b16 %v76_v24, %v76_v24 }
   0xb   :  { %243 = vmatpush.bf16.msra.mxu1 %v397_v7  ;;  %v77_v27 = vunpack.c.l.b16 %v24_v22  ;;  %v278_v35 = vld [vmem:[%s524_s3] sm:$0xf] }
   0xc   :  { %256 = vmatpush.bf16.msra.mxu2 %v405_v8  ;;  %v408_v36 = vld [vmem:[%s523_s2] ss:$0 sm:$0xff]  ;;  %v279_v39 = vunpack.c.l.bf16 %v278_v35 }
   0xd   :  { %v80_v31 = vpack.c.b16 %v77_v27, %v77_v27 }
   0xe   :  { %231 = vmatpush.bf16.msra.mxu0 %v388_v9 }
   0xf   :  { %244 = vmatpush.bf16.msra.mxu1 %v396_v10 }
  0x10   :  { %257 = vmatpush.bf16.msra.mxu2 %v404_v11 }
  0x12   :  { %232 = vmatpush.bf16.msra.mxu0 %v387_v12 }
  0x13   :  { %245 = vmatpush.bf16.msra.mxu1 %v395_v13 }
  0x14   :  { %258 = vmatpush.bf16.msra.mxu2 %v403_v14 }
  0x16   :  { %233 = vmatpush.bf16.msra.mxu0 %v386_v15 }
  0x17   :  { %246 = vmatpush.bf16.msra.mxu1 %v394_v16 }
  0x18   :  { %259 = vmatpush.bf16.msra.mxu2 %v402_v17 }
  0x1a   :  { %234 = vmatpush.bf16.msra.mxu0 %v385_v18 }
  0x1b   :  { %247 = vmatpush.bf16.msra.mxu1 %v393_v19 }
  0x1c   :  { %260 = vmatpush.bf16.msra.mxu2 %v401_v21 }
  0x1e   :  { %235 = vmatpush.bf16.msra.mxu0 %v384_v25 }
  0x1f   :  { %248 = vmatpush.bf16.msra.mxu1 %v392_v26 }
  0x20   :  { %261 = vmatpush.bf16.msra.mxu2 %v400_v28 }
  0x21   :  { %236 = vmatmul.bf16.vlgmr.msra.gmra.mxu0 %v78_v29 }
  0x22   :  { %249 = vmatmul.bf16.vlgmr.msra.gmra.mxu1 %v79_v30 }
  0x23   :  { %262 = vmatmul.bf16.vlgmr.msra.gmra.mxu2 %v80_v31 }
  0x9e   :  { %v237_v32 = vpop.f32.mrf.mxu0 }
  0x9f   :  { %v250_v33 = vpop.f32.mrf.mxu1 }
  0xa0   :  { %v251_v34 = vadd.f32 %v250_v33, %v237_v32 }
  0xa6   :  { %v263_v37 = vpop.f32.mrf.mxu2  ;;  %v239_v40 = vpop.f32.mrf.mxu0 }
  0xa7   :  { %v264_v38 = vadd.f32 %v263_v37, %v251_v34  ;;  %v252_v41 = vpop.f32.mrf.mxu1 }
  0xa9   :  { %v277_v42 = vadd.f32 %v408_v36, %v264_v38 }
  0xab   :  { %v280_v43 = vadd.f32 %v279_v39, %v277_v42 }
  0xad   :  { %v281_v44 = vmax.f32 %v280_v43, 0.0 }
  0xae   :  { %v265_v45 = vpop.f32.mrf.mxu2 }
  0xaf   :  { %v282_v46 = vpack.c.bf16 %v281_v44, %v281_v44 }
  0xb1   :  { %283 = vst [vmem:[%s525_s4] sm:$0xf] %v282_v46 }

// kernel: tile.33
= control target key start
LH: loop header
LB: loop body
LE: loop exit
PB: predicated region body
PF: predicated region fallthrough
CT: control target
= control target key end

     0   :  { %s22_s0 = inlined_call_operand.vmem [shape: f32[8], index: 0, kind: input, shape index: {}]   ;;  %s23_s1 = inlined_call_operand.vmem [shape: f32[4,8], index: 1, kind: output, shape index: {}]  }
   0x1   :  { %v4_v0 = vld [vmem:[%s22_s0] ss:$0 sm:$0xff] }
   0x2   :  { %5 = vst [vmem:[%s23_s1] sm:$0xf] %v4_v0 }

// kernel: tile.34
= control target key start
LH: loop header
LB: loop body
LE: loop exit
PB: predicated region body
PF: predicated region fallthrough
CT: control target
= control target key end

     0   :  { %s37_s8 = smov 8   ;;  %s38_s9 = smov 16   ;;  %vm7_vm0 = vcmask 64512   ;;  %vm13_vm1 = vcmask 261312   ;;  %vm19_vm2 = vcmask 195712   ;;  %vm25_vm3 = vcmask 130112   ;;  %s55_s0 = inlined_call_operand.vmem [shape: f32[4,8], index: 0, kind: input, shape index: {}]   ;;  %s56_s1 = inlined_call_operand.vmem [shape: f32[1,32], index: 1, kind: output, shape index: {}]  }
   0x1   :  { %v4_v0 = vld [vmem:[%s55_s0] sm:$0xf]  ;;  %s36_s0 = smov 24  }
   0x2   :  { %5 = vst [vmem:[#allocation1] sm:$0xf] %v4_v0 }
   0x9   :  { %v10_v1 = vld [vmem:[#allocation1 + $0x3] sm:$0x1]   ;;  %v22_v2 = vld [vmem:[#allocation1 + $0x1] sm:$0x1]   ;;  %v16_v3 = vld [vmem:[#allocation1 + $0x2] sm:$0x1]  }
   0xa   :  { %11 = vrot.lane.b32.xlu0 %v10_v1, %s36_s0  ;;  %23 = vrot.lane.b32.xlu1 %v22_v2, %s37_s8  ;;  %v6_v4 = vld [vmem:[#allocation1] sm:$0x1]  }
   0xb   :  { %8 = vst.msk [vmem:[#allocation0] sm:$0x1] %vm7_vm0, %v6_v4  }
  0x12   :  { %17 = vrot.lane.b32.xlu0 %v16_v3, %s38_s9 }
  0x7c   :  { %v12_v5 = vpop.permute.xlu0 %11   ;;  %v24_v6 = vpop.permute.xlu1 %23  }
  0x7d   :  { %14 = vst.msk [vmem:[#allocation0] sm:$0x1] %vm13_vm1, %v12_v5  }
  0x84   :  { %v18_v7 = vpop.permute.xlu0 %17  }
  0x85   :  { %20 = vst.msk [vmem:[#allocation0] sm:$0x1] %vm19_vm2, %v18_v7  }
  0x86   :  { %26 = vst.msk [vmem:[#allocation0] sm:$0x1] %vm25_vm3, %v24_v6  }
  0x8d   :  { %v29_v8 = vld [vmem:[#allocation0] sm:$0x1] }
  0x8e   :  { %32 = vst [vmem:[%s56_s1] sm:$0x1] %v29_v8 }

// kernel: unet_forward.17
= control target key start
LH: loop header
LB: loop body
LE: loop exit
PB: predicated region body
PF: predicated region fallthrough
CT: control target
= control target key end

     0   :  { %s849_s15 = smov 0   ;;  %s851_s16 = smov 0   ;;  %s943_s0 = inlined_call_operand.vmem [shape: bf16[32,256], index: 0, kind: input, shape index: {}]   ;;  %s944_s1 = inlined_call_operand.vmem [shape: bf16[256,128], index: 1, kind: input, shape index: {}]   ;;  %s945_s2 = inlined_call_operand.vmem [shape: f32[1,128], index: 2, kind: input, shape index: {}]   ;;  %s946_s3 = inlined_call_operand.vmem [shape: bf16[32,128], index: 3, kind: input, shape index: {}]   ;;  %s947_s4 = inlined_call_operand.vmem [shape: bf16[32,128], index: 4, kind: output, shape index: {}]  }
   0x1   :  { %s853_s17 = smov 0  }
   0x2 LB: > { %s33_s18 = sadd.s32 1, %s818_s16  ;;  %p665_p0 = scmp.ge.s32.totalorder %s822_s17, 1  ;;  %s822_s17 = sphi %s853_s17, %s14_s17   ;;  %s818_s16 = sphi %s851_s16, %s949_s16   ;;  %s814_s15 = sphi %s849_s15, %s948_s15  }
   0x3   : > { %p35_p1 = scmp.ge.s32.totalorder %s33_s18, 2  ;;  %p232_p2 = scmp.lt.s32.totalorder %s822_s17, 3 }
   0x5   : > { %s951_s18 = smov (%p35_p1, %s33_s18), 0  ;;  %p233_p3 = pnand %p665_p0, %p232_p2 }
   0x6   : > { %s666_s5 = sshll.u32 (!%p233_p3), %s814_s15, 1 }
   0x7   : > { %236 = sbr.rel (%p233_p3) target bundleno = 190 (0xbe), region = 36  ;;  %p287_p4 = scmp.lt.s32.totalorder (!%p233_p3), %s666_s5, 3 }
   0xc   : > { %v757_v0 = vld [vmem:[%s944_s1 + $0x38] sm:$0xff]  ;;  %v756_v2 = vld [vmem:[%s944_s1 + $0x30] sm:$0xff]  ;;  %v755_v4 = vld [vmem:[%s944_s1 + $0x28] sm:$0xff]  ;;  %s953_s5 = smov (!%p287_p4, %s666_s5), 3 }
   0xd   : > { %v765_v1 = vld [vmem:[%s944_s1 + $0x78] sm:$0xff]  ;;  %475 = vmatpush.bf16.msra.mxu0 %v757_v0  ;;  %v764_v3 = vld [vmem:[%s944_s1 + $0x70] sm:$0xff]  ;;  %v763_v5 = vld [vmem:[%s944_s1 + $0x68] sm:$0xff]  ;;  %s747_s21 = sshll.u32 %s953_s5, 3  ;;  %s670_s8 = sshll.u32 %s953_s5, 2 }
   0xe   : > { %489 = vmatpush.bf16.msra.mxu1 %v765_v1  ;;  %v754_v6 = vld [vmem:[%s944_s1 + $0x20] sm:$0xff]  ;;  %v753_v8 = vld [vmem:[%s944_s1 + $0x18] sm:$0xff]  ;;  %v752_v10 = vld [vmem:[%s944_s1 + $0x10] sm:$0xff]  ;;  %s294_s28 = scalar_lea.vmem %s943_s0, %s747_s21  ;;  %s316_s11 = scalar_lea.vmem %s946_s3, %s670_s8 }
   0xf   : > { %v762_v7 = vld [vmem:[%s944_s1 + $0x60] sm:$0xff]  ;;  %v761_v9 = vld [vmem:[%s944_s1 + $0x58] sm:$0xff]  ;;  %v760_v11 = vld [vmem:[%s944_s1 + $0x50] sm:$0xff]  ;;  %s325_s15 = scalar_lea.vmem %s947_s4, %s670_s8 }
  0x10   : > { %v751_v12 = vld [vmem:[%s944_s1 + $0x8] sm:$0xff]  ;;  %v750_v14 = vld [vmem:[%s944_s1] sm:$0xff] }
  0x11   : > { %476 = vmatpush.bf16.msra.mxu0 %v756_v2  ;;  %v759_v13 = vld [vmem:[%s944_s1 + $0x48] sm:$0xff]  ;;  %v758_v15 = vld [vmem:[%s944_s1 + $0x40] sm:$0xff] }
  0x12   : > { %490 = vmatpush.bf16.msra.mxu1 %v764_v3  ;;  %v675_v16 = vld [vmem:[%s294_s28] sm:$0xf]  ;;  %v749_v17 = vld [vmem:[%s294_s28 + $0x4] sm:$0xf0]  ;;  %v748_v18 = vld [vmem:[%s294_s28 + $0x4] sm:$0xf] }
  0x13   : > { %v677_v19 = vld [vmem:[%s294_s28 + $0x8] sm:$0xf0]  ;;  %v676_v20 = vor.u32 %v749_v17, %v675_v16  ;;  %v799_v25 = vld [vmem:[%s945_s2] ss:$0 sm:$0xff] }
  0x14   : > { %v680_v21 = vor.u32 %v748_v18, %v677_v19  ;;  %v767_v26 = vld [vmem:[%s316_s11] sm:$0xff]  }
  0x15   : > { %477 = vmatpush.bf16.msra.mxu0 %v755_v4  ;;  %v768_v28 = vunpack.c.l.bf16 %v767_v26  ;;  %v769_v32 = vunpack.c.h.bf16 %v767_v26 }
  0x16   : > { %491 = vmatpush.bf16.msra.mxu1 %v763_v5 }
  0x19   : > { %478 = vmatpush.bf16.msra.mxu0 %v754_v6 }
  0x1a   : > { %492 = vmatpush.bf16.msra.mxu1 %v762_v7 }
  0x1d   : > { %479 = vmatpush.bf16.msra.mxu0 %v753_v8 }
  0x1e   : > { %493 = vmatpush.bf16.msra.mxu1 %v761_v9 }
  0x21   : > { %480 = vmatpush.bf16.msra.mxu0 %v752_v10 }
  0x22   : > { %494 = vmatpush.bf16.msra.mxu1 %v760_v11 }
  0x25   : > { %481 = vmatpush.bf16.msra.mxu0 %v751_v12 }
  0x26   : > { %495 = vmatpush.bf16.msra.mxu1 %v759_v13 }
  0x29   : > { %482 = vmatpush.bf16.msra.mxu0 %v750_v14 }
  0x2a   : > { %496 = vmatpush.bf16.msra.mxu1 %v758_v15 }
  0x2c   : > { %483 = vmatmul.bf16.vlgmr.msra.gmra.mxu0 %v676_v20 }
  0x2d   : > { %497 = vmatmul.bf16.vlgmr.msra.gmra.mxu1 %v680_v21 }
  0xa9   : > { %v484_v22 = vpop.f32.mrf.mxu0 }
  0xaa   : > { %v498_v23 = vpop.f32.mrf.mxu1 }
  0xab   : > { %v499_v24 = vadd.f32 %v498_v23, %v484_v22 }
  0xad   : > { %v516_v27 = vadd.f32 %v799_v25, %v499_v24 }
  0xaf   : > { %v522_v33 = vadd.f32 %v768_v28, %v516_v27 }
  0xb1   : > { %v486_v29 = vpop.f32.mrf.mxu0  ;;  %v524_v36 = vmax.f32 %v522_v33, 0.0 }
  0xb2   : > { %v500_v30 = vpop.f32.mrf.mxu1 }
  0xb3   : > { %v501_v31 = vadd.f32 %v500_v30, %v486_v29 }
  0xb5   : > { %v517_v34 = vadd.f32 %v799_v25, %v501_v31 }
  0xb7   : > { %v523_v35 = vadd.f32 %v769_v32, %v517_v34 }
  0xb9   : > { %v525_v37 = vmax.f32 %v523_v35, 0.0 }
  0xbb   : > { %v773_v38 = vpack.c.bf16 %v525_v37, %v524_v36 }
  0xbd   : > { %774 = vst [vmem:[%s325_s15] sm:$0xff] %v773_v38  }
  0xbe PF: > { %s14_s17 = sadd.s32 1, %s822_s17   ;;  %s948_s15 = smov %s818_s16 }
  0xbf   : > { %p11_p5 = scmp.ge.s32.totalorder %s14_s17, 4   ;;  %s949_s16 = smov %s951_s18 }
  0xc1   :  { %13 = sbr.rel (!%p11_p5) target bundleno = 2 (0x2), region = 83 }

// kernel: tile.38
= control target key start
LH: loop header
LB: loop body
LE: loop exit
PB: predicated region body
PF: predicated region fallthrough
CT: control target
= control target key end

     0   :  { %s22_s0 = inlined_call_operand.vmem [shape: f32[4], index: 0, kind: input, shape index: {}]   ;;  %s23_s1 = inlined_call_operand.vmem [shape: f32[4,4], index: 1, kind: output, shape index: {}]  }
   0x1   :  { %v4_v0 = vld [vmem:[%s22_s0] ss:$0 sm:$0xff] }
   0x2   :  { %5 = vst [vmem:[%s23_s1] sm:$0xf] %v4_v0 }

// kernel: tile.39
= control target key start
LH: loop header
LB: loop body
LE: loop exit
PB: predicated region body
PF: predicated region fallthrough
CT: control target
= control target key end

     0   :  { %s37_s8 = smov 4   ;;  %s38_s9 = smov 8   ;;  %vm7_vm0 = vcmask 31744   ;;  %vm13_vm1 = vcmask 130144   ;;  %vm19_vm2 = vcmask 97344   ;;  %vm25_vm3 = vcmask 64544   ;;  %s55_s0 = inlined_call_operand.vmem [shape: f32[4,4], index: 0, kind: input, shape index: {}]   ;;  %s56_s1 = inlined_call_operand.vmem [shape: f32[1,16], index: 1, kind: output, shape index: {}]  }
   0x1   :  { %v4_v0 = vld [vmem:[%s55_s0] sm:$0xf]  ;;  %s36_s0 = smov 12  }
   0x2   :  { %5 = vst [vmem:[#allocation1] sm:$0xf] %v4_v0 }
   0x9   :  { %v10_v1 = vld [vmem:[#allocation1 + $0x3] sm:$0x1]   ;;  %v22_v2 = vld [vmem:[#allocation1 + $0x1] sm:$0x1]   ;;  %v16_v3 = vld [vmem:[#allocation1 + $0x2] sm:$0x1]  }
   0xa   :  { %11 = vrot.lane.b32.xlu0 %v10_v1, %s36_s0  ;;  %23 = vrot.lane.b32.xlu1 %v22_v2, %s37_s8  ;;  %v6_v4 = vld [vmem:[#allocation1] sm:$0x1]  }
   0xb   :  { %8 = vst.msk [vmem:[#allocation0] sm:$0x1] %vm7_vm0, %v6_v4  }
  0x12   :  { %17 = vrot.lane.b32.xlu0 %v16_v3, %s38_s9 }
  0x7c   :  { %v12_v5 = vpop.permute.xlu0 %11   ;;  %v24_v6 = vpop.permute.xlu1 %23  }
  0x7d   :  { %14 = vst.msk [vmem:[#allocation0] sm:$0x1] %vm13_vm1, %v12_v5  }
  0x84   :  { %v18_v7 = vpop.permute.xlu0 %17  }
  0x85   :  { %20 = vst.msk [vmem:[#allocation0] sm:$0x1] %vm19_vm2, %v18_v7  }
  0x86   :  { %26 = vst.msk [vmem:[#allocation0] sm:$0x1] %vm25_vm3, %v24_v6  }
  0x8d   :  { %v29_v8 = vld [vmem:[#allocation0] sm:$0x1] }
  0x8e   :  { %32 = vst [vmem:[%s56_s1] sm:$0x1] %v29_v8 }

// kernel: unet_forward.18
= control target key start
LH: loop header
LB: loop body
LE: loop exit
PB: predicated region body
PF: predicated region fallthrough
CT: control target
= control target key end

     0   :  { %s892_s15 = smov 0   ;;  %s894_s16 = smov 0   ;;  %s963_s0 = inlined_call_operand.vmem [shape: bf16[128,128], index: 0, kind: input, shape index: {}]   ;;  %s964_s1 = inlined_call_operand.vmem [shape: bf16[128,128], index: 1, kind: input, shape index: {}]   ;;  %s965_s2 = inlined_call_operand.vmem [shape: f32[1,128], index: 2, kind: input, shape index: {}]   ;;  %s966_s3 = inlined_call_operand.vmem [shape: bf16[128,128], index: 3, kind: input, shape index: {}]   ;;  %s967_s4 = inlined_call_operand.vmem [shape: bf16[128,128], index: 4, kind: output, shape index: {}]  }
   0x1   :  { %s896_s17 = smov 0  }
   0x2 LB: > { %s33_s18 = sadd.s32 1, %s861_s16  ;;  %p683_p0 = scmp.ge.s32.totalorder %s865_s17, 1  ;;  %s865_s17 = sphi %s896_s17, %s14_s17   ;;  %s861_s16 = sphi %s894_s16, %s969_s16   ;;  %s857_s15 = sphi %s892_s15, %s968_s15  }
   0x3   : > { %p35_p1 = scmp.ge.s32.totalorder %s33_s18, 2  ;;  %p229_p2 = scmp.lt.s32.totalorder %s865_s17, 3 }
   0x5   : > { %s971_s18 = smov (%p35_p1, %s33_s18), 0  ;;  %p230_p3 = pnand %p683_p0, %p229_p2 }
   0x6   : > { %s684_s27 = sshll.u32 (!%p230_p3), %s857_s15, 3 }
   0x7   : > { %233 = sbr.rel (%p230_p3) target bundleno = 195 (0xc3), region = 36  ;;  %p281_p4 = scmp.lt.s32.totalorder (!%p230_p3), %s684_s27, 15 }
   0xc   : > { %v751_v0 = vld [vmem:[%s964_s1 + $0x38] sm:$0xff]  ;;  %v750_v1 = vld [vmem:[%s964_s1 + $0x30] sm:$0xff]  ;;  %v749_v2 = vld [vmem:[%s964_s1 + $0x28] sm:$0xff]  ;;  %s973_s27 = smov (!%p281_p4, %s684_s27), 15 }
   0xd   : > { %435 = vmatpush.bf16.msra.mxu0 %v751_v0  ;;  %794 = vmatpush.bf16.msra.mxu1 %v751_v0  ;;  %v748_v3 = vld [vmem:[%s964_s1 + $0x20] sm:$0xff]  ;;  %v747_v4 = vld [vmem:[%s964_s1 + $0x18] sm:$0xff]  ;;  %v746_v5 = vld [vmem:[%s964_s1 + $0x10] sm:$0xff]  ;;  %s934_s8 = sshll.u32 %s973_s27, 2 }
   0xe   : > { %795 = vmatpush.bf16.msra.mxu2 %v751_v0  ;;  %796 = vmatpush.bf16.msra.mxu3 %v751_v0  ;;  %v745_v6 = vld [vmem:[%s964_s1 + $0x8] sm:$0xff]  ;;  %v744_v7 = vld [vmem:[%s964_s1] sm:$0xff]  ;;  %s287_s13 = scalar_lea.vmem %s963_s0, %s934_s8  ;;  %s308_s19 = scalar_lea.vmem %s966_s3, %s934_s8 }
   0xf   : > { %v740_v8 = vld [vmem:[%s287_s13] sm:$0xff]  ;;  %v741_v9 = vld [vmem:[%s287_s13 + $0x8] sm:$0xff]  ;;  %v742_v10 = vld [vmem:[%s287_s13 + $0x10] sm:$0xff]  ;;  %s317_s24 = scalar_lea.vmem %s967_s4, %s934_s8 }
  0x10   : > { %v743_v11 = vld [vmem:[%s287_s13 + $0x18] sm:$0xff]  ;;  %v842_v14 = vld [vmem:[%s965_s2] ss:$0 sm:$0xff]  ;;  %v788_v16 = vld [vmem:[%s308_s19 + $0x8] sm:$0xff]  }
  0x11   : > { %436 = vmatpush.bf16.msra.mxu0 %v750_v1  ;;  %797 = vmatpush.bf16.msra.mxu1 %v750_v1  ;;  %v753_v15 = vld [vmem:[%s308_s19] sm:$0xff]   ;;  %v758_v20 = vunpack.c.l.bf16 %v788_v16  ;;  %v759_v24 = vunpack.c.h.bf16 %v788_v16  ;;  %v789_v29 = vld [vmem:[%s308_s19 + $0x10] sm:$0xff]   ;;  %v790_v30 = vld [vmem:[%s308_s19 + $0x18] sm:$0xff]  }
  0x12   : > { %798 = vmatpush.bf16.msra.mxu2 %v750_v1  ;;  %799 = vmatpush.bf16.msra.mxu3 %v750_v1  ;;  %v754_v18 = vunpack.c.l.bf16 %v753_v15  ;;  %v755_v23 = vunpack.c.h.bf16 %v753_v15  ;;  %v762_v36 = vunpack.c.l.bf16 %v789_v29  ;;  %v766_v38 = vunpack.c.l.bf16 %v790_v30 }
  0x13   : > { %v763_v43 = vunpack.c.h.bf16 %v789_v29  ;;  %v767_v44 = vunpack.c.h.bf16 %v790_v30 }
  0x15   : > { %437 = vmatpush.bf16.msra.mxu0 %v749_v2  ;;  %800 = vmatpush.bf16.msra.mxu1 %v749_v2 }
  0x16   : > { %801 = vmatpush.bf16.msra.mxu2 %v749_v2  ;;  %802 = vmatpush.bf16.msra.mxu3 %v749_v2 }
  0x19   : > { %438 = vmatpush.bf16.msra.mxu0 %v748_v3  ;;  %803 = vmatpush.bf16.msra.mxu1 %v748_v3 }
  0x1a   : > { %804 = vmatpush.bf16.msra.mxu2 %v748_v3  ;;  %805 = vmatpush.bf16.msra.mxu3 %v748_v3 }
  0x1d   : > { %439 = vmatpush.bf16.msra.mxu0 %v747_v4  ;;  %806 = vmatpush.bf16.msra.mxu1 %v747_v4 }
  0x1e   : > { %807 = vmatpush.bf16.msra.mxu2 %v747_v4  ;;  %808 = vmatpush.bf16.msra.mxu3 %v747_v4 }
  0x21   : > { %440 = vmatpush.bf16.msra.mxu0 %v746_v5  ;;  %809 = vmatpush.bf16.msra.mxu1 %v746_v5 }
  0x22   : > { %810 = vmatpush.bf16.msra.mxu2 %v746_v5  ;;  %811 = vmatpush.bf16.msra.mxu3 %v746_v5 }
  0x25   : > { %441 = vmatpush.bf16.msra.mxu0 %v745_v6  ;;  %812 = vmatpush.bf16.msra.mxu1 %v745_v6 }
  0x26   : > { %813 = vmatpush.bf16.msra.mxu2 %v745_v6  ;;  %814 = vmatpush.bf16.msra.mxu3 %v745_v6 }
  0x29   : > { %442 = vmatpush.bf16.msra.mxu0 %v744_v7  ;;  %815 = vmatpush.bf16.msra.mxu1 %v744_v7 }
  0x2a   : > { %816 = vmatpush.bf16.msra.mxu2 %v744_v7  ;;  %817 = vmatpush.bf16.msra.mxu3 %v744_v7 }
  0x2c   : > { %443 = vmatmul.bf16.vlgmr.msra.gmra.mxu0 %v740_v8  ;;  %448 = vmatmul.bf16.vlgmr.msra.gmra.mxu1 %v741_v9 }
  0x2d   : > { %453 = vmatmul.bf16.vlgmr.msra.gmra.mxu2 %v742_v10  ;;  %458 = vmatmul.bf16.vlgmr.msra.gmra.mxu3 %v743_v11 }
  0xa9   : > { %v444_v12 = vpop.f32.mrf.mxu0  ;;  %v449_v13 = vpop.f32.mrf.mxu1 }
  0xaa   : > { %v495_v17 = vadd.f32 %v842_v14, %v444_v12  ;;  %v497_v19 = vadd.f32 %v842_v14, %v449_v13 }
  0xac   : > { %v519_v27 = vadd.f32 %v754_v18, %v495_v17  ;;  %v521_v28 = vadd.f32 %v758_v20, %v497_v19 }
  0xae   : > { %v527_v39 = vmax.f32 %v519_v27, 0.0  ;;  %v529_v40 = vmax.f32 %v521_v28, 0.0 }
  0xb0   : > { %v454_v21 = vpop.f32.mrf.mxu2  ;;  %v459_v22 = vpop.f32.mrf.mxu3 }
  0xb1   : > { %v446_v25 = vpop.f32.mrf.mxu0  ;;  %v451_v26 = vpop.f32.mrf.mxu1  ;;  %v499_v35 = vadd.f32 %v842_v14, %v454_v21  ;;  %v501_v37 = vadd.f32 %v842_v14, %v459_v22 }
  0xb2   : > { %v496_v31 = vadd.f32 %v842_v14, %v446_v25  ;;  %v498_v32 = vadd.f32 %v842_v14, %v451_v26 }
  0xb3   : > { %v523_v49 = vadd.f32 %v762_v36, %v499_v35  ;;  %v525_v50 = vadd.f32 %v766_v38, %v501_v37 }
  0xb4   : > { %v520_v33 = vadd.f32 %v755_v23, %v496_v31  ;;  %v522_v34 = vadd.f32 %v759_v24, %v498_v32 }
  0xb5   : > { %v531_v55 = vmax.f32 %v523_v49, 0.0  ;;  %v533_v56 = vmax.f32 %v525_v50, 0.0 }
  0xb6   : > { %v528_v41 = vmax.f32 %v520_v33, 0.0  ;;  %v530_v42 = vmax.f32 %v522_v34, 0.0 }
  0xb8   : > { %v771_v45 = vpack.c.bf16 %v528_v41, %v527_v39  ;;  %v776_v46 = vpack.c.bf16 %v530_v42, %v529_v40  ;;  %v456_v47 = vpop.f32.mrf.mxu2  ;;  %v461_v48 = vpop.f32.mrf.mxu3 }
  0xb9   : > { %v500_v51 = vadd.f32 %v842_v14, %v456_v47  ;;  %v502_v52 = vadd.f32 %v842_v14, %v461_v48 }
  0xba   : > { %772 = vst [vmem:[%s317_s24] sm:$0xff] %v771_v45  }
  0xbb   : > { %791 = vst [vmem:[%s317_s24 + $0x8] sm:$0xff] %v776_v46   ;;  %v524_v53 = vadd.f32 %v763_v43, %v500_v51  ;;  %v526_v54 = vadd.f32 %v767_v44, %v502_v52 }
  0xbd   : > { %v532_v57 = vmax.f32 %v524_v53, 0.0  ;;  %v534_v58 = vmax.f32 %v526_v54, 0.0 }
  0xbf   : > { %v781_v59 = vpack.c.bf16 %v532_v57, %v531_v55  ;;  %v786_v60 = vpack.c.bf16 %v534_v58, %v533_v56 }
  0xc1   : > { %792 = vst [vmem:[%s317_s24 + $0x10] sm:$0xff] %v781_v59  }
  0xc2   : > { %793 = vst [vmem:[%s317_s24 + $0x18] sm:$0xff] %v786_v60  }
  0xc3 PF: > { %s14_s17 = sadd.s32 1, %s865_s17   ;;  %s968_s15 = smov %s861_s16 }
  0xc4   : > { %p11_p5 = scmp.ge.s32.totalorder %s14_s17, 4   ;;  %s969_s16 = smov %s971_s18 }
  0xc6   :  { %13 = sbr.rel (!%p11_p5) target bundleno = 2 (0x2), region = 83 }

// kernel: unet_forward.19
= control target key start
LH: loop header
LB: loop body
LE: loop exit
PB: predicated region body
PF: predicated region fallthrough
CT: control target
= control target key end

     0   :  { %s1208_s12 = smov 0   ;;  %s1210_s13 = smov 0   ;;  %s1361_s0 = inlined_call_operand.vmem [shape: bf16[512,128], index: 0, kind: input, shape index: {}]   ;;  %s1362_s1 = inlined_call_operand.vmem [shape: bf16[128,128], index: 1, kind: input, shape index: {}]   ;;  %s1363_s2 = inlined_call_operand.vmem [shape: f32[1,128], index: 2, kind: input, shape index: {}]   ;;  %s1364_s3 = inlined_call_operand.vmem [shape: f32[512,128], index: 3, kind: output, shape index: {}]  }
   0x1   :  { %s1212_s14 = smov 0  }
   0x2 LB: > { %s32_s15 = sadd.s32 1, %s1182_s13  ;;  %p924_p0 = scmp.ge.s32.totalorder %s1186_s14, 1  ;;  %s1186_s14 = sphi %s1212_s14, %s13_s14   ;;  %s1182_s13 = sphi %s1210_s13, %s1366_s13   ;;  %s1178_s12 = sphi %s1208_s12, %s1365_s12  }
   0x3   : > { %p34_p1 = scmp.ge.s32.totalorder %s32_s15, 2  ;;  %p188_p2 = scmp.lt.s32.totalorder %s1186_s14, 3 }
   0x5   : > { %s1368_s15 = smov (%p34_p1, %s32_s15), 0  ;;  %p189_p3 = pnand %p924_p0, %p188_p2 }
   0x6   : > { %s925_s24 = sshll.u32 (!%p189_p3), %s1178_s12, 5 }
   0x7   : > { %192 = sbr.rel (%p189_p3) target bundleno = 244 (0xf4), region = 32  ;;  %p230_p4 = scmp.lt.s32.totalorder (!%p189_p3), %s925_s24, 63 }
   0xc   : > { %v1050_v0 = vld [vmem:[%s1362_s1 + $0x38] sm:$0xff]  ;;  %v1049_v1 = vld [vmem:[%s1362_s1 + $0x30] sm:$0xff]  ;;  %v1048_v2 = vld [vmem:[%s1362_s1 + $0x28] sm:$0xff]  ;;  %s1370_s24 = smov (!%p230_p4, %s925_s24), 63 }
   0xd   : > { %519 = vmatpush.bf16.msra.mxu0 %v1050_v0  ;;  %1051 = vmatpush.bf16.msra.mxu1 %v1050_v0  ;;  %v1047_v3 = vld [vmem:[%s1362_s1 + $0x20] sm:$0xff]  ;;  %v1046_v4 = vld [vmem:[%s1362_s1 + $0x18] sm:$0xff]  ;;  %v1045_v5 = vld [vmem:[%s1362_s1 + $0x10] sm:$0xff]  ;;  %s926_s4 = sshll.u32 %s1370_s24, 2  ;;  %s928_s12 = sshll.u32 %s1370_s24, 3 }
   0xe   : > { %1052 = vmatpush.bf16.msra.mxu2 %v1050_v0  ;;  %1053 = vmatpush.bf16.msra.mxu3 %v1050_v0  ;;  %v1044_v6 = vld [vmem:[%s1362_s1 + $0x8] sm:$0xff]  ;;  %v1043_v7 = vld [vmem:[%s1362_s1] sm:$0xff]  ;;  %s1259_s9 = scalar_lea.vmem %s1361_s0, %s926_s4  ;;  %s1288_s18 = scalar_lea.vmem %s1364_s3, %s928_s12 }
   0xf   : > { %v1027_v8 = vld [vmem:[%s1259_s9] sm:$0xff]  ;;  %v1028_v12 = vld [vmem:[%s1259_s9 + $0x8] sm:$0xff]  ;;  %v1029_v16 = vld [vmem:[%s1259_s9 + $0x10] sm:$0xff] }
  0x10   : > { %v1031_v9 = vld [vmem:[%s1259_s9 + $0x20] sm:$0xff]  ;;  %v1032_v13 = vld [vmem:[%s1259_s9 + $0x28] sm:$0xff]  ;;  %v1033_v17 = vld [vmem:[%s1259_s9 + $0x30] sm:$0xff] }
  0x11   : > { %520 = vmatpush.bf16.msra.mxu0 %v1049_v1  ;;  %1054 = vmatpush.bf16.msra.mxu1 %v1049_v1  ;;  %v1035_v10 = vld [vmem:[%s1259_s9 + $0x40] sm:$0xff]  ;;  %v1036_v14 = vld [vmem:[%s1259_s9 + $0x48] sm:$0xff]  ;;  %v1037_v18 = vld [vmem:[%s1259_s9 + $0x50] sm:$0xff] }
  0x12   : > { %1055 = vmatpush.bf16.msra.mxu2 %v1049_v1  ;;  %1056 = vmatpush.bf16.msra.mxu3 %v1049_v1  ;;  %v1039_v11 = vld [vmem:[%s1259_s9 + $0x60] sm:$0xff]  ;;  %v1040_v15 = vld [vmem:[%s1259_s9 + $0x68] sm:$0xff]  ;;  %v1041_v19 = vld [vmem:[%s1259_s9 + $0x70] sm:$0xff] }
  0x13   : > { %v1030_v20 = vld [vmem:[%s1259_s9 + $0x18] sm:$0xff]  ;;  %v1280_v24 = vld [vmem:[%s1363_s2] ss:$0 sm:$0xff] }
  0x14   : > { %v1034_v21 = vld [vmem:[%s1259_s9 + $0x38] sm:$0xff] }
  0x15   : > { %521 = vmatpush.bf16.msra.mxu0 %v1048_v2  ;;  %1057 = vmatpush.bf16.msra.mxu1 %v1048_v2  ;;  %v1038_v22 = vld [vmem:[%s1259_s9 + $0x58] sm:$0xff] }
  0x16   : > { %1058 = vmatpush.bf16.msra.mxu2 %v1048_v2  ;;  %1059 = vmatpush.bf16.msra.mxu3 %v1048_v2  ;;  %v1042_v23 = vld [vmem:[%s1259_s9 + $0x78] sm:$0xff] }
  0x19   : > { %522 = vmatpush.bf16.msra.mxu0 %v1047_v3  ;;  %1060 = vmatpush.bf16.msra.mxu1 %v1047_v3 }
  0x1a   : > { %1061 = vmatpush.bf16.msra.mxu2 %v1047_v3  ;;  %1062 = vmatpush.bf16.msra.mxu3 %v1047_v3 }
  0x1d   : > { %523 = vmatpush.bf16.msra.mxu0 %v1046_v4  ;;  %1063 = vmatpush.bf16.msra.mxu1 %v1046_v4 }
  0x1e   : > { %1064 = vmatpush.bf16.msra.mxu2 %v1046_v4  ;;  %1065 = vmatpush.bf16.msra.mxu3 %v1046_v4 }
  0x21   : > { %524 = vmatpush.bf16.msra.mxu0 %v1045_v5  ;;  %1066 = vmatpush.bf16.msra.mxu1 %v1045_v5 }
  0x22   : > { %1067 = vmatpush.bf16.msra.mxu2 %v1045_v5  ;;  %1068 = vmatpush.bf16.msra.mxu3 %v1045_v5 }
  0x25   : > { %525 = vmatpush.bf16.msra.mxu0 %v1044_v6  ;;  %1069 = vmatpush.bf16.msra.mxu1 %v1044_v6 }
  0x26   : > { %1070 = vmatpush.bf16.msra.mxu2 %v1044_v6  ;;  %1071 = vmatpush.bf16.msra.mxu3 %v1044_v6 }
  0x29   : > { %526 = vmatpush.bf16.msra.mxu0 %v1043_v7  ;;  %1072 = vmatpush.bf16.msra.mxu1 %v1043_v7 }
  0x2a   : > { %1073 = vmatpush.bf16.msra.mxu2 %v1043_v7  ;;  %1074 = vmatpush.bf16.msra.mxu3 %v1043_v7 }
  0x2c   : > { %527 = vmatmul.bf16.vlgmr.msra.gmra.mxu0 %v1027_v8  ;;  %547 = vmatmul.bf16.vlgmr.msra.gmra.mxu1 %v1031_v9 }
  0x2d   : > { %567 = vmatmul.bf16.vlgmr.msra.gmra.mxu2 %v1035_v10  ;;  %587 = vmatmul.bf16.vlgmr.msra.gmra.mxu3 %v1039_v11 }
  0x3c   : > { %532 = vmatmul.bf16.gmra.mxu0 %v1028_v12  ;;  %552 = vmatmul.bf16.gmra.mxu1 %v1032_v13 }
  0x3d   : > { %572 = vmatmul.bf16.gmra.mxu2 %v1036_v14  ;;  %592 = vmatmul.bf16.gmra.mxu3 %v1040_v15 }
  0x4c   : > { %537 = vmatmul.bf16.gmra.mxu0 %v1029_v16  ;;  %557 = vmatmul.bf16.gmra.mxu1 %v1033_v17 }
  0x4d   : > { %577 = vmatmul.bf16.gmra.mxu2 %v1037_v18  ;;  %597 = vmatmul.bf16.gmra.mxu3 %v1041_v19 }
  0x5c   : > { %542 = vmatmul.bf16.gmra.mxu0 %v1030_v20  ;;  %562 = vmatmul.bf16.gmra.mxu1 %v1034_v21 }
  0x5d   : > { %582 = vmatmul.bf16.gmra.mxu2 %v1038_v22  ;;  %602 = vmatmul.bf16.gmra.mxu3 %v1042_v23 }
  0xa9   : > { %v528_v25 = vpop.f32.mrf.mxu0  ;;  %v548_v26 = vpop.f32.mrf.mxu1 }
  0xaa   : > { %v711_v27 = vadd.f32 %v1280_v24, %v528_v25  ;;  %v719_v28 = vadd.f32 %v1280_v24, %v548_v26 }
  0xac   : > { %1100 = vtanh.f32 %v711_v27 }
  0xad   : > { %1102 = vtanh.f32 %v719_v28 }
  0xb0   : > { %v568_v29 = vpop.f32.mrf.mxu2  ;;  %v588_v30 = vpop.f32.mrf.mxu3 }
  0xb1   : > { %v727_v31 = vadd.f32 %v1280_v24, %v568_v29  ;;  %v735_v32 = vadd.f32 %v1280_v24, %v588_v30  ;;  %v530_v33 = vpop.f32.mrf.mxu0  ;;  %v550_v34 = vpop.f32.mrf.mxu1 }
  0xb2   : > { %v1101_v35 = vpop.eup %1100  ;;  %v712_v36 = vadd.f32 %v1280_v24, %v530_v33  ;;  %v720_v37 = vadd.f32 %v1280_v24, %v550_v34 }
  0xb3   : > { %v1103_v38 = vpop.eup %1102  ;;  %775 = vst [vmem:[%s1288_s18] sm:$0xff] %v1101_v35  ;;  %1104 = vtanh.f32 %v727_v31 }
  0xb4   : > { %783 = vst [vmem:[%s1288_s18 + $0x40] sm:$0xff] %v1103_v38  ;;  %1106 = vtanh.f32 %v735_v32 }
  0xb5   : > { %1108 = vtanh.f32 %v712_v36 }
  0xb6   : > { %1110 = vtanh.f32 %v720_v37 }
  0xb8   : > { %v570_v39 = vpop.f32.mrf.mxu2  ;;  %v590_v40 = vpop.f32.mrf.mxu3 }
  0xb9   : > { %v1105_v41 = vpop.eup %1104  ;;  %v728_v42 = vadd.f32 %v1280_v24, %v570_v39  ;;  %v736_v43 = vadd.f32 %v1280_v24, %v590_v40  ;;  %v533_v44 = vpop.f32.mrf.mxu0 }
  0xba   : > { %v553_v45 = vpop.f32.mrf.mxu1  ;;  %v1107_v46 = vpop.eup %1106  ;;  %791 = vst [vmem:[%s1288_s18 + $0x80] sm:$0xff] %v1105_v41  ;;  %v713_v47 = vadd.f32 %v1280_v24, %v533_v44 }
  0xbb   : > { %v721_v48 = vadd.f32 %v1280_v24, %v553_v45  ;;  %v1109_v49 = vpop.eup %1108  ;;  %799 = vst [vmem:[%s1288_s18 + $0xc0] sm:$0xff] %v1107_v46  ;;  %1112 = vtanh.f32 %v728_v42 }
  0xbc   : > { %v1111_v50 = vpop.eup %1110  ;;  %776 = vst [vmem:[%s1288_s18 + $0x8] sm:$0xff] %v1109_v49  ;;  %1114 = vtanh.f32 %v736_v43 }
  0xbd   : > { %784 = vst [vmem:[%s1288_s18 + $0x48] sm:$0xff] %v1111_v50  ;;  %1116 = vtanh.f32 %v713_v47 }
  0xbe   : > { %1118 = vtanh.f32 %v721_v48 }
  0xc0   : > { %v573_v51 = vpop.f32.mrf.mxu2  ;;  %v593_v52 = vpop.f32.mrf.mxu3 }
  0xc1   : > { %v1113_v53 = vpop.eup %1112  ;;  %v729_v54 = vadd.f32 %v1280_v24, %v573_v51  ;;  %v737_v55 = vadd.f32 %v1280_v24, %v593_v52  ;;  %v535_v56 = vpop.f32.mrf.mxu0 }
  0xc2   : > { %v555_v57 = vpop.f32.mrf.mxu1  ;;  %v1115_v58 = vpop.eup %1114  ;;  %792 = vst [vmem:[%s1288_s18 + $0x88] sm:$0xff] %v1113_v53  ;;  %v714_v59 = vadd.f32 %v1280_v24, %v535_v56 }
  0xc3   : > { %v722_v60 = vadd.f32 %v1280_v24, %v555_v57  ;;  %v1117_v61 = vpop.eup %1116  ;;  %800 = vst [vmem:[%s1288_s18 + $0xc8] sm:$0xff] %v1115_v58  ;;  %1120 = vtanh.f32 %v729_v54 }
  0xc4   : > { %v1119_v62 = vpop.eup %1118  ;;  %777 = vst [vmem:[%s1288_s18 + $0x10] sm:$0xff] %v1117_v61  ;;  %1122 = vtanh.f32 %v737_v55 }
  0xc5   : > { %785 = vst [vmem:[%s1288_s18 + $0x50] sm:$0xff] %v1119_v62  ;;  %1124 = vtanh.f32 %v714_v59 }
  0xc6   : > { %1126 = vtanh.f32 %v722_v60 }
  0xc8   : > { %v575_v63 = vpop.f32.mrf.mxu2  ;;  %v595_v0 = vpop.f32.mrf.mxu3 }
  0xc9   : > { %v1121_v1 = vpop.eup %1120  ;;  %v730_v2 = vadd.f32 %v1280_v24, %v575_v63  ;;  %v738_v3 = vadd.f32 %v1280_v24, %v595_v0  ;;  %v538_v4 = vpop.f32.mrf.mxu0 }
  0xca   : > { %v558_v5 = vpop.f32.mrf.mxu1  ;;  %v1123_v6 = vpop.eup %1122  ;;  %793 = vst [vmem:[%s1288_s18 + $0x90] sm:$0xff] %v1121_v1  ;;  %v715_v7 = vadd.f32 %v1280_v24, %v538_v4 }
  0xcb   : > { %v723_v8 = vadd.f32 %v1280_v24, %v558_v5  ;;  %v1125_v9 = vpop.eup %1124  ;;  %801 = vst [vmem:[%s1288_s18 + $0xd0] sm:$0xff] %v1123_v6  ;;  %1128 = vtanh.f32 %v730_v2 }
  0xcc   : > { %v1127_v10 = vpop.eup %1126  ;;  %778 = vst [vmem:[%s1288_s18 + $0x18] sm:$0xff] %v1125_v9  ;;  %1130 = vtanh.f32 %v738_v3 }
  0xcd   : > { %786 = vst [vmem:[%s1288_s18 + $0x58] sm:$0xff] %v1127_v10  ;;  %1132 = vtanh.f32 %v715_v7 }
  0xce   : > { %1134 = vtanh.f32 %v723_v8 }
  0xd0   : > { %v578_v11 = vpop.f32.mrf.mxu2  ;;  %v598_v12 = vpop.f32.mrf.mxu3 }
  0xd1   : > { %v1129_v13 = vpop.eup %1128  ;;  %v731_v14 = vadd.f32 %v1280_v24, %v578_v11  ;;  %v739_v15 = vadd.f32 %v1280_v24, %v598_v12  ;;  %v540_v16 = vpop.f32.mrf.mxu0 }
  0xd2   : > { %v560_v17 = vpop.f32.mrf.mxu1  ;;  %v1131_v18 = vpop.eup %1130  ;;  %794 = vst [vmem:[%s1288_s18 + $0x98] sm:$0xff] %v1129_v13  ;;  %v716_v19 = vadd.f32 %v1280_v24, %v540_v16 }
  0xd3   : > { %v724_v20 = vadd.f32 %v1280_v24, %v560_v17  ;;  %v1133_v21 = vpop.eup %1132  ;;  %802 = vst [vmem:[%s1288_s18 + $0xd8] sm:$0xff] %v1131_v18  ;;  %1136 = vtanh.f32 %v731_v14 }
  0xd4   : > { %v1135_v22 = vpop.eup %1134  ;;  %779 = vst [vmem:[%s1288_s18 + $0x20] sm:$0xff] %v1133_v21  ;;  %1138 = vtanh.f32 %v739_v15 }
  0xd5   : > { %787 = vst [vmem:[%s1288_s18 + $0x60] sm:$0xff] %v1135_v22  ;;  %1140 = vtanh.f32 %v716_v19 }
  0xd6   : > { %1142 = vtanh.f32 %v724_v20 }
  0xd8   : > { %v580_v23 = vpop.f32.mrf.mxu2  ;;  %v600_v25 = vpop.f32.mrf.mxu3 }
  0xd9   : > { %v1137_v26 = vpop.eup %1136  ;;  %v732_v27 = vadd.f32 %v1280_v24, %v580_v23  ;;  %v740_v28 = vadd.f32 %v1280_v24, %v600_v25  ;;  %v543_v29 = vpop.f32.mrf.mxu0 }
  0xda   : > { %v563_v30 = vpop.f32.mrf.mxu1  ;;  %v1139_v31 = vpop.eup %1138  ;;  %795 = vst [vmem:[%s1288_s18 + $0xa0] sm:$0xff] %v1137_v26  ;;  %v717_v32 = vadd.f32 %v1280_v24, %v543_v29 }
  0xdb   : > { %v725_v33 = vadd.f32 %v1280_v24, %v563_v30  ;;  %v1141_v34 = vpop.eup %1140  ;;  %803 = vst [vmem:[%s1288_s18 + $0xe0] sm:$0xff] %v1139_v31  ;;  %1144 = vtanh.f32 %v732_v27 }
  0xdc   : > { %v1143_v35 = vpop.eup %1142  ;;  %780 = vst [vmem:[%s1288_s18 + $0x28] sm:$0xff] %v1141_v34  ;;  %1146 = vtanh.f32 %v740_v28 }
  0xdd   : > { %788 = vst [vmem:[%s1288_s18 + $0x68] sm:$0xff] %v1143_v35  ;;  %1148 = vtanh.f32 %v717_v32 }
  0xde   : > { %1150 = vtanh.f32 %v725_v33 }
  0xe0   : > { %v583_v36 = vpop.f32.mrf.mxu2  ;;  %v603_v37 = vpop.f32.mrf.mxu3 }
  0xe1   : > { %v1145_v38 = vpop.eup %1144  ;;  %v733_v39 = vadd.f32 %v1280_v24, %v583_v36  ;;  %v741_v40 = vadd.f32 %v1280_v24, %v603_v37  ;;  %v545_v41 = vpop.f32.mrf.mxu0 }
  0xe2   : > { %v565_v42 = vpop.f32.mrf.mxu1  ;;  %v1147_v43 = vpop.eup %1146  ;;  %796 = vst [vmem:[%s1288_s18 + $0xa8] sm:$0xff] %v1145_v38  ;;  %v718_v44 = vadd.f32 %v1280_v24, %v545_v41 }
  0xe3   : > { %v726_v45 = vadd.f32 %v1280_v24, %v565_v42  ;;  %v1149_v46 = vpop.eup %1148  ;;  %804 = vst [vmem:[%s1288_s18 + $0xe8] sm:$0xff] %v1147_v43  ;;  %1152 = vtanh.f32 %v733_v39 }
  0xe4   : > { %v1151_v47 = vpop.eup %1150  ;;  %781 = vst [vmem:[%s1288_s18 + $0x30] sm:$0xff] %v1149_v46  ;;  %1154 = vtanh.f32 %v741_v40 }
  0xe5   : > { %789 = vst [vmem:[%s1288_s18 + $0x70] sm:$0xff] %v1151_v47  ;;  %1156 = vtanh.f32 %v718_v44 }
  0xe6   : > { %1158 = vtanh.f32 %v726_v45 }
  0xe8   : > { %v585_v48 = vpop.f32.mrf.mxu2  ;;  %v605_v49 = vpop.f32.mrf.mxu3 }
  0xe9   : > { %v1153_v50 = vpop.eup %1152  ;;  %v734_v51 = vadd.f32 %v1280_v24, %v585_v48  ;;  %v742_v52 = vadd.f32 %v1280_v24, %v605_v49 }
  0xea   : > { %v1155_v53 = vpop.eup %1154  ;;  %797 = vst [vmem:[%s1288_s18 + $0xb0] sm:$0xff] %v1153_v50 }
  0xeb   : > { %v1157_v54 = vpop.eup %1156  ;;  %805 = vst [vmem:[%s1288_s18 + $0xf0] sm:$0xff] %v1155_v53  ;;  %1160 = vtanh.f32 %v734_v51 }
  0xec   : > { %v1159_v55 = vpop.eup %1158  ;;  %782 = vst [vmem:[%s1288_s18 + $0x38] sm:$0xff] %v1157_v54  ;;  %1162 = vtanh.f32 %v742_v52 }
  0xed   : > { %790 = vst [vmem:[%s1288_s18 + $0x78] sm:$0xff] %v1159_v55 }
  0xf1   : > { %v1161_v56 = vpop.eup %1160 }
  0xf2   : > { %v1163_v57 = vpop.eup %1162  ;;  %798 = vst [vmem:[%s1288_s18 + $0xb8] sm:$0xff] %v1161_v56 }
  0xf3   : > { %806 = vst [vmem:[%s1288_s18 + $0xf8] sm:$0xff] %v1163_v57 }
  0xf4 PF: > { %s13_s14 = sadd.s32 1, %s1186_s14   ;;  %s1365_s12 = smov %s1182_s13 }
  0xf5   : > { %p10_p5 = scmp.ge.s32.totalorder %s13_s14, 4   ;;  %s1366_s13 = smov %s1368_s15 }
  0xf7   :  { %12 = sbr.rel (!%p10_p5) target bundleno = 2 (0x2), region = 76 }

</bundles_post_ra>
